<compile_context>
chip_gen: v7x
topology: tpu7x:2x2x1
jax: 0.10.0
libtpu: 0.0.40
codegen_flags: <defaults>
</compile_context>

<pallas_src>
import jax
import jax.numpy as jnp
from jax.experimental import pallas as pl
from jax.experimental.pallas import tpu as pltpu


# ---------------------------------------------------------------------------
# small helpers
# ---------------------------------------------------------------------------
def _round_up(x, m):
    return ((x + m - 1) // m) * m


def _pick_tile(m, cap):
    """Largest multiple of 8 that divides m and is <= cap (else m itself)."""
    if m <= cap:
        return m
    t = cap - cap % 8
    while t >= 8:
        if m % t == 0:
            return t
        t -= 8
    return m


# ---------------------------------------------------------------------------
# Pallas kernels
# ---------------------------------------------------------------------------
def _matmul_stats_kernel(a_ref, b_ref, o_ref, sum_ref, ssq_ref):
    """Per-phase o = a @ b (bf16 x bf16 -> f32) plus fused per-channel
    sum / sum-of-squares partials, resident only over the M grid axis."""
    i = pl.program_id(1)

    @pl.when(i == 0)
    def _():
        sum_ref[...] = jnp.zeros_like(sum_ref)
        ssq_ref[...] = jnp.zeros_like(ssq_ref)

    acc = jnp.dot(a_ref[...], b_ref[...], preferred_element_type=jnp.float32)
    o_ref[...] = acc
    c = acc.shape[-1]
    sum_ref[...] += jnp.sum(acc.reshape(-1, 8, c), axis=0)
    ssq_ref[...] += jnp.sum((acc * acc).reshape(-1, 8, c), axis=0)


def matmul_with_stats(patches, wmats, tm):
    """patches: (P, Mp, K) bf16; wmats: (P, K, C) bf16; Mp % tm == 0, tm % 8 == 0."""
    P, Mp, K = patches.shape
    C = wmats.shape[-1]
    return pl.pallas_call(
        _matmul_stats_kernel,
        out_shape=(
            jax.ShapeDtypeStruct((P, Mp, C), jnp.float32),
            jax.ShapeDtypeStruct((P, 8, C), jnp.float32),
            jax.ShapeDtypeStruct((P, 8, C), jnp.float32),
        ),
        grid=(P, Mp // tm),
        in_specs=[
            pl.BlockSpec((None, tm, K), lambda p, i: (p, i, 0)),
            pl.BlockSpec((None, K, C), lambda p, i: (p, 0, 0)),
        ],
        out_specs=(
            pl.BlockSpec((None, tm, C), lambda p, i: (p, i, 0)),
            pl.BlockSpec((None, 8, C), lambda p, i: (p, 0, 0)),
            pl.BlockSpec((None, 8, C), lambda p, i: (p, 0, 0)),
        ),
        compiler_params=pltpu.CompilerParams(
            dimension_semantics=("parallel", "arbitrary"),
            vmem_limit_bytes=32 * 1024 * 1024),
    )(patches, wmats)


def _bn_relu_kernel(x_ref, scale_ref, shift_ref, o_ref):
    y = x_ref[...] * scale_ref[...] + shift_ref[...]
    o_ref[...] = jnp.maximum(y, 0.0).astype(o_ref.dtype)


def bn_relu(x2d, scale_row, shift_row, tr):
    """One fused FMA+ReLU pass; scale/shift are precomputed (1, L) rows."""
    R, L = x2d.shape
    return pl.pallas_call(
        _bn_relu_kernel,
        out_shape=jax.ShapeDtypeStruct((R, L), jnp.bfloat16),
        grid=(R // tr,),
        in_specs=[
            pl.BlockSpec((tr, L), lambda i: (i, 0)),
            pl.BlockSpec((1, L), lambda i: (0, 0)),
            pl.BlockSpec((1, L), lambda i: (0, 0)),
        ],
        out_specs=pl.BlockSpec((tr, L), lambda i: (i, 0)),
        compiler_params=pltpu.CompilerParams(
            dimension_semantics=("parallel",)),
    )(x2d, scale_row, shift_row)


def _matmul_tanh_kernel(w_ref, x_ref, o_ref):
    acc = jnp.dot(w_ref[...], x_ref[...], preferred_element_type=jnp.float32)
    o_ref[...] = jnp.tanh(acc)


def matmul_tanh_t(w_t, patches_t, tn):
    """Transposed final layer: (P, Cout, K) @ (P, K, Mp) -> (P, Cout, Mp).
    Output last dim (Mp) is lane-dense; tanh fused into the epilogue."""
    P, Co, K = w_t.shape
    Mp = patches_t.shape[-1]
    return pl.pallas_call(
        _matmul_tanh_kernel,
        out_shape=jax.ShapeDtypeStruct((P, Co, Mp), jnp.float32),
        grid=(P, Mp // tn),
        in_specs=[
            pl.BlockSpec((None, Co, K), lambda p, j: (p, 0, 0)),
            pl.BlockSpec((None, K, tn), lambda p, j: (p, 0, j)),
        ],
        out_specs=pl.BlockSpec((None, Co, tn), lambda p, j: (p, 0, j)),
        compiler_params=pltpu.CompilerParams(
            dimension_semantics=("parallel", "parallel"),
            vmem_limit_bytes=32 * 1024 * 1024),
    )(w_t, patches_t)


# ---------------------------------------------------------------------------
# Glue: sub-pixel decomposition of ConvTranspose2d(K=4, stride=2, pad=1)
# ---------------------------------------------------------------------------
# Output phase py uses kernel rows _KSEL[py] as its two taps (dy = 0, 1) on a
# 1-padded UNdilated input; same selection along x.
_KSEL = ((3, 1), (2, 0))


def _phase_patches(x_nhwc):
    """(N,H,W,C) -> (4, N*H*W, 4*C) tap matrix, tap order (dy, dx, ci)."""
    N, H, W, C = x_nhwc.shape
    xp = jnp.pad(x_nhwc, ((0, 0), (1, 1), (1, 1), (0, 0)))
    phases = []
    for py in (0, 1):
        for px in (0, 1):
            taps = [xp[:, py + dy:py + dy + H, px + dx:px + dx + W, :]
                    for dy in (0, 1) for dx in (0, 1)]
            phases.append(
                jnp.concatenate(taps, axis=-1).reshape(N * H * W, 4 * C))
    # TODO(synk): gather these taps with in-kernel DMAs (pl.Element / manual
    # make_async_copy on a padded NHWC input) instead of materializing the
    # 4x-expanded patch tensor in HBM.
    return jnp.stack(phases, axis=0)


def _phase_weights(w):
    """(Cin,Cout,4,4) -> (4, 4*Cin, Cout) per-phase 2x2 sub-kernels (dy,dx,ci)."""
    mats = []
    for py in (0, 1):
        for px in (0, 1):
            taps = [w[:, :, _KSEL[py][dy], _KSEL[px][dx]]
                    for dy in (0, 1) for dx in (0, 1)]     # each (Cin, Cout)
            mats.append(jnp.concatenate(taps, axis=0))      # (4*Cin, Cout)
    return jnp.stack(mats, axis=0)


def _bn_scale_shift(gamma, beta, ch_sum, ch_ssq, count, eps):
    mean = ch_sum / count
    # NOTE: single-pass E[x^2] - E[x]^2 in f32 (cancellation-prone only when
    # |mean| >> std; fine for these activations).
    var = ch_ssq / count - mean * mean
    invstd = jax.lax.rsqrt(var + eps)
    scale = gamma * invstd
    shift = beta - mean * scale
    return scale, shift


# ---------------------------------------------------------------------------
# layers
# ---------------------------------------------------------------------------
def deconv_first_bn_relu(z2d, w, gamma, beta, eps=1e-5):
    """ConvTranspose2d(z, C, 4, 1, 0, bias=False) + BN(batch stats) + ReLU
    on a 1x1 input.  Returns NHWC (N, 4, 4, Cout) bf16."""
    N, zc = z2d.shape
    Cout = w.shape[1]
    wm = w.transpose(0, 2, 3, 1).reshape(zc, 16 * Cout)       # (ci, (y,x,co))
    tm = min(512, _round_up(N, 8))
    Np = _round_up(N, tm)
    a = jnp.pad(z2d, ((0, Np - N), (0, 0))).astype(jnp.bfloat16)
    conv, s, q = matmul_with_stats(a[None], wm.astype(jnp.bfloat16)[None], tm)
    ch_sum = s.sum(axis=(0, 1)).reshape(16, Cout).sum(axis=0)
    ch_ssq = q.sum(axis=(0, 1)).reshape(16, Cout).sum(axis=0)
    scale, shift = _bn_scale_shift(gamma, beta, ch_sum, ch_ssq, N * 16, eps)
    scale_row = jnp.tile(scale, 16).reshape(1, 16 * Cout)
    shift_row = jnp.tile(shift, 16).reshape(1, 16 * Cout)
    y = bn_relu(conv.reshape(Np, 16 * Cout), scale_row, shift_row,
                _pick_tile(Np, 1024))
    return y[:N].reshape(N, 4, 4, Cout)


def deconv_s2_bn_relu(x_nhwc, w, gamma, beta, eps=1e-5):
    """ConvTranspose2d(Cin, Cout, 4, 2, 1, bias=False) + BN(batch stats) + ReLU.
    x_nhwc: (N,H,W,Cin) -> (N,2H,2W,Cout) bf16."""
    N, H, W, Cin = x_nhwc.shape
    Cout = w.shape[1]
    M = N * H * W
    tm = min(512, _round_up(M, 8))
    Mp = _round_up(M, tm)
    patches = _phase_patches(x_nhwc).astype(jnp.bfloat16)      # (4, M, 4Cin)
    if Mp != M:
        patches = jnp.pad(patches, ((0, 0), (0, Mp - M), (0, 0)))
    wm = _phase_weights(w).astype(jnp.bfloat16)                # (4, 4Cin, Cout)
    conv, s, q = matmul_with_stats(patches, wm, tm)            # (4, Mp, Cout) f32
    scale, shift = _bn_scale_shift(gamma, beta, s.sum(axis=(0, 1)),
                                   q.sum(axis=(0, 1)), 4 * M, eps)
    # lane-dense elementwise pass: fold channels into 128 lanes when C < 128
    if Cout < 128 and 128 % Cout == 0 and (4 * Mp * Cout) % 128 == 0:
        rep, L = 128 // Cout, 128
        scale_row = jnp.tile(scale, rep).reshape(1, L)
        shift_row = jnp.tile(shift, rep).reshape(1, L)
    else:
        L = Cout
        scale_row = scale.reshape(1, L)
        shift_row = shift.reshape(1, L)
    R = (4 * Mp * Cout) // L
    y = bn_relu(conv.reshape(R, L), scale_row, shift_row, _pick_tile(R, 1024))
    # interleave the 4 phases back into NHWC for the next layer
    # TODO(synk): fold this interleave into the kernel's output store (strided
    # writes) to save one more HBM round trip of the activation.
    a = y.reshape(4, Mp, Cout)[:, :M, :].reshape(2, 2, N, H, W, Cout)
    return a.transpose(2, 3, 0, 4, 1, 5).reshape(N, 2 * H, 2 * W, Cout)


def deconv_s2_tanh(x_nhwc, w):
    """Final ConvTranspose2d(Cin, Cout, 4, 2, 1, bias=False) + Tanh, computed
    transposed so the tiny-Cout output is stored lane-dense.  Returns NCHW f32."""
    N, H, W, Cin = x_nhwc.shape
    Cout = w.shape[1]
    M = N * H * W
    tn = 512 if M >= 512 else _round_up(M, 128)
    Mp = _round_up(M, tn)
    patches = _phase_patches(x_nhwc).astype(jnp.bfloat16)
    if Mp != M:
        patches = jnp.pad(patches, ((0, 0), (0, Mp - M), (0, 0)))
    p_t = jnp.swapaxes(patches, 1, 2)                                   # (4, 4Cin, Mp)
    w_t = jnp.swapaxes(_phase_weights(w), 1, 2).astype(jnp.bfloat16)    # (4, Cout, 4Cin)
    out_t = matmul_tanh_t(w_t, p_t, tn)                                 # (4, Cout, Mp)
    o = out_t[:, :, :M].reshape(2, 2, Cout, N, H, W)
    return o.transpose(3, 2, 4, 0, 5, 1).reshape(N, Cout, 2 * H, 2 * W)


# ---------------------------------------------------------------------------
# decoder64x64
# ---------------------------------------------------------------------------
def init_decoder_params(key, num_in_channels=3, z_size=2, num_filters=64):
    dims = [
        (z_size, num_filters * 8),
        (num_filters * 8, num_filters * 4),
        (num_filters * 4, num_filters * 2),
        (num_filters * 2, num_filters),
        (num_filters, num_in_channels),
    ]
    params = []
    for idx, (cin, cout) in enumerate(dims):
        key, kw, kg, kb = jax.random.split(key, 4)
        w = 0.02 * jax.random.normal(kw, (cin, cout, 4, 4), jnp.float32)
        if idx < len(dims) - 1:
            gamma = 1.0 + 0.02 * jax.random.normal(kg, (cout,), jnp.float32)
            beta = 0.01 * jax.random.normal(kb, (cout,), jnp.float32)
        else:                       # final layer has no BatchNorm
            gamma = jnp.ones((cout,), jnp.float32)
            beta = jnp.zeros((cout,), jnp.float32)
        params.append((w, gamma, beta))
    return params


@jax.jit
def decoder64x64_forward(z, params):
    """z: (N, z_size, 1, 1) -> (N, num_in_channels, 64, 64), NCHW like PyTorch.
    BatchNorm uses batch statistics (PyTorch training-mode forward).
    TODO(synk): running_mean/var bookkeeping is training-state only and does
    not affect this forward output, so it is not implemented."""
    (w1, g1, b1), (w2, g2, b2), (w3, g3, b3), (w4, g4, b4), (w5, _, _) = params
    N = z.shape[0]
    x = deconv_first_bn_relu(z.reshape(N, -1), w1, g1, b1)     # (N, 4, 4, 8nf)
    x = deconv_s2_bn_relu(x, w2, g2, b2)                       # (N, 8, 8, 4nf)
    x = deconv_s2_bn_relu(x, w3, g3, b3)                       # (N,16,16, 2nf)
    x = deconv_s2_bn_relu(x, w4, g4, b4)                       # (N,32,32,  nf)
    return deconv_s2_tanh(x, w5)                               # (N, nc,64,64)


if __name__ == "__main__":
    key = jax.random.PRNGKey(0)
    k_par, k_z = jax.random.split(key)

    # small configuration: z_size=4, num_filters=16, batch=2, 3 output channels
    Z_SIZE, NUM_FILTERS, NUM_IN_CH, BATCH = 4, 16, 3, 2
    params = init_decoder_params(k_par, num_in_channels=NUM_IN_CH,
                                 z_size=Z_SIZE, num_filters=NUM_FILTERS)
    z = jax.random.normal(k_z, (BATCH, Z_SIZE, 1, 1), jnp.float32)

    out = decoder64x64_forward(z, params)
    out = jax.block_until_ready(out)
    assert out.shape == (BATCH, NUM_IN_CH, 64, 64), out.shape
    assert bool(jnp.all(jnp.isfinite(out)))
    print("KERNEL_OK")
</pallas_src>

<mosaic_0001>
module attributes {stable_mosaic.version = 11 : i64} {
  func.func @_matmul_stats_kernel(%arg0: i32, %arg1: i32, %arg2: memref<1x8x4xbf16, #tpu.memory_space<vmem>>, %arg3: memref<1x4x2048xbf16, #tpu.memory_space<vmem>>, %arg4: memref<1x8x2048xf32, #tpu.memory_space<vmem>>, %arg5: memref<1x8x2048xf32, #tpu.memory_space<vmem>>, %arg6: memref<1x8x2048xf32, #tpu.memory_space<vmem>>) attributes {dimension_semantics = [#tpu.dimension_semantics<parallel>, #tpu.dimension_semantics<arbitrary>], iteration_bounds = array<i64: 1, 1>, scalar_prefetch = 0 : i64, scratch_operands = 0 : i64, tpu.core_type = #tpu.core_type<tc>, window_params = [{transform_indices = @transform_0, window_bounds = array<i64: 1, 8, 4>}, {transform_indices = @transform_1, window_bounds = array<i64: 1, 4, 2048>}, {transform_indices = @transform_2, window_bounds = array<i64: 1, 8, 2048>}, {transform_indices = @transform_3, window_bounds = array<i64: 1, 8, 2048>}, {transform_indices = @transform_4, window_bounds = array<i64: 1, 8, 2048>}]} {
    %c0_i32 = arith.constant 0 : i32
    %0 = arith.cmpi eq, %arg1, %c0_i32 : i32
    %1 = arith.extui %0 : i1 to i32
    %c0_i32_0 = arith.constant 0 : i32
    %2 = arith.cmpi ne, %1, %c0_i32_0 : i32
    scf.if %2 {
      %cst_23 = arith.constant 0.000000e+00 : f32
      %28 = vector.broadcast %cst_23 : f32 to vector<8x2048xf32>
      %c0_24 = arith.constant 0 : index
      %c0_25 = arith.constant 0 : index
      %c0_26 = arith.constant 0 : index
      %29 = vector.load %arg5[%c0_24, %c0_25, %c0_26] : memref<1x8x2048xf32, #tpu.memory_space<vmem>>, vector<1x8x2048xf32>
      %30 = vector.shape_cast %29 : vector<1x8x2048xf32> to vector<8x2048xf32>
      %31 = vector.shape_cast %28 : vector<8x2048xf32> to vector<1x8x2048xf32>
      tpu.vector_store %arg5[%c0_24, %c0_25, %c0_26], %31 {strides = array<i32>} : memref<1x8x2048xf32, #tpu.memory_space<vmem>>, vector<1x8x2048xf32>,
      %cst_27 = arith.constant 0.000000e+00 : f32
      %32 = vector.broadcast %cst_27 : f32 to vector<8x2048xf32>
      %c0_28 = arith.constant 0 : index
      %c0_29 = arith.constant 0 : index
      %c0_30 = arith.constant 0 : index
      %33 = vector.load %arg6[%c0_28, %c0_29, %c0_30] : memref<1x8x2048xf32, #tpu.memory_space<vmem>>, vector<1x8x2048xf32>
      %34 = vector.shape_cast %33 : vector<1x8x2048xf32> to vector<8x2048xf32>
      %35 = vector.shape_cast %32 : vector<8x2048xf32> to vector<1x8x2048xf32>
      tpu.vector_store %arg6[%c0_28, %c0_29, %c0_30], %35 {strides = array<i32>} : memref<1x8x2048xf32, #tpu.memory_space<vmem>>, vector<1x8x2048xf32>,
    } else {
    }
    %c0 = arith.constant 0 : index
    %c0_1 = arith.constant 0 : index
    %c0_2 = arith.constant 0 : index
    %3 = vector.load %arg2[%c0, %c0_1, %c0_2] : memref<1x8x4xbf16, #tpu.memory_space<vmem>>, vector<1x8x4xbf16>
    %4 = vector.shape_cast %3 : vector<1x8x4xbf16> to vector<8x4xbf16>
    %c0_3 = arith.constant 0 : index
    %c0_4 = arith.constant 0 : index
    %c0_5 = arith.constant 0 : index
    %5 = vector.load %arg3[%c0_3, %c0_4, %c0_5] : memref<1x4x2048xbf16, #tpu.memory_space<vmem>>, vector<1x4x2048xbf16>
    %6 = vector.shape_cast %5 : vector<1x4x2048xbf16> to vector<4x2048xbf16>
    %cst = arith.constant dense<0.000000e+00> : vector<8x2048xf32>
    %7 = tpu.matmul %4, %6, %cst {dimension_numbers = #tpu.dot_dimension_numbers<[1], [0], [0], [1], [0, 0, 1, 1], [], []>} : vector<8x4xbf16>, vector<4x2048xbf16>, vector<8x2048xf32> -> vector<8x2048xf32>
    %c0_6 = arith.constant 0 : index
    %c0_7 = arith.constant 0 : index
    %c0_8 = arith.constant 0 : index
    %8 = vector.load %arg4[%c0_6, %c0_7, %c0_8] : memref<1x8x2048xf32, #tpu.memory_space<vmem>>, vector<1x8x2048xf32>
    %9 = vector.shape_cast %8 : vector<1x8x2048xf32> to vector<8x2048xf32>
    %10 = vector.shape_cast %7 : vector<8x2048xf32> to vector<1x8x2048xf32>
    tpu.vector_store %arg4[%c0_6, %c0_7, %c0_8], %10 {strides = array<i32>} : memref<1x8x2048xf32, #tpu.memory_space<vmem>>, vector<1x8x2048xf32>,
    %c0_9 = arith.constant 0 : index
    %c0_10 = arith.constant 0 : index
    %c0_11 = arith.constant 0 : index
    %11 = vector.load %arg5[%c0_9, %c0_10, %c0_11] : memref<1x8x2048xf32, #tpu.memory_space<vmem>>, vector<1x8x2048xf32>
    %12 = vector.shape_cast %11 : vector<1x8x2048xf32> to vector<8x2048xf32>
    %13 = vector.shape_cast %7 : vector<8x2048xf32> to vector<1x8x2048xf32>
    %cst_12 = arith.constant dense<0.000000e+00> : vector<8x2048xf32>
    %14 = vector.multi_reduction <add>, %13, %cst_12 [0] : vector<1x8x2048xf32> to vector<8x2048xf32>
    %15 = arith.addf %12, %14 : vector<8x2048xf32>
    %c0_13 = arith.constant 0 : index
    %c0_14 = arith.constant 0 : index
    %c0_15 = arith.constant 0 : index
    %16 = vector.load %arg5[%c0_13, %c0_14, %c0_15] : memref<1x8x2048xf32, #tpu.memory_space<vmem>>, vector<1x8x2048xf32>
    %17 = vector.shape_cast %16 : vector<1x8x2048xf32> to vector<8x2048xf32>
    %18 = vector.shape_cast %15 : vector<8x2048xf32> to vector<1x8x2048xf32>
    tpu.vector_store %arg5[%c0_13, %c0_14, %c0_15], %18 {strides = array<i32>} : memref<1x8x2048xf32, #tpu.memory_space<vmem>>, vector<1x8x2048xf32>,
    %c0_16 = arith.constant 0 : index
    %c0_17 = arith.constant 0 : index
    %c0_18 = arith.constant 0 : index
    %19 = vector.load %arg6[%c0_16, %c0_17, %c0_18] : memref<1x8x2048xf32, #tpu.memory_space<vmem>>, vector<1x8x2048xf32>
    %20 = vector.shape_cast %19 : vector<1x8x2048xf32> to vector<8x2048xf32>
    %21 = arith.mulf %7, %7 : vector<8x2048xf32>
    %22 = vector.shape_cast %21 : vector<8x2048xf32> to vector<1x8x2048xf32>
    %cst_19 = arith.constant dense<0.000000e+00> : vector<8x2048xf32>
    %23 = vector.multi_reduction <add>, %22, %cst_19 [0] : vector<1x8x2048xf32> to vector<8x2048xf32>
    %24 = arith.addf %20, %23 : vector<8x2048xf32>
    %c0_20 = arith.constant 0 : index
    %c0_21 = arith.constant 0 : index
    %c0_22 = arith.constant 0 : index
    %25 = vector.load %arg6[%c0_20, %c0_21, %c0_22] : memref<1x8x2048xf32, #tpu.memory_space<vmem>>, vector<1x8x2048xf32>
    %26 = vector.shape_cast %25 : vector<1x8x2048xf32> to vector<8x2048xf32>
    %27 = vector.shape_cast %24 : vector<8x2048xf32> to vector<1x8x2048xf32>
    tpu.vector_store %arg6[%c0_20, %c0_21, %c0_22], %27 {strides = array<i32>} : memref<1x8x2048xf32, #tpu.memory_space<vmem>>, vector<1x8x2048xf32>,
    return
  }
  func.func @transform_0(%arg0: i32, %arg1: i32) -> (i32, i32, i32) {
    %c0_i32 = arith.constant 0 : i32
    %c0_i32_0 = arith.constant 0 : i32
    return %arg0, %arg1, %c0_i32 : i32, i32, i32
  }
  func.func @transform_1(%arg0: i32, %arg1: i32) -> (i32, i32, i32) {
    %c0_i32 = arith.constant 0 : i32
    %c0_i32_0 = arith.constant 0 : i32
    %c0_i32_1 = arith.constant 0 : i32
    return %arg0, %c0_i32, %c0_i32_0 : i32, i32, i32
  }
  func.func @transform_2(%arg0: i32, %arg1: i32) -> (i32, i32, i32) {
    %c0_i32 = arith.constant 0 : i32
    %c0_i32_0 = arith.constant 0 : i32
    return %arg0, %arg1, %c0_i32 : i32, i32, i32
  }
  func.func @transform_3(%arg0: i32, %arg1: i32) -> (i32, i32, i32) {
    %c0_i32 = arith.constant 0 : i32
    %c0_i32_0 = arith.constant 0 : i32
    %c0_i32_1 = arith.constant 0 : i32
    return %arg0, %c0_i32, %c0_i32_0 : i32, i32, i32
  }
  func.func @transform_4(%arg0: i32, %arg1: i32) -> (i32, i32, i32) {
    %c0_i32 = arith.constant 0 : i32
    %c0_i32_0 = arith.constant 0 : i32
    %c0_i32_1 = arith.constant 0 : i32
    return %arg0, %c0_i32, %c0_i32_0 : i32, i32, i32
  }
}

module attributes {stable_mosaic.version = 11 : i64} {
  func.func @_bn_relu_kernel(%arg0: i32, %arg1: memref<8x2048xf32, #tpu.memory_space<vmem>>, %arg2: memref<1x2048xf32, #tpu.memory_space<vmem>>, %arg3: memref<1x2048xf32, #tpu.memory_space<vmem>>, %arg4: memref<8x2048xbf16, #tpu.memory_space<vmem>>) attributes {dimension_semantics = [#tpu.dimension_semantics<parallel>], iteration_bounds = array<i64: 1>, scalar_prefetch = 0 : i64, scratch_operands = 0 : i64, tpu.core_type = #tpu.core_type<tc>, window_params = [{transform_indices = @transform_0, window_bounds = array<i64: 8, 2048>}, {pipeline_mode = #tpu.pipeline_mode<synchronous>, transform_indices = @transform_1, window_bounds = array<i64: 1, 2048>}, {pipeline_mode = #tpu.pipeline_mode<synchronous>, transform_indices = @transform_2, window_bounds = array<i64: 1, 2048>}, {transform_indices = @transform_3, window_bounds = array<i64: 8, 2048>}]} {
    %c0 = arith.constant 0 : index
    %c0_0 = arith.constant 0 : index
    %0 = vector.load %arg1[%c0, %c0_0] : memref<8x2048xf32, #tpu.memory_space<vmem>>, vector<8x2048xf32>
    %c0_1 = arith.constant 0 : index
    %c0_2 = arith.constant 0 : index
    %1 = vector.load %arg2[%c0_1, %c0_2] : memref<1x2048xf32, #tpu.memory_space<vmem>>, vector<1x2048xf32>
    %2 = vector.broadcast %1 : vector<1x2048xf32> to vector<8x2048xf32>
    %3 = arith.mulf %0, %2 : vector<8x2048xf32>
    %c0_3 = arith.constant 0 : index
    %c0_4 = arith.constant 0 : index
    %4 = vector.load %arg3[%c0_3, %c0_4] : memref<1x2048xf32, #tpu.memory_space<vmem>>, vector<1x2048xf32>
    %5 = vector.broadcast %4 : vector<1x2048xf32> to vector<8x2048xf32>
    %6 = arith.addf %3, %5 : vector<8x2048xf32>
    %cst = arith.constant 0.000000e+00 : f32
    %7 = vector.broadcast %cst : f32 to vector<8x2048xf32>
    %8 = arith.maximumf %6, %7 : vector<8x2048xf32>
    %9 = arith.truncf %8 : vector<8x2048xf32> to vector<8x2048xbf16>
    %c0_5 = arith.constant 0 : index
    %c0_6 = arith.constant 0 : index
    %10 = vector.load %arg4[%c0_5, %c0_6] : memref<8x2048xbf16, #tpu.memory_space<vmem>>, vector<8x2048xbf16>
    tpu.vector_store %arg4[%c0_5, %c0_6], %9 {strides = array<i32>} : memref<8x2048xbf16, #tpu.memory_space<vmem>>, vector<8x2048xbf16>,
    return
  }
  func.func @transform_0(%arg0: i32) -> (i32, i32) {
    %c0_i32 = arith.constant 0 : i32
    %c0_i32_0 = arith.constant 0 : i32
    return %arg0, %c0_i32 : i32, i32
  }
  func.func @transform_1(%arg0: i32) -> (i32, i32) {
    %c0_i32 = arith.constant 0 : i32
    %c0_i32_0 = arith.constant 0 : i32
    %c0_i32_1 = arith.constant 0 : i32
    return %c0_i32, %c0_i32_0 : i32, i32
  }
  func.func @transform_2(%arg0: i32) -> (i32, i32) {
    %c0_i32 = arith.constant 0 : i32
    %c0_i32_0 = arith.constant 0 : i32
    %c0_i32_1 = arith.constant 0 : i32
    return %c0_i32, %c0_i32_0 : i32, i32
  }
  func.func @transform_3(%arg0: i32) -> (i32, i32) {
    %c0_i32 = arith.constant 0 : i32
    %c0_i32_0 = arith.constant 0 : i32
    return %arg0, %c0_i32 : i32, i32
  }
}

module attributes {stable_mosaic.version = 11 : i64} {
  func.func @_matmul_stats_kernel(%arg0: i32, %arg1: i32, %arg2: memref<1x32x512xbf16, #tpu.memory_space<vmem>>, %arg3: memref<1x512x64xbf16, #tpu.memory_space<vmem>>, %arg4: memref<1x32x64xf32, #tpu.memory_space<vmem>>, %arg5: memref<1x8x64xf32, #tpu.memory_space<vmem>>, %arg6: memref<1x8x64xf32, #tpu.memory_space<vmem>>) attributes {dimension_semantics = [#tpu.dimension_semantics<parallel>, #tpu.dimension_semantics<arbitrary>], iteration_bounds = array<i64: 4, 1>, scalar_prefetch = 0 : i64, scratch_operands = 0 : i64, tpu.core_type = #tpu.core_type<tc>, window_params = [{transform_indices = @transform_0, window_bounds = array<i64: 1, 32, 512>}, {transform_indices = @transform_1, window_bounds = array<i64: 1, 512, 64>}, {transform_indices = @transform_2, window_bounds = array<i64: 1, 32, 64>}, {transform_indices = @transform_3, window_bounds = array<i64: 1, 8, 64>}, {transform_indices = @transform_4, window_bounds = array<i64: 1, 8, 64>}]} {
    %c0_i32 = arith.constant 0 : i32
    %0 = arith.cmpi eq, %arg1, %c0_i32 : i32
    %1 = arith.extui %0 : i1 to i32
    %c0_i32_0 = arith.constant 0 : i32
    %2 = arith.cmpi ne, %1, %c0_i32_0 : i32
    scf.if %2 {
      %cst_23 = arith.constant 0.000000e+00 : f32
      %28 = vector.broadcast %cst_23 : f32 to vector<8x64xf32>
      %c0_24 = arith.constant 0 : index
      %c0_25 = arith.constant 0 : index
      %c0_26 = arith.constant 0 : index
      %29 = vector.load %arg5[%c0_24, %c0_25, %c0_26] : memref<1x8x64xf32, #tpu.memory_space<vmem>>, vector<1x8x64xf32>
      %30 = vector.shape_cast %29 : vector<1x8x64xf32> to vector<8x64xf32>
      %31 = vector.shape_cast %28 : vector<8x64xf32> to vector<1x8x64xf32>
      tpu.vector_store %arg5[%c0_24, %c0_25, %c0_26], %31 {strides = array<i32>} : memref<1x8x64xf32, #tpu.memory_space<vmem>>, vector<1x8x64xf32>,
      %cst_27 = arith.constant 0.000000e+00 : f32
      %32 = vector.broadcast %cst_27 : f32 to vector<8x64xf32>
      %c0_28 = arith.constant 0 : index
      %c0_29 = arith.constant 0 : index
      %c0_30 = arith.constant 0 : index
      %33 = vector.load %arg6[%c0_28, %c0_29, %c0_30] : memref<1x8x64xf32, #tpu.memory_space<vmem>>, vector<1x8x64xf32>
      %34 = vector.shape_cast %33 : vector<1x8x64xf32> to vector<8x64xf32>
      %35 = vector.shape_cast %32 : vector<8x64xf32> to vector<1x8x64xf32>
      tpu.vector_store %arg6[%c0_28, %c0_29, %c0_30], %35 {strides = array<i32>} : memref<1x8x64xf32, #tpu.memory_space<vmem>>, vector<1x8x64xf32>,
    } else {
    }
    %c0 = arith.constant 0 : index
    %c0_1 = arith.constant 0 : index
    %c0_2 = arith.constant 0 : index
    %3 = vector.load %arg2[%c0, %c0_1, %c0_2] : memref<1x32x512xbf16, #tpu.memory_space<vmem>>, vector<1x32x512xbf16>
    %4 = vector.shape_cast %3 : vector<1x32x512xbf16> to vector<32x512xbf16>
    %c0_3 = arith.constant 0 : index
    %c0_4 = arith.constant 0 : index
    %c0_5 = arith.constant 0 : index
    %5 = vector.load %arg3[%c0_3, %c0_4, %c0_5] : memref<1x512x64xbf16, #tpu.memory_space<vmem>>, vector<1x512x64xbf16>
    %6 = vector.shape_cast %5 : vector<1x512x64xbf16> to vector<512x64xbf16>
    %cst = arith.constant dense<0.000000e+00> : vector<32x64xf32>
    %7 = tpu.matmul %4, %6, %cst {dimension_numbers = #tpu.dot_dimension_numbers<[1], [0], [0], [1], [0, 0, 1, 1], [], []>} : vector<32x512xbf16>, vector<512x64xbf16>, vector<32x64xf32> -> vector<32x64xf32>
    %c0_6 = arith.constant 0 : index
    %c0_7 = arith.constant 0 : index
    %c0_8 = arith.constant 0 : index
    %8 = vector.load %arg4[%c0_6, %c0_7, %c0_8] : memref<1x32x64xf32, #tpu.memory_space<vmem>>, vector<1x32x64xf32>
    %9 = vector.shape_cast %8 : vector<1x32x64xf32> to vector<32x64xf32>
    %10 = vector.shape_cast %7 : vector<32x64xf32> to vector<1x32x64xf32>
    tpu.vector_store %arg4[%c0_6, %c0_7, %c0_8], %10 {strides = array<i32>} : memref<1x32x64xf32, #tpu.memory_space<vmem>>, vector<1x32x64xf32>,
    %c0_9 = arith.constant 0 : index
    %c0_10 = arith.constant 0 : index
    %c0_11 = arith.constant 0 : index
    %11 = vector.load %arg5[%c0_9, %c0_10, %c0_11] : memref<1x8x64xf32, #tpu.memory_space<vmem>>, vector<1x8x64xf32>
    %12 = vector.shape_cast %11 : vector<1x8x64xf32> to vector<8x64xf32>
    %13 = vector.shape_cast %7 : vector<32x64xf32> to vector<4x8x64xf32>
    %cst_12 = arith.constant dense<0.000000e+00> : vector<8x64xf32>
    %14 = vector.multi_reduction <add>, %13, %cst_12 [0] : vector<4x8x64xf32> to vector<8x64xf32>
    %15 = arith.addf %12, %14 : vector<8x64xf32>
    %c0_13 = arith.constant 0 : index
    %c0_14 = arith.constant 0 : index
    %c0_15 = arith.constant 0 : index
    %16 = vector.load %arg5[%c0_13, %c0_14, %c0_15] : memref<1x8x64xf32, #tpu.memory_space<vmem>>, vector<1x8x64xf32>
    %17 = vector.shape_cast %16 : vector<1x8x64xf32> to vector<8x64xf32>
    %18 = vector.shape_cast %15 : vector<8x64xf32> to vector<1x8x64xf32>
    tpu.vector_store %arg5[%c0_13, %c0_14, %c0_15], %18 {strides = array<i32>} : memref<1x8x64xf32, #tpu.memory_space<vmem>>, vector<1x8x64xf32>,
    %c0_16 = arith.constant 0 : index
    %c0_17 = arith.constant 0 : index
    %c0_18 = arith.constant 0 : index
    %19 = vector.load %arg6[%c0_16, %c0_17, %c0_18] : memref<1x8x64xf32, #tpu.memory_space<vmem>>, vector<1x8x64xf32>
    %20 = vector.shape_cast %19 : vector<1x8x64xf32> to vector<8x64xf32>
    %21 = arith.mulf %7, %7 : vector<32x64xf32>
    %22 = vector.shape_cast %21 : vector<32x64xf32> to vector<4x8x64xf32>
    %cst_19 = arith.constant dense<0.000000e+00> : vector<8x64xf32>
    %23 = vector.multi_reduction <add>, %22, %cst_19 [0] : vector<4x8x64xf32> to vector<8x64xf32>
    %24 = arith.addf %20, %23 : vector<8x64xf32>
    %c0_20 = arith.constant 0 : index
    %c0_21 = arith.constant 0 : index
    %c0_22 = arith.constant 0 : index
    %25 = vector.load %arg6[%c0_20, %c0_21, %c0_22] : memref<1x8x64xf32, #tpu.memory_space<vmem>>, vector<1x8x64xf32>
    %26 = vector.shape_cast %25 : vector<1x8x64xf32> to vector<8x64xf32>
    %27 = vector.shape_cast %24 : vector<8x64xf32> to vector<1x8x64xf32>
    tpu.vector_store %arg6[%c0_20, %c0_21, %c0_22], %27 {strides = array<i32>} : memref<1x8x64xf32, #tpu.memory_space<vmem>>, vector<1x8x64xf32>,
    return
  }
  func.func @transform_0(%arg0: i32, %arg1: i32) -> (i32, i32, i32) {
    %c0_i32 = arith.constant 0 : i32
    %c0_i32_0 = arith.constant 0 : i32
    return %arg0, %arg1, %c0_i32 : i32, i32, i32
  }
  func.func @transform_1(%arg0: i32, %arg1: i32) -> (i32, i32, i32) {
    %c0_i32 = arith.constant 0 : i32
    %c0_i32_0 = arith.constant 0 : i32
    %c0_i32_1 = arith.constant 0 : i32
    return %arg0, %c0_i32, %c0_i32_0 : i32, i32, i32
  }
  func.func @transform_2(%arg0: i32, %arg1: i32) -> (i32, i32, i32) {
    %c0_i32 = arith.constant 0 : i32
    %c0_i32_0 = arith.constant 0 : i32
    return %arg0, %arg1, %c0_i32 : i32, i32, i32
  }
  func.func @transform_3(%arg0: i32, %arg1: i32) -> (i32, i32, i32) {
    %c0_i32 = arith.constant 0 : i32
    %c0_i32_0 = arith.constant 0 : i32
    %c0_i32_1 = arith.constant 0 : i32
    return %arg0, %c0_i32, %c0_i32_0 : i32, i32, i32
  }
  func.func @transform_4(%arg0: i32, %arg1: i32) -> (i32, i32, i32) {
    %c0_i32 = arith.constant 0 : i32
    %c0_i32_0 = arith.constant 0 : i32
    %c0_i32_1 = arith.constant 0 : i32
    return %arg0, %c0_i32, %c0_i32_0 : i32, i32, i32
  }
}

module attributes {stable_mosaic.version = 11 : i64} {
  func.func @_bn_relu_kernel(%arg0: i32, %arg1: memref<64x128xf32, #tpu.memory_space<vmem>>, %arg2: memref<1x128xf32, #tpu.memory_space<vmem>>, %arg3: memref<1x128xf32, #tpu.memory_space<vmem>>, %arg4: memref<64x128xbf16, #tpu.memory_space<vmem>>) attributes {dimension_semantics = [#tpu.dimension_semantics<parallel>], iteration_bounds = array<i64: 1>, scalar_prefetch = 0 : i64, scratch_operands = 0 : i64, tpu.core_type = #tpu.core_type<tc>, window_params = [{transform_indices = @transform_0, window_bounds = array<i64: 64, 128>}, {pipeline_mode = #tpu.pipeline_mode<synchronous>, transform_indices = @transform_1, window_bounds = array<i64: 1, 128>}, {pipeline_mode = #tpu.pipeline_mode<synchronous>, transform_indices = @transform_2, window_bounds = array<i64: 1, 128>}, {transform_indices = @transform_3, window_bounds = array<i64: 64, 128>}]} {
    %c0 = arith.constant 0 : index
    %c0_0 = arith.constant 0 : index
    %0 = vector.load %arg1[%c0, %c0_0] : memref<64x128xf32, #tpu.memory_space<vmem>>, vector<64x128xf32>
    %c0_1 = arith.constant 0 : index
    %c0_2 = arith.constant 0 : index
    %1 = vector.load %arg2[%c0_1, %c0_2] : memref<1x128xf32, #tpu.memory_space<vmem>>, vector<1x128xf32>
    %2 = vector.broadcast %1 : vector<1x128xf32> to vector<64x128xf32>
    %3 = arith.mulf %0, %2 : vector<64x128xf32>
    %c0_3 = arith.constant 0 : index
    %c0_4 = arith.constant 0 : index
    %4 = vector.load %arg3[%c0_3, %c0_4] : memref<1x128xf32, #tpu.memory_space<vmem>>, vector<1x128xf32>
    %5 = vector.broadcast %4 : vector<1x128xf32> to vector<64x128xf32>
    %6 = arith.addf %3, %5 : vector<64x128xf32>
    %cst = arith.constant 0.000000e+00 : f32
    %7 = vector.broadcast %cst : f32 to vector<64x128xf32>
    %8 = arith.maximumf %6, %7 : vector<64x128xf32>
    %9 = arith.truncf %8 : vector<64x128xf32> to vector<64x128xbf16>
    %c0_5 = arith.constant 0 : index
    %c0_6 = arith.constant 0 : index
    %10 = vector.load %arg4[%c0_5, %c0_6] : memref<64x128xbf16, #tpu.memory_space<vmem>>, vector<64x128xbf16>
    tpu.vector_store %arg4[%c0_5, %c0_6], %9 {strides = array<i32>} : memref<64x128xbf16, #tpu.memory_space<vmem>>, vector<64x128xbf16>,
    return
  }
  func.func @transform_0(%arg0: i32) -> (i32, i32) {
    %c0_i32 = arith.constant 0 : i32
    %c0_i32_0 = arith.constant 0 : i32
    return %arg0, %c0_i32 : i32, i32
  }
  func.func @transform_1(%arg0: i32) -> (i32, i32) {
    %c0_i32 = arith.constant 0 : i32
    %c0_i32_0 = arith.constant 0 : i32
    %c0_i32_1 = arith.constant 0 : i32
    return %c0_i32, %c0_i32_0 : i32, i32
  }
  func.func @transform_2(%arg0: i32) -> (i32, i32) {
    %c0_i32 = arith.constant 0 : i32
    %c0_i32_0 = arith.constant 0 : i32
    %c0_i32_1 = arith.constant 0 : i32
    return %c0_i32, %c0_i32_0 : i32, i32
  }
  func.func @transform_3(%arg0: i32) -> (i32, i32) {
    %c0_i32 = arith.constant 0 : i32
    %c0_i32_0 = arith.constant 0 : i32
    return %arg0, %c0_i32 : i32, i32
  }
}

module attributes {stable_mosaic.version = 11 : i64} {
  func.func @_matmul_stats_kernel(%arg0: i32, %arg1: i32, %arg2: memref<1x128x256xbf16, #tpu.memory_space<vmem>>, %arg3: memref<1x256x32xbf16, #tpu.memory_space<vmem>>, %arg4: memref<1x128x32xf32, #tpu.memory_space<vmem>>, %arg5: memref<1x8x32xf32, #tpu.memory_space<vmem>>, %arg6: memref<1x8x32xf32, #tpu.memory_space<vmem>>) attributes {dimension_semantics = [#tpu.dimension_semantics<parallel>, #tpu.dimension_semantics<arbitrary>], iteration_bounds = array<i64: 4, 1>, scalar_prefetch = 0 : i64, scratch_operands = 0 : i64, tpu.core_type = #tpu.core_type<tc>, window_params = [{transform_indices = @transform_0, window_bounds = array<i64: 1, 128, 256>}, {transform_indices = @transform_1, window_bounds = array<i64: 1, 256, 32>}, {transform_indices = @transform_2, window_bounds = array<i64: 1, 128, 32>}, {transform_indices = @transform_3, window_bounds = array<i64: 1, 8, 32>}, {transform_indices = @transform_4, window_bounds = array<i64: 1, 8, 32>}]} {
    %c0_i32 = arith.constant 0 : i32
    %0 = arith.cmpi eq, %arg1, %c0_i32 : i32
    %1 = arith.extui %0 : i1 to i32
    %c0_i32_0 = arith.constant 0 : i32
    %2 = arith.cmpi ne, %1, %c0_i32_0 : i32
    scf.if %2 {
      %cst_23 = arith.constant 0.000000e+00 : f32
      %28 = vector.broadcast %cst_23 : f32 to vector<8x32xf32>
      %c0_24 = arith.constant 0 : index
      %c0_25 = arith.constant 0 : index
      %c0_26 = arith.constant 0 : index
      %29 = vector.load %arg5[%c0_24, %c0_25, %c0_26] : memref<1x8x32xf32, #tpu.memory_space<vmem>>, vector<1x8x32xf32>
      %30 = vector.shape_cast %29 : vector<1x8x32xf32> to vector<8x32xf32>
      %31 = vector.shape_cast %28 : vector<8x32xf32> to vector<1x8x32xf32>
      tpu.vector_store %arg5[%c0_24, %c0_25, %c0_26], %31 {strides = array<i32>} : memref<1x8x32xf32, #tpu.memory_space<vmem>>, vector<1x8x32xf32>,
      %cst_27 = arith.constant 0.000000e+00 : f32
      %32 = vector.broadcast %cst_27 : f32 to vector<8x32xf32>
      %c0_28 = arith.constant 0 : index
      %c0_29 = arith.constant 0 : index
      %c0_30 = arith.constant 0 : index
      %33 = vector.load %arg6[%c0_28, %c0_29, %c0_30] : memref<1x8x32xf32, #tpu.memory_space<vmem>>, vector<1x8x32xf32>
      %34 = vector.shape_cast %33 : vector<1x8x32xf32> to vector<8x32xf32>
      %35 = vector.shape_cast %32 : vector<8x32xf32> to vector<1x8x32xf32>
      tpu.vector_store %arg6[%c0_28, %c0_29, %c0_30], %35 {strides = array<i32>} : memref<1x8x32xf32, #tpu.memory_space<vmem>>, vector<1x8x32xf32>,
    } else {
    }
    %c0 = arith.constant 0 : index
    %c0_1 = arith.constant 0 : index
    %c0_2 = arith.constant 0 : index
    %3 = vector.load %arg2[%c0, %c0_1, %c0_2] : memref<1x128x256xbf16, #tpu.memory_space<vmem>>, vector<1x128x256xbf16>
    %4 = vector.shape_cast %3 : vector<1x128x256xbf16> to vector<128x256xbf16>
    %c0_3 = arith.constant 0 : index
    %c0_4 = arith.constant 0 : index
    %c0_5 = arith.constant 0 : index
    %5 = vector.load %arg3[%c0_3, %c0_4, %c0_5] : memref<1x256x32xbf16, #tpu.memory_space<vmem>>, vector<1x256x32xbf16>
    %6 = vector.shape_cast %5 : vector<1x256x32xbf16> to vector<256x32xbf16>
    %cst = arith.constant dense<0.000000e+00> : vector<128x32xf32>
    %7 = tpu.matmul %4, %6, %cst {dimension_numbers = #tpu.dot_dimension_numbers<[1], [0], [0], [1], [0, 0, 1, 1], [], []>} : vector<128x256xbf16>, vector<256x32xbf16>, vector<128x32xf32> -> vector<128x32xf32>
    %c0_6 = arith.constant 0 : index
    %c0_7 = arith.constant 0 : index
    %c0_8 = arith.constant 0 : index
    %8 = vector.load %arg4[%c0_6, %c0_7, %c0_8] : memref<1x128x32xf32, #tpu.memory_space<vmem>>, vector<1x128x32xf32>
    %9 = vector.shape_cast %8 : vector<1x128x32xf32> to vector<128x32xf32>
    %10 = vector.shape_cast %7 : vector<128x32xf32> to vector<1x128x32xf32>
    tpu.vector_store %arg4[%c0_6, %c0_7, %c0_8], %10 {strides = array<i32>} : memref<1x128x32xf32, #tpu.memory_space<vmem>>, vector<1x128x32xf32>,
    %c0_9 = arith.constant 0 : index
    %c0_10 = arith.constant 0 : index
    %c0_11 = arith.constant 0 : index
    %11 = vector.load %arg5[%c0_9, %c0_10, %c0_11] : memref<1x8x32xf32, #tpu.memory_space<vmem>>, vector<1x8x32xf32>
    %12 = vector.shape_cast %11 : vector<1x8x32xf32> to vector<8x32xf32>
    %13 = vector.shape_cast %7 : vector<128x32xf32> to vector<16x8x32xf32>
    %cst_12 = arith.constant dense<0.000000e+00> : vector<8x32xf32>
    %14 = vector.multi_reduction <add>, %13, %cst_12 [0] : vector<16x8x32xf32> to vector<8x32xf32>
    %15 = arith.addf %12, %14 : vector<8x32xf32>
    %c0_13 = arith.constant 0 : index
    %c0_14 = arith.constant 0 : index
    %c0_15 = arith.constant 0 : index
    %16 = vector.load %arg5[%c0_13, %c0_14, %c0_15] : memref<1x8x32xf32, #tpu.memory_space<vmem>>, vector<1x8x32xf32>
    %17 = vector.shape_cast %16 : vector<1x8x32xf32> to vector<8x32xf32>
    %18 = vector.shape_cast %15 : vector<8x32xf32> to vector<1x8x32xf32>
    tpu.vector_store %arg5[%c0_13, %c0_14, %c0_15], %18 {strides = array<i32>} : memref<1x8x32xf32, #tpu.memory_space<vmem>>, vector<1x8x32xf32>,
    %c0_16 = arith.constant 0 : index
    %c0_17 = arith.constant 0 : index
    %c0_18 = arith.constant 0 : index
    %19 = vector.load %arg6[%c0_16, %c0_17, %c0_18] : memref<1x8x32xf32, #tpu.memory_space<vmem>>, vector<1x8x32xf32>
    %20 = vector.shape_cast %19 : vector<1x8x32xf32> to vector<8x32xf32>
    %21 = arith.mulf %7, %7 : vector<128x32xf32>
    %22 = vector.shape_cast %21 : vector<128x32xf32> to vector<16x8x32xf32>
    %cst_19 = arith.constant dense<0.000000e+00> : vector<8x32xf32>
    %23 = vector.multi_reduction <add>, %22, %cst_19 [0] : vector<16x8x32xf32> to vector<8x32xf32>
    %24 = arith.addf %20, %23 : vector<8x32xf32>
    %c0_20 = arith.constant 0 : index
    %c0_21 = arith.constant 0 : index
    %c0_22 = arith.constant 0 : index
    %25 = vector.load %arg6[%c0_20, %c0_21, %c0_22] : memref<1x8x32xf32, #tpu.memory_space<vmem>>, vector<1x8x32xf32>
    %26 = vector.shape_cast %25 : vector<1x8x32xf32> to vector<8x32xf32>
    %27 = vector.shape_cast %24 : vector<8x32xf32> to vector<1x8x32xf32>
    tpu.vector_store %arg6[%c0_20, %c0_21, %c0_22], %27 {strides = array<i32>} : memref<1x8x32xf32, #tpu.memory_space<vmem>>, vector<1x8x32xf32>,
    return
  }
  func.func @transform_0(%arg0: i32, %arg1: i32) -> (i32, i32, i32) {
    %c0_i32 = arith.constant 0 : i32
    %c0_i32_0 = arith.constant 0 : i32
    return %arg0, %arg1, %c0_i32 : i32, i32, i32
  }
  func.func @transform_1(%arg0: i32, %arg1: i32) -> (i32, i32, i32) {
    %c0_i32 = arith.constant 0 : i32
    %c0_i32_0 = arith.constant 0 : i32
    %c0_i32_1 = arith.constant 0 : i32
    return %arg0, %c0_i32, %c0_i32_0 : i32, i32, i32
  }
  func.func @transform_2(%arg0: i32, %arg1: i32) -> (i32, i32, i32) {
    %c0_i32 = arith.constant 0 : i32
    %c0_i32_0 = arith.constant 0 : i32
    return %arg0, %arg1, %c0_i32 : i32, i32, i32
  }
  func.func @transform_3(%arg0: i32, %arg1: i32) -> (i32, i32, i32) {
    %c0_i32 = arith.constant 0 : i32
    %c0_i32_0 = arith.constant 0 : i32
    %c0_i32_1 = arith.constant 0 : i32
    return %arg0, %c0_i32, %c0_i32_0 : i32, i32, i32
  }
  func.func @transform_4(%arg0: i32, %arg1: i32) -> (i32, i32, i32) {
    %c0_i32 = arith.constant 0 : i32
    %c0_i32_0 = arith.constant 0 : i32
    %c0_i32_1 = arith.constant 0 : i32
    return %arg0, %c0_i32, %c0_i32_0 : i32, i32, i32
  }
}

module attributes {stable_mosaic.version = 11 : i64} {
  func.func @_bn_relu_kernel(%arg0: i32, %arg1: memref<128x128xf32, #tpu.memory_space<vmem>>, %arg2: memref<1x128xf32, #tpu.memory_space<vmem>>, %arg3: memref<1x128xf32, #tpu.memory_space<vmem>>, %arg4: memref<128x128xbf16, #tpu.memory_space<vmem>>) attributes {dimension_semantics = [#tpu.dimension_semantics<parallel>], iteration_bounds = array<i64: 1>, scalar_prefetch = 0 : i64, scratch_operands = 0 : i64, tpu.core_type = #tpu.core_type<tc>, window_params = [{transform_indices = @transform_0, window_bounds = array<i64: 128, 128>}, {pipeline_mode = #tpu.pipeline_mode<synchronous>, transform_indices = @transform_1, window_bounds = array<i64: 1, 128>}, {pipeline_mode = #tpu.pipeline_mode<synchronous>, transform_indices = @transform_2, window_bounds = array<i64: 1, 128>}, {transform_indices = @transform_3, window_bounds = array<i64: 128, 128>}]} {
    %c0 = arith.constant 0 : index
    %c0_0 = arith.constant 0 : index
    %0 = vector.load %arg1[%c0, %c0_0] : memref<128x128xf32, #tpu.memory_space<vmem>>, vector<128x128xf32>
    %c0_1 = arith.constant 0 : index
    %c0_2 = arith.constant 0 : index
    %1 = vector.load %arg2[%c0_1, %c0_2] : memref<1x128xf32, #tpu.memory_space<vmem>>, vector<1x128xf32>
    %2 = vector.broadcast %1 : vector<1x128xf32> to vector<128x128xf32>
    %3 = arith.mulf %0, %2 : vector<128x128xf32>
    %c0_3 = arith.constant 0 : index
    %c0_4 = arith.constant 0 : index
    %4 = vector.load %arg3[%c0_3, %c0_4] : memref<1x128xf32, #tpu.memory_space<vmem>>, vector<1x128xf32>
    %5 = vector.broadcast %4 : vector<1x128xf32> to vector<128x128xf32>
    %6 = arith.addf %3, %5 : vector<128x128xf32>
    %cst = arith.constant 0.000000e+00 : f32
    %7 = vector.broadcast %cst : f32 to vector<128x128xf32>
    %8 = arith.maximumf %6, %7 : vector<128x128xf32>
    %9 = arith.truncf %8 : vector<128x128xf32> to vector<128x128xbf16>
    %c0_5 = arith.constant 0 : index
    %c0_6 = arith.constant 0 : index
    %10 = vector.load %arg4[%c0_5, %c0_6] : memref<128x128xbf16, #tpu.memory_space<vmem>>, vector<128x128xbf16>
    tpu.vector_store %arg4[%c0_5, %c0_6], %9 {strides = array<i32>} : memref<128x128xbf16, #tpu.memory_space<vmem>>, vector<128x128xbf16>,
    return
  }
  func.func @transform_0(%arg0: i32) -> (i32, i32) {
    %c0_i32 = arith.constant 0 : i32
    %c0_i32_0 = arith.constant 0 : i32
    return %arg0, %c0_i32 : i32, i32
  }
  func.func @transform_1(%arg0: i32) -> (i32, i32) {
    %c0_i32 = arith.constant 0 : i32
    %c0_i32_0 = arith.constant 0 : i32
    %c0_i32_1 = arith.constant 0 : i32
    return %c0_i32, %c0_i32_0 : i32, i32
  }
  func.func @transform_2(%arg0: i32) -> (i32, i32) {
    %c0_i32 = arith.constant 0 : i32
    %c0_i32_0 = arith.constant 0 : i32
    %c0_i32_1 = arith.constant 0 : i32
    return %c0_i32, %c0_i32_0 : i32, i32
  }
  func.func @transform_3(%arg0: i32) -> (i32, i32) {
    %c0_i32 = arith.constant 0 : i32
    %c0_i32_0 = arith.constant 0 : i32
    return %arg0, %c0_i32 : i32, i32
  }
}

module attributes {stable_mosaic.version = 11 : i64} {
  func.func @_matmul_stats_kernel(%arg0: i32, %arg1: i32, %arg2: memref<1x512x128xbf16, #tpu.memory_space<vmem>>, %arg3: memref<1x128x16xbf16, #tpu.memory_space<vmem>>, %arg4: memref<1x512x16xf32, #tpu.memory_space<vmem>>, %arg5: memref<1x8x16xf32, #tpu.memory_space<vmem>>, %arg6: memref<1x8x16xf32, #tpu.memory_space<vmem>>) attributes {dimension_semantics = [#tpu.dimension_semantics<parallel>, #tpu.dimension_semantics<arbitrary>], iteration_bounds = array<i64: 4, 1>, scalar_prefetch = 0 : i64, scratch_operands = 0 : i64, tpu.core_type = #tpu.core_type<tc>, window_params = [{transform_indices = @transform_0, window_bounds = array<i64: 1, 512, 128>}, {transform_indices = @transform_1, window_bounds = array<i64: 1, 128, 16>}, {transform_indices = @transform_2, window_bounds = array<i64: 1, 512, 16>}, {transform_indices = @transform_3, window_bounds = array<i64: 1, 8, 16>}, {transform_indices = @transform_4, window_bounds = array<i64: 1, 8, 16>}]} {
    %c0_i32 = arith.constant 0 : i32
    %0 = arith.cmpi eq, %arg1, %c0_i32 : i32
    %1 = arith.extui %0 : i1 to i32
    %c0_i32_0 = arith.constant 0 : i32
    %2 = arith.cmpi ne, %1, %c0_i32_0 : i32
    scf.if %2 {
      %cst_23 = arith.constant 0.000000e+00 : f32
      %28 = vector.broadcast %cst_23 : f32 to vector<8x16xf32>
      %c0_24 = arith.constant 0 : index
      %c0_25 = arith.constant 0 : index
      %c0_26 = arith.constant 0 : index
      %29 = vector.load %arg5[%c0_24, %c0_25, %c0_26] : memref<1x8x16xf32, #tpu.memory_space<vmem>>, vector<1x8x16xf32>
      %30 = vector.shape_cast %29 : vector<1x8x16xf32> to vector<8x16xf32>
      %31 = vector.shape_cast %28 : vector<8x16xf32> to vector<1x8x16xf32>
      tpu.vector_store %arg5[%c0_24, %c0_25, %c0_26], %31 {strides = array<i32>} : memref<1x8x16xf32, #tpu.memory_space<vmem>>, vector<1x8x16xf32>,
      %cst_27 = arith.constant 0.000000e+00 : f32
      %32 = vector.broadcast %cst_27 : f32 to vector<8x16xf32>
      %c0_28 = arith.constant 0 : index
      %c0_29 = arith.constant 0 : index
      %c0_30 = arith.constant 0 : index
      %33 = vector.load %arg6[%c0_28, %c0_29, %c0_30] : memref<1x8x16xf32, #tpu.memory_space<vmem>>, vector<1x8x16xf32>
      %34 = vector.shape_cast %33 : vector<1x8x16xf32> to vector<8x16xf32>
      %35 = vector.shape_cast %32 : vector<8x16xf32> to vector<1x8x16xf32>
      tpu.vector_store %arg6[%c0_28, %c0_29, %c0_30], %35 {strides = array<i32>} : memref<1x8x16xf32, #tpu.memory_space<vmem>>, vector<1x8x16xf32>,
    } else {
    }
    %c0 = arith.constant 0 : index
    %c0_1 = arith.constant 0 : index
    %c0_2 = arith.constant 0 : index
    %3 = vector.load %arg2[%c0, %c0_1, %c0_2] : memref<1x512x128xbf16, #tpu.memory_space<vmem>>, vector<1x512x128xbf16>
    %4 = vector.shape_cast %3 : vector<1x512x128xbf16> to vector<512x128xbf16>
    %c0_3 = arith.constant 0 : index
    %c0_4 = arith.constant 0 : index
    %c0_5 = arith.constant 0 : index
    %5 = vector.load %arg3[%c0_3, %c0_4, %c0_5] : memref<1x128x16xbf16, #tpu.memory_space<vmem>>, vector<1x128x16xbf16>
    %6 = vector.shape_cast %5 : vector<1x128x16xbf16> to vector<128x16xbf16>
    %cst = arith.constant dense<0.000000e+00> : vector<512x16xf32>
    %7 = tpu.matmul %4, %6, %cst {dimension_numbers = #tpu.dot_dimension_numbers<[1], [0], [0], [1], [0, 0, 1, 1], [], []>} : vector<512x128xbf16>, vector<128x16xbf16>, vector<512x16xf32> -> vector<512x16xf32>
    %c0_6 = arith.constant 0 : index
    %c0_7 = arith.constant 0 : index
    %c0_8 = arith.constant 0 : index
    %8 = vector.load %arg4[%c0_6, %c0_7, %c0_8] : memref<1x512x16xf32, #tpu.memory_space<vmem>>, vector<1x512x16xf32>
    %9 = vector.shape_cast %8 : vector<1x512x16xf32> to vector<512x16xf32>
    %10 = vector.shape_cast %7 : vector<512x16xf32> to vector<1x512x16xf32>
    tpu.vector_store %arg4[%c0_6, %c0_7, %c0_8], %10 {strides = array<i32>} : memref<1x512x16xf32, #tpu.memory_space<vmem>>, vector<1x512x16xf32>,
    %c0_9 = arith.constant 0 : index
    %c0_10 = arith.constant 0 : index
    %c0_11 = arith.constant 0 : index
    %11 = vector.load %arg5[%c0_9, %c0_10, %c0_11] : memref<1x8x16xf32, #tpu.memory_space<vmem>>, vector<1x8x16xf32>
    %12 = vector.shape_cast %11 : vector<1x8x16xf32> to vector<8x16xf32>
    %13 = vector.shape_cast %7 : vector<512x16xf32> to vector<64x8x16xf32>
    %cst_12 = arith.constant dense<0.000000e+00> : vector<8x16xf32>
    %14 = vector.multi_reduction <add>, %13, %cst_12 [0] : vector<64x8x16xf32> to vector<8x16xf32>
    %15 = arith.addf %12, %14 : vector<8x16xf32>
    %c0_13 = arith.constant 0 : index
    %c0_14 = arith.constant 0 : index
    %c0_15 = arith.constant 0 : index
    %16 = vector.load %arg5[%c0_13, %c0_14, %c0_15] : memref<1x8x16xf32, #tpu.memory_space<vmem>>, vector<1x8x16xf32>
    %17 = vector.shape_cast %16 : vector<1x8x16xf32> to vector<8x16xf32>
    %18 = vector.shape_cast %15 : vector<8x16xf32> to vector<1x8x16xf32>
    tpu.vector_store %arg5[%c0_13, %c0_14, %c0_15], %18 {strides = array<i32>} : memref<1x8x16xf32, #tpu.memory_space<vmem>>, vector<1x8x16xf32>,
    %c0_16 = arith.constant 0 : index
    %c0_17 = arith.constant 0 : index
    %c0_18 = arith.constant 0 : index
    %19 = vector.load %arg6[%c0_16, %c0_17, %c0_18] : memref<1x8x16xf32, #tpu.memory_space<vmem>>, vector<1x8x16xf32>
    %20 = vector.shape_cast %19 : vector<1x8x16xf32> to vector<8x16xf32>
    %21 = arith.mulf %7, %7 : vector<512x16xf32>
    %22 = vector.shape_cast %21 : vector<512x16xf32> to vector<64x8x16xf32>
    %cst_19 = arith.constant dense<0.000000e+00> : vector<8x16xf32>
    %23 = vector.multi_reduction <add>, %22, %cst_19 [0] : vector<64x8x16xf32> to vector<8x16xf32>
    %24 = arith.addf %20, %23 : vector<8x16xf32>
    %c0_20 = arith.constant 0 : index
    %c0_21 = arith.constant 0 : index
    %c0_22 = arith.constant 0 : index
    %25 = vector.load %arg6[%c0_20, %c0_21, %c0_22] : memref<1x8x16xf32, #tpu.memory_space<vmem>>, vector<1x8x16xf32>
    %26 = vector.shape_cast %25 : vector<1x8x16xf32> to vector<8x16xf32>
    %27 = vector.shape_cast %24 : vector<8x16xf32> to vector<1x8x16xf32>
    tpu.vector_store %arg6[%c0_20, %c0_21, %c0_22], %27 {strides = array<i32>} : memref<1x8x16xf32, #tpu.memory_space<vmem>>, vector<1x8x16xf32>,
    return
  }
  func.func @transform_0(%arg0: i32, %arg1: i32) -> (i32, i32, i32) {
    %c0_i32 = arith.constant 0 : i32
    %c0_i32_0 = arith.constant 0 : i32
    return %arg0, %arg1, %c0_i32 : i32, i32, i32
  }
  func.func @transform_1(%arg0: i32, %arg1: i32) -> (i32, i32, i32) {
    %c0_i32 = arith.constant 0 : i32
    %c0_i32_0 = arith.constant 0 : i32
    %c0_i32_1 = arith.constant 0 : i32
    return %arg0, %c0_i32, %c0_i32_0 : i32, i32, i32
  }
  func.func @transform_2(%arg0: i32, %arg1: i32) -> (i32, i32, i32) {
    %c0_i32 = arith.constant 0 : i32
    %c0_i32_0 = arith.constant 0 : i32
    return %arg0, %arg1, %c0_i32 : i32, i32, i32
  }
  func.func @transform_3(%arg0: i32, %arg1: i32) -> (i32, i32, i32) {
    %c0_i32 = arith.constant 0 : i32
    %c0_i32_0 = arith.constant 0 : i32
    %c0_i32_1 = arith.constant 0 : i32
    return %arg0, %c0_i32, %c0_i32_0 : i32, i32, i32
  }
  func.func @transform_4(%arg0: i32, %arg1: i32) -> (i32, i32, i32) {
    %c0_i32 = arith.constant 0 : i32
    %c0_i32_0 = arith.constant 0 : i32
    %c0_i32_1 = arith.constant 0 : i32
    return %arg0, %c0_i32, %c0_i32_0 : i32, i32, i32
  }
}

module attributes {stable_mosaic.version = 11 : i64} {
  func.func @_bn_relu_kernel(%arg0: i32, %arg1: memref<256x128xf32, #tpu.memory_space<vmem>>, %arg2: memref<1x128xf32, #tpu.memory_space<vmem>>, %arg3: memref<1x128xf32, #tpu.memory_space<vmem>>, %arg4: memref<256x128xbf16, #tpu.memory_space<vmem>>) attributes {dimension_semantics = [#tpu.dimension_semantics<parallel>], iteration_bounds = array<i64: 1>, scalar_prefetch = 0 : i64, scratch_operands = 0 : i64, tpu.core_type = #tpu.core_type<tc>, window_params = [{transform_indices = @transform_0, window_bounds = array<i64: 256, 128>}, {pipeline_mode = #tpu.pipeline_mode<synchronous>, transform_indices = @transform_1, window_bounds = array<i64: 1, 128>}, {pipeline_mode = #tpu.pipeline_mode<synchronous>, transform_indices = @transform_2, window_bounds = array<i64: 1, 128>}, {transform_indices = @transform_3, window_bounds = array<i64: 256, 128>}]} {
    %c0 = arith.constant 0 : index
    %c0_0 = arith.constant 0 : index
    %0 = vector.load %arg1[%c0, %c0_0] : memref<256x128xf32, #tpu.memory_space<vmem>>, vector<256x128xf32>
    %c0_1 = arith.constant 0 : index
    %c0_2 = arith.constant 0 : index
    %1 = vector.load %arg2[%c0_1, %c0_2] : memref<1x128xf32, #tpu.memory_space<vmem>>, vector<1x128xf32>
    %2 = vector.broadcast %1 : vector<1x128xf32> to vector<256x128xf32>
    %3 = arith.mulf %0, %2 : vector<256x128xf32>
    %c0_3 = arith.constant 0 : index
    %c0_4 = arith.constant 0 : index
    %4 = vector.load %arg3[%c0_3, %c0_4] : memref<1x128xf32, #tpu.memory_space<vmem>>, vector<1x128xf32>
    %5 = vector.broadcast %4 : vector<1x128xf32> to vector<256x128xf32>
    %6 = arith.addf %3, %5 : vector<256x128xf32>
    %cst = arith.constant 0.000000e+00 : f32
    %7 = vector.broadcast %cst : f32 to vector<256x128xf32>
    %8 = arith.maximumf %6, %7 : vector<256x128xf32>
    %9 = arith.truncf %8 : vector<256x128xf32> to vector<256x128xbf16>
    %c0_5 = arith.constant 0 : index
    %c0_6 = arith.constant 0 : index
    %10 = vector.load %arg4[%c0_5, %c0_6] : memref<256x128xbf16, #tpu.memory_space<vmem>>, vector<256x128xbf16>
    tpu.vector_store %arg4[%c0_5, %c0_6], %9 {strides = array<i32>} : memref<256x128xbf16, #tpu.memory_space<vmem>>, vector<256x128xbf16>,
    return
  }
  func.func @transform_0(%arg0: i32) -> (i32, i32) {
    %c0_i32 = arith.constant 0 : i32
    %c0_i32_0 = arith.constant 0 : i32
    return %arg0, %c0_i32 : i32, i32
  }
  func.func @transform_1(%arg0: i32) -> (i32, i32) {
    %c0_i32 = arith.constant 0 : i32
    %c0_i32_0 = arith.constant 0 : i32
    %c0_i32_1 = arith.constant 0 : i32
    return %c0_i32, %c0_i32_0 : i32, i32
  }
  func.func @transform_2(%arg0: i32) -> (i32, i32) {
    %c0_i32 = arith.constant 0 : i32
    %c0_i32_0 = arith.constant 0 : i32
    %c0_i32_1 = arith.constant 0 : i32
    return %c0_i32, %c0_i32_0 : i32, i32
  }
  func.func @transform_3(%arg0: i32) -> (i32, i32) {
    %c0_i32 = arith.constant 0 : i32
    %c0_i32_0 = arith.constant 0 : i32
    return %arg0, %c0_i32 : i32, i32
  }
}

module attributes {stable_mosaic.version = 11 : i64} {
  func.func @_matmul_tanh_kernel(%arg0: i32, %arg1: i32, %arg2: memref<1x3x64xbf16, #tpu.memory_space<vmem>>, %arg3: memref<1x64x512xbf16, #tpu.memory_space<vmem>>, %arg4: memref<1x3x512xf32, #tpu.memory_space<vmem>>) attributes {dimension_semantics = [#tpu.dimension_semantics<parallel>, #tpu.dimension_semantics<parallel>], iteration_bounds = array<i64: 4, 4>, scalar_prefetch = 0 : i64, scratch_operands = 0 : i64, tpu.core_type = #tpu.core_type<tc>, window_params = [{transform_indices = @transform_0, window_bounds = array<i64: 1, 3, 64>}, {transform_indices = @transform_1, window_bounds = array<i64: 1, 64, 512>}, {transform_indices = @transform_2, window_bounds = array<i64: 1, 3, 512>}]} {
    %c0 = arith.constant 0 : index
    %c0_0 = arith.constant 0 : index
    %c0_1 = arith.constant 0 : index
    %0 = vector.load %arg2[%c0, %c0_0, %c0_1] : memref<1x3x64xbf16, #tpu.memory_space<vmem>>, vector<1x3x64xbf16>
    %1 = vector.shape_cast %0 : vector<1x3x64xbf16> to vector<3x64xbf16>
    %c0_2 = arith.constant 0 : index
    %c0_3 = arith.constant 0 : index
    %c0_4 = arith.constant 0 : index
    %2 = vector.load %arg3[%c0_2, %c0_3, %c0_4] : memref<1x64x512xbf16, #tpu.memory_space<vmem>>, vector<1x64x512xbf16>
    %3 = vector.shape_cast %2 : vector<1x64x512xbf16> to vector<64x512xbf16>
    %cst = arith.constant dense<0.000000e+00> : vector<3x512xf32>
    %4 = tpu.matmul %1, %3, %cst {dimension_numbers = #tpu.dot_dimension_numbers<[1], [0], [0], [1], [0, 0, 1, 1], [], []>} : vector<3x64xbf16>, vector<64x512xbf16>, vector<3x512xf32> -> vector<3x512xf32>
    %5 = math.tanh %4 : vector<3x512xf32>
    %c0_5 = arith.constant 0 : index
    %c0_6 = arith.constant 0 : index
    %c0_7 = arith.constant 0 : index
    %6 = vector.load %arg4[%c0_5, %c0_6, %c0_7] : memref<1x3x512xf32, #tpu.memory_space<vmem>>, vector<1x3x512xf32>
    %7 = vector.shape_cast %6 : vector<1x3x512xf32> to vector<3x512xf32>
    %8 = vector.shape_cast %5 : vector<3x512xf32> to vector<1x3x512xf32>
    tpu.vector_store %arg4[%c0_5, %c0_6, %c0_7], %8 {strides = array<i32>} : memref<1x3x512xf32, #tpu.memory_space<vmem>>, vector<1x3x512xf32>,
    return
  }
  func.func @transform_0(%arg0: i32, %arg1: i32) -> (i32, i32, i32) {
    %c0_i32 = arith.constant 0 : i32
    %c0_i32_0 = arith.constant 0 : i32
    %c0_i32_1 = arith.constant 0 : i32
    return %arg0, %c0_i32, %c0_i32_0 : i32, i32, i32
  }
  func.func @transform_1(%arg0: i32, %arg1: i32) -> (i32, i32, i32) {
    %c0_i32 = arith.constant 0 : i32
    %c0_i32_0 = arith.constant 0 : i32
    return %arg0, %c0_i32, %arg1 : i32, i32, i32
  }
  func.func @transform_2(%arg0: i32, %arg1: i32) -> (i32, i32, i32) {
    %c0_i32 = arith.constant 0 : i32
    %c0_i32_0 = arith.constant 0 : i32
    return %arg0, %c0_i32, %arg1 : i32, i32, i32
  }
}

</mosaic_0001>

<bundles_post_ra>
// kernel: tile.48
= control target key start
LH: loop header
LB: loop body
LE: loop exit
PB: predicated region body
PF: predicated region fallthrough
CT: control target
= control target key end

     0   :  { %s28_s0 = inlined_call_operand.vmem [shape: f32[128], index: 0, kind: input, shape index: {}]   ;;  %s29_s1 = inlined_call_operand.vmem [shape: f32[16,128], index: 1, kind: output, shape index: {}]  }
   0x1   :  { %v4_v0 = vld [vmem:[%s28_s0] ss:$0 sm:$0xff] }
   0x2   :  { %5 = vst [vmem:[%s29_s1] sm:$0xff] %v4_v0  ;;  %8 = vst [vmem:[%s29_s1 + $0x8] sm:$0xff] %v4_v0 }

// kernel: decoder64x64_forward.10
= control target key start
LH: loop header
LB: loop body
LE: loop exit
PB: predicated region body
PF: predicated region fallthrough
CT: control target
= control target key end

     0   :  { %v34_v0 = vlaneseq  ;;  %s520_s1 = inlined_call_operand.vmem [shape: f32[1,2048], index: 1, kind: input, shape index: {}]   ;;  %s521_s2 = inlined_call_operand.vmem [shape: f32[1,2048], index: 2, kind: input, shape index: {}]   ;;  %s522_s0 = inlined_call_operand.vmem [shape: f32[8,2048], index: 0, kind: input, shape index: {}]   ;;  %s523_s3 = inlined_call_operand.vmem [shape: bf16[8,2048], index: 3, kind: output, shape index: {}]  }
   0x1   :  { %v30_v2 = vld [vmem:[%s520_s1] sm:$0xff]  ;;  %v15_v9 = vld [vmem:[%s522_s0 + $0x8] sm:$0xff]  ;;  %v16_v18 = vld [vmem:[%s522_s0 + $0x10] sm:$0xff] }
   0x2   :  { %v35_v1 = vshrl.u32 %v34_v0, 7  ;;  %v364_v3 = vld [vmem:[%s521_s2] sm:$0xff]  ;;  %v17_v19 = vld [vmem:[%s522_s0 + $0x18] sm:$0xff]  ;;  %v19_v25 = vld [vmem:[%s522_s0 + $0x28] sm:$0xff] }
   0x3   :  { %v14_v8 = vld [vmem:[%s522_s0] sm:$0xff]  ;;  %v20_v38 = vld [vmem:[%s522_s0 + $0x30] sm:$0xff]  ;;  %v21_v39 = vld [vmem:[%s522_s0 + $0x38] sm:$0xff] }
   0x4   :  { %v366_v4 = vsub.s32 0, %v35_v1  ;;  %v368_v5 = vsub.s32 1, %v35_v1  ;;  %v370_v6 = vsub.s32 2, %v35_v1  ;;  %v372_v7 = vsub.s32 3, %v35_v1  ;;  %v18_v24 = vld [vmem:[%s522_s0 + $0x20] sm:$0xff]  ;;  %v429_v48 = vld [vmem:[%s520_s1 + $0x8] sm:$0xff] }
   0x5   :  { %v380_v10 = vsub.s32 4, %v35_v1  ;;  %v382_v11 = vsub.s32 5, %v35_v1  ;;  %v384_v12 = vsub.s32 6, %v35_v1  ;;  %v386_v13 = vsub.s32 7, %v35_v1  ;;  %v434_v53 = vld [vmem:[%s521_s2 + $0x8] sm:$0xff]  ;;  %v22_v58 = vld [vmem:[%s522_s0 + $0x40] sm:$0xff] }
   0x6   :  { %v37_v14 = vrot.slane %v30_v2, %v366_v4  ;;  %v41_v15 = vrot.slane %v30_v2, %v368_v5  ;;  %v137_v16 = vrot.slane %v364_v3, %v366_v4  ;;  %v141_v17 = vrot.slane %v364_v3, %v368_v5  ;;  %v23_v59 = vld [vmem:[%s522_s0 + $0x48] sm:$0xff] }
   0x7   :  { %v45_v20 = vrot.slane %v30_v2, %v370_v6  ;;  %v49_v21 = vrot.slane %v30_v2, %v372_v7  ;;  %v145_v22 = vrot.slane %v364_v3, %v370_v6  ;;  %v149_v23 = vrot.slane %v364_v3, %v372_v7 }
   0x8   :  { %v114_v26 = vmul.f32 %v37_v14, %v14_v8  ;;  %v115_v27 = vmul.f32 %v41_v15, %v15_v9  ;;  %v53_v28 = vrot.slane %v30_v2, %v380_v10  ;;  %v57_v29 = vrot.slane %v30_v2, %v382_v11 }
   0x9   :  { %v116_v30 = vmul.f32 %v45_v20, %v16_v18  ;;  %v117_v31 = vmul.f32 %v49_v21, %v17_v19  ;;  %v153_v32 = vrot.slane %v364_v3, %v380_v10  ;;  %v157_v33 = vrot.slane %v364_v3, %v382_v11 }
   0xa   :  { %v214_v34 = vadd.f32 %v137_v16, %v114_v26  ;;  %v215_v35 = vadd.f32 %v141_v17, %v115_v27  ;;  %v118_v36 = vmul.f32 %v53_v28, %v18_v24  ;;  %v119_v37 = vmul.f32 %v57_v29, %v19_v25  ;;  %v25_v16 = vld [vmem:[%s522_s0 + $0x58] sm:$0xff]  ;;  %v26_v24 = vld [vmem:[%s522_s0 + $0x60] sm:$0xff]  ;;  %v27_v25 = vld [vmem:[%s522_s0 + $0x68] sm:$0xff] }
   0xb   :  { %v216_v40 = vadd.f32 %v145_v22, %v116_v30  ;;  %v217_v41 = vadd.f32 %v149_v23, %v117_v31  ;;  %v61_v42 = vrot.slane %v30_v2, %v384_v12  ;;  %v65_v43 = vrot.slane %v30_v2, %v386_v13 }
   0xc   :  { %v230_v44 = vmax.f32 %v214_v34, 0.0  ;;  %v231_v45 = vmax.f32 %v215_v35, 0.0  ;;  %v218_v46 = vadd.f32 %v153_v32, %v118_v36  ;;  %v219_v47 = vadd.f32 %v157_v33, %v119_v37  ;;  %v28_v36 = vld [vmem:[%s522_s0 + $0x70] sm:$0xff]  ;;  %v29_v37 = vld [vmem:[%s522_s0 + $0x78] sm:$0xff] }
   0xd   :  { %v232_v49 = vmax.f32 %v216_v40, 0.0  ;;  %v233_v50 = vmax.f32 %v217_v41, 0.0  ;;  %v120_v51 = vmul.f32 %v61_v42, %v20_v38  ;;  %v121_v52 = vmul.f32 %v65_v43, %v21_v39 }
   0xe   :  { %v330_v54 = vpack.c.bf16 %v231_v45, %v230_v44  ;;  %v234_v55 = vmax.f32 %v218_v46, 0.0  ;;  %v235_v56 = vmax.f32 %v219_v47, 0.0  ;;  %v161_v57 = vrot.slane %v364_v3, %v384_v12 }
   0xf   :  { %v331_v60 = vpack.c.bf16 %v233_v50, %v232_v49  ;;  %v165_v61 = vrot.slane %v364_v3, %v386_v13  ;;  %v69_v62 = vrot.slane %v429_v48, %v366_v4  ;;  %v73_v63 = vrot.slane %v429_v48, %v368_v5  ;;  %v24_v3 = vld [vmem:[%s522_s0 + $0x50] sm:$0xff] }
  0x10   :  { %310 = vst [vmem:[%s523_s3] sm:$0xff] %v330_v54  ;;  %v332_v0 = vpack.c.bf16 %v235_v56, %v234_v55  ;;  %v220_v1 = vadd.f32 %v161_v57, %v120_v51  ;;  %v169_v2 = vrot.slane %v434_v53, %v366_v4  ;;  %v173_v8 = vrot.slane %v434_v53, %v368_v5 }
  0x11   :  { %311 = vst [vmem:[%s523_s3 + $0x8] sm:$0xff] %v331_v60  ;;  %v221_v9 = vadd.f32 %v165_v61, %v121_v52  ;;  %v122_v14 = vmul.f32 %v69_v62, %v22_v58  ;;  %v123_v15 = vmul.f32 %v73_v63, %v23_v59  ;;  %v77_v4 = vrot.slane %v429_v48, %v370_v6 }
  0x12   :  { %312 = vst [vmem:[%s523_s3 + $0x10] sm:$0xff] %v332_v0  ;;  %v236_v5 = vmax.f32 %v220_v1, 0.0  ;;  %v81_v17 = vrot.slane %v429_v48, %v372_v7  ;;  %v177_v18 = vrot.slane %v434_v53, %v370_v6  ;;  %v181_v19 = vrot.slane %v434_v53, %v372_v7 }
  0x13   :  { %v237_v20 = vmax.f32 %v221_v9, 0.0  ;;  %v222_v21 = vadd.f32 %v169_v2, %v122_v14  ;;  %v223_v22 = vadd.f32 %v173_v8, %v123_v15  ;;  %v124_v23 = vmul.f32 %v77_v4, %v24_v3 }
  0x14   :  { %v125_v26 = vmul.f32 %v81_v17, %v25_v16  ;;  %v85_v27 = vrot.slane %v429_v48, %v380_v10  ;;  %v89_v6 = vrot.slane %v429_v48, %v382_v11  ;;  %v185_v7 = vrot.slane %v434_v53, %v380_v10 }
  0x15   :  { %v333_v28 = vpack.c.bf16 %v237_v20, %v236_v5  ;;  %v238_v29 = vmax.f32 %v222_v21, 0.0  ;;  %v239_v30 = vmax.f32 %v223_v22, 0.0  ;;  %v224_v31 = vadd.f32 %v177_v18, %v124_v23 }
  0x16   :  { %v225_v32 = vadd.f32 %v181_v19, %v125_v26  ;;  %v126_v33 = vmul.f32 %v85_v27, %v26_v24  ;;  %v127_v34 = vmul.f32 %v89_v6, %v27_v25  ;;  %v189_v35 = vrot.slane %v434_v53, %v382_v11 }
  0x17   :  { %313 = vst [vmem:[%s523_s3 + $0x18] sm:$0xff] %v333_v28  ;;  %v334_v10 = vpack.c.bf16 %v239_v30, %v238_v29  ;;  %v240_v38 = vmax.f32 %v224_v31, 0.0  ;;  %v93_v39 = vrot.slane %v429_v48, %v384_v12  ;;  %v97_v11 = vrot.slane %v429_v48, %v386_v13 }
  0x18   :  { %v241_v40 = vmax.f32 %v225_v32, 0.0  ;;  %v226_v41 = vadd.f32 %v185_v7, %v126_v33  ;;  %v227_v42 = vadd.f32 %v189_v35, %v127_v34  ;;  %v193_v43 = vrot.slane %v434_v53, %v384_v12 }
  0x19   :  { %314 = vst [vmem:[%s523_s3 + $0x20] sm:$0xff] %v334_v10  ;;  %v128_v44 = vmul.f32 %v93_v39, %v28_v36  ;;  %v129_v45 = vmul.f32 %v97_v11, %v29_v37  ;;  %v197_v46 = vrot.slane %v434_v53, %v386_v13 }
  0x1a   :  { %v335_v47 = vpack.c.bf16 %v241_v40, %v240_v38  ;;  %v242_v49 = vmax.f32 %v226_v41, 0.0  ;;  %v243_v50 = vmax.f32 %v227_v42, 0.0 }
  0x1b   :  { %v228_v51 = vadd.f32 %v193_v43, %v128_v44  ;;  %v229_v48 = vadd.f32 %v197_v46, %v129_v45 }
  0x1c   :  { %315 = vst [vmem:[%s523_s3 + $0x28] sm:$0xff] %v335_v47  ;;  %v336_v52 = vpack.c.bf16 %v243_v50, %v242_v49 }
  0x1d   :  { %v244_v12 = vmax.f32 %v228_v51, 0.0  ;;  %v245_v54 = vmax.f32 %v229_v48, 0.0 }
  0x1e   :  { %316 = vst [vmem:[%s523_s3 + $0x30] sm:$0xff] %v336_v52 }
  0x1f   :  { %v337_v55 = vpack.c.bf16 %v245_v54, %v244_v12 }
  0x21   :  { %317 = vst [vmem:[%s523_s3 + $0x38] sm:$0xff] %v337_v55 }

// kernel: decoder64x64_forward.9
= control target key start
LH: loop header
LB: loop body
LE: loop exit
PB: predicated region body
PF: predicated region fallthrough
CT: control target
= control target key end

     0   :  { %v64_v0 = vlaneseq  ;;  %v704_v2 = vmov 1983009808   ;;  %v705_v4 = vmov 0   ;;  %vm132_vm0 = vcmask 1041408   ;;  %s922_s1 = inlined_call_operand.vmem [shape: bf16[1,4,2048], index: 1, kind: input, shape index: {}]   ;;  %s923_s0 = inlined_call_operand.vmem [shape: bf16[1,8,4], index: 0, kind: input, shape index: {}]   ;;  %s924_s2 = inlined_call_operand.vmem [shape: f32[1,8,2048], index: 2, kind: output, shape index: {0}]   ;;  %s925_s3 = inlined_call_operand.vmem [shape: f32[1,8,2048], index: 3, kind: output, shape index: {1}]   ;;  %s926_s4 = inlined_call_operand.vmem [shape: f32[1,8,2048], index: 4, kind: output, shape index: {2}]  }
   0x1   :  { %v52_v1 = vld [vmem:[%s922_s1] sm:$0xff]  ;;  %v62_v3 = vunpack.c.l.s4 %v704_v2  ;;  %213 = vmatprep.mubr.bf16.mxu0 %v705_v4  ;;  %254 = vmatprep.mubr.bf16.mxu1 %v705_v4  ;;  %v53_v5 = vld [vmem:[%s922_s1 + $0x8] sm:$0xff]  ;;  %v54_v10 = vld [vmem:[%s922_s1 + $0x10] sm:$0xff]  ;;  %vm128_vm1 = vcmask 31744  }
   0x2   :  { %v65_v6 = vshrl.u32 %v64_v0, 7  ;;  %v60_v8 = vcombine.high %v52_v1, %v52_v1  ;;  %v77_v9 = vcombine.high %v53_v5, %v53_v5  ;;  %v94_v12 = vcombine.high %v54_v10, %v54_v10  ;;  %v55_v25 = vld [vmem:[%s922_s1 + $0x18] sm:$0xff]  ;;  %v51_v26 = vld [vmem:[%s923_s0] sm:$0xf] }
   0x3   :  { %v63_v7 = vunpack.c.0.s8 %v62_v3  ;;  %v111_v31 = vcombine.high %v55_v25, %v55_v25 }
   0x5   :  { %v66_v11 = vsub.s32 %v63_v7, %v65_v6 }
   0x7   :  { %v67_v13 = vrot.slane %v52_v1, %v66_v11  ;;  %v74_v14 = vrot.slane %v60_v8, %v66_v11  ;;  %v84_v15 = vrot.slane %v53_v5, %v66_v11  ;;  %v91_v16 = vrot.slane %v77_v9, %v66_v11 }
   0x8   :  { %v101_v23 = vrot.slane %v54_v10, %v66_v11  ;;  %v108_v24 = vrot.slane %v94_v12, %v66_v11  ;;  %v118_v32 = vrot.slane %v55_v25, %v66_v11  ;;  %v125_v33 = vrot.slane %v111_v31, %v66_v11 }
   0x9   :  { %v75_v17 = vcombine.high %v67_v13, %v67_v13  ;;  %v76_v18 = vcombine.high %v74_v14, %v74_v14  ;;  %v134_v19 = vsel %vm132_vm0, %v67_v13, 0  ;;  %v140_v20 = vsel %vm132_vm0, %v74_v14, 0 }
   0xa   :  { %v92_v21 = vcombine.high %v84_v15, %v84_v15  ;;  %v93_v22 = vcombine.high %v91_v16, %v91_v16  ;;  %v146_v27 = vsel %vm132_vm0, %v84_v15, 0  ;;  %v152_v28 = vsel %vm132_vm0, %v91_v16, 0 }
   0xb   :  { %681 = vmatprep.subr.msk.bf16.mxu0 %vm132_vm0, %v75_v17  ;;  %683 = vmatprep.subr.msk.bf16.mxu1 %vm132_vm0, %v76_v18  ;;  %v109_v29 = vcombine.high %v101_v23, %v101_v23  ;;  %v110_v30 = vcombine.high %v108_v24, %v108_v24  ;;  %v158_v34 = vsel %vm132_vm0, %v101_v23, 0  ;;  %v164_v35 = vsel %vm132_vm0, %v108_v24, 0 }
   0xc   :  { %182 = vmatpush1.bf16.msra.mxu0 %v134_v19  ;;  %223 = vmatpush1.bf16.msra.mxu1 %v140_v20  ;;  %v126_v36 = vcombine.high %v118_v32, %v118_v32  ;;  %v127_v37 = vcombine.high %v125_v33, %v125_v33  ;;  %v170_v38 = vsel %vm132_vm0, %v118_v32, 0  ;;  %v176_v39 = vsel %vm132_vm0, %v125_v33, 0 }
   0xd   :  { %685 = vmatprep.subr.msk.bf16.mxu0 %vm132_vm0, %v92_v21  ;;  %687 = vmatprep.subr.msk.bf16.mxu1 %vm132_vm0, %v93_v22 }
   0xf   :  { %682 = vmatmul.mubr.msk.bf16.vlgmr.msra.gmra.mrb[0].mxu0 %vm128_vm1, %v51_v26  ;;  %684 = vmatmul.mubr.msk.bf16.vlgmr.msra.gmra.mrb[0].mxu1 %vm128_vm1, %v51_v26 }
  0x10   :  { %264 = vmatpush1.bf16.msra.mxu0 %v146_v27  ;;  %305 = vmatpush1.bf16.msra.mxu1 %v152_v28 }
  0x11   :  { %295 = vmatprep.mubr.bf16.mxu0 %v705_v4  ;;  %336 = vmatprep.mubr.bf16.mxu1 %v705_v4 }
  0x12   :  { %689 = vmatprep.subr.msk.bf16.mxu0 %vm132_vm0, %v109_v29  ;;  %691 = vmatprep.subr.msk.bf16.mxu1 %vm132_vm0, %v110_v30 }
  0x17   :  { %686 = vmatmul.mubr.msk.bf16.vlgmr.msra.gmra.mrb[4].mxu0 %vm128_vm1, %v51_v26  ;;  %688 = vmatmul.mubr.msk.bf16.vlgmr.msra.gmra.mrb[4].mxu1 %vm128_vm1, %v51_v26 }
  0x18   :  { %346 = vmatpush1.bf16.msra.mxu0 %v158_v34  ;;  %387 = vmatpush1.bf16.msra.mxu1 %v164_v35 }
  0x19   :  { %377 = vmatprep.mubr.bf16.mxu0 %v705_v4  ;;  %418 = vmatprep.mubr.bf16.mxu1 %v705_v4 }
  0x1a   :  { %693 = vmatprep.subr.msk.bf16.mxu0 %vm132_vm0, %v126_v36  ;;  %695 = vmatprep.subr.msk.bf16.mxu1 %vm132_vm0, %v127_v37 }
  0x1f   :  { %690 = vmatmul.mubr.msk.bf16.vlgmr.msra.gmra.mrb[8].mxu0 %vm128_vm1, %v51_v26  ;;  %692 = vmatmul.mubr.msk.bf16.vlgmr.msra.gmra.mrb[8].mxu1 %vm128_vm1, %v51_v26 }
  0x20   :  { %428 = vmatpush1.bf16.msra.mxu0 %v170_v38  ;;  %469 = vmatpush1.bf16.msra.mxu1 %v176_v39 }
  0x21   :  { %459 = vmatprep.mubr.bf16.mxu0 %v705_v4  ;;  %500 = vmatprep.mubr.bf16.mxu1 %v705_v4 }
  0x27   :  { %694 = vmatmul.mubr.msk.bf16.vlgmr.msra.gmra.mrb[12].mxu0 %vm128_vm1, %v51_v26  ;;  %696 = vmatmul.mubr.msk.bf16.vlgmr.msra.gmra.mrb[12].mxu1 %vm128_vm1, %v51_v26 }
  0xe2   :  { %v215_v40 = vpop.f32.mrb[0].mxu0  ;;  %v256_v41 = vpop.f32.mrb[0].mxu1 }
  0xe3   :  { %509 = vst [vmem:[%s924_s2] sm:$0xff] %v215_v40  ;;  %v605_v42 = vmul.f32 %v215_v40, %v215_v40  ;;  %511 = vst [vmem:[%s924_s2 + $0x10] sm:$0xff] %v256_v41  ;;  %v607_v43 = vmul.f32 %v256_v41, %v256_v41  ;;  %v217_v44 = vpop.f32.mrb[1].mxu0  ;;  %v258_v45 = vpop.f32.mrb[1].mxu1 }
  0xe4   :  { %510 = vst [vmem:[%s924_s2 + $0x8] sm:$0xff] %v217_v44  ;;  %v606_v46 = vmul.f32 %v217_v44, %v217_v44  ;;  %512 = vst [vmem:[%s924_s2 + $0x18] sm:$0xff] %v258_v45  ;;  %v608_v47 = vmul.f32 %v258_v45, %v258_v45  ;;  %v219_v48 = vpop.f32.mrb[2].mxu0  ;;  %v260_v49 = vpop.f32.mrb[2].mxu1 }
  0xe5   :  { %573 = vst [vmem:[%s925_s3] sm:$0xff] %v215_v40  ;;  %575 = vst [vmem:[%s925_s3 + $0x10] sm:$0xff] %v256_v41  ;;  %v220_v50 = vpop.f32.mrb[3].mxu0  ;;  %v261_v51 = vpop.f32.mrb[3].mxu1 }
  0xe6   :  { %574 = vst [vmem:[%s925_s3 + $0x8] sm:$0xff] %v217_v44  ;;  %576 = vst [vmem:[%s925_s3 + $0x18] sm:$0xff] %v258_v45 }
  0xe7   :  { %653 = vst [vmem:[%s926_s4] sm:$0xff] %v605_v42  ;;  %655 = vst [vmem:[%s926_s4 + $0x10] sm:$0xff] %v607_v43 }
  0xe8   :  { %654 = vst [vmem:[%s926_s4 + $0x8] sm:$0xff] %v606_v46  ;;  %656 = vst [vmem:[%s926_s4 + $0x18] sm:$0xff] %v608_v47 }
  0xea   :  { %v297_v52 = vpop.f32.mrb[4].mxu0  ;;  %v338_v53 = vpop.f32.mrb[4].mxu1 }
  0xeb   :  { %513 = vst [vmem:[%s924_s2 + $0x20] sm:$0xff] %v297_v52  ;;  %v609_v54 = vmul.f32 %v297_v52, %v297_v52  ;;  %515 = vst [vmem:[%s924_s2 + $0x30] sm:$0xff] %v338_v53  ;;  %v611_v55 = vmul.f32 %v338_v53, %v338_v53  ;;  %v299_v56 = vpop.f32.mrb[5].mxu0  ;;  %v340_v57 = vpop.f32.mrb[5].mxu1 }
  0xec   :  { %514 = vst [vmem:[%s924_s2 + $0x28] sm:$0xff] %v299_v56  ;;  %v610_v58 = vmul.f32 %v299_v56, %v299_v56  ;;  %516 = vst [vmem:[%s924_s2 + $0x38] sm:$0xff] %v340_v57  ;;  %v612_v59 = vmul.f32 %v340_v57, %v340_v57  ;;  %v301_v60 = vpop.f32.mrb[6].mxu0  ;;  %v342_v61 = vpop.f32.mrb[6].mxu1 }
  0xed   :  { %577 = vst [vmem:[%s925_s3 + $0x20] sm:$0xff] %v297_v52  ;;  %579 = vst [vmem:[%s925_s3 + $0x30] sm:$0xff] %v338_v53  ;;  %v302_v62 = vpop.f32.mrb[7].mxu0  ;;  %v343_v63 = vpop.f32.mrb[7].mxu1 }
  0xee   :  { %578 = vst [vmem:[%s925_s3 + $0x28] sm:$0xff] %v299_v56  ;;  %580 = vst [vmem:[%s925_s3 + $0x38] sm:$0xff] %v340_v57 }
  0xef   :  { %657 = vst [vmem:[%s926_s4 + $0x20] sm:$0xff] %v609_v54  ;;  %659 = vst [vmem:[%s926_s4 + $0x30] sm:$0xff] %v611_v55 }
  0xf0   :  { %658 = vst [vmem:[%s926_s4 + $0x28] sm:$0xff] %v610_v58  ;;  %660 = vst [vmem:[%s926_s4 + $0x38] sm:$0xff] %v612_v59 }
  0xf2   :  { %v379_v0 = vpop.f32.mrb[8].mxu0  ;;  %v420_v1 = vpop.f32.mrb[8].mxu1 }
  0xf3   :  { %517 = vst [vmem:[%s924_s2 + $0x40] sm:$0xff] %v379_v0  ;;  %v613_v2 = vmul.f32 %v379_v0, %v379_v0  ;;  %519 = vst [vmem:[%s924_s2 + $0x50] sm:$0xff] %v420_v1  ;;  %v615_v3 = vmul.f32 %v420_v1, %v420_v1  ;;  %v381_v4 = vpop.f32.mrb[9].mxu0  ;;  %v422_v5 = vpop.f32.mrb[9].mxu1 }
  0xf4   :  { %518 = vst [vmem:[%s924_s2 + $0x48] sm:$0xff] %v381_v4  ;;  %v614_v6 = vmul.f32 %v381_v4, %v381_v4  ;;  %520 = vst [vmem:[%s924_s2 + $0x58] sm:$0xff] %v422_v5  ;;  %v616_v7 = vmul.f32 %v422_v5, %v422_v5  ;;  %v383_v8 = vpop.f32.mrb[10].mxu0  ;;  %v424_v9 = vpop.f32.mrb[10].mxu1 }
  0xf5   :  { %581 = vst [vmem:[%s925_s3 + $0x40] sm:$0xff] %v379_v0  ;;  %583 = vst [vmem:[%s925_s3 + $0x50] sm:$0xff] %v420_v1  ;;  %v384_v10 = vpop.f32.mrb[11].mxu0  ;;  %v425_v11 = vpop.f32.mrb[11].mxu1 }
  0xf6   :  { %582 = vst [vmem:[%s925_s3 + $0x48] sm:$0xff] %v381_v4  ;;  %584 = vst [vmem:[%s925_s3 + $0x58] sm:$0xff] %v422_v5 }
  0xf7   :  { %661 = vst [vmem:[%s926_s4 + $0x40] sm:$0xff] %v613_v2  ;;  %663 = vst [vmem:[%s926_s4 + $0x50] sm:$0xff] %v615_v3 }
  0xf8   :  { %662 = vst [vmem:[%s926_s4 + $0x48] sm:$0xff] %v614_v6  ;;  %664 = vst [vmem:[%s926_s4 + $0x58] sm:$0xff] %v616_v7 }
  0xfa   :  { %v461_v12 = vpop.f32.mrb[12].mxu0  ;;  %v502_v13 = vpop.f32.mrb[12].mxu1 }
  0xfb   :  { %521 = vst [vmem:[%s924_s2 + $0x60] sm:$0xff] %v461_v12  ;;  %v617_v14 = vmul.f32 %v461_v12, %v461_v12  ;;  %523 = vst [vmem:[%s924_s2 + $0x70] sm:$0xff] %v502_v13  ;;  %v619_v15 = vmul.f32 %v502_v13, %v502_v13  ;;  %v463_v16 = vpop.f32.mrb[13].mxu0  ;;  %v504_v17 = vpop.f32.mrb[13].mxu1 }
  0xfc   :  { %522 = vst [vmem:[%s924_s2 + $0x68] sm:$0xff] %v463_v16  ;;  %v618_v18 = vmul.f32 %v463_v16, %v463_v16  ;;  %524 = vst [vmem:[%s924_s2 + $0x78] sm:$0xff] %v504_v17  ;;  %v620_v19 = vmul.f32 %v504_v17, %v504_v17  ;;  %v465_v20 = vpop.f32.mrb[14].mxu0  ;;  %v506_v21 = vpop.f32.mrb[14].mxu1 }
  0xfd   :  { %585 = vst [vmem:[%s925_s3 + $0x60] sm:$0xff] %v461_v12  ;;  %587 = vst [vmem:[%s925_s3 + $0x70] sm:$0xff] %v502_v13  ;;  %v466_v22 = vpop.f32.mrb[15].mxu0  ;;  %v507_v23 = vpop.f32.mrb[15].mxu1 }
  0xfe   :  { %586 = vst [vmem:[%s925_s3 + $0x68] sm:$0xff] %v463_v16  ;;  %588 = vst [vmem:[%s925_s3 + $0x78] sm:$0xff] %v504_v17 }
  0xff   :  { %665 = vst [vmem:[%s926_s4 + $0x60] sm:$0xff] %v617_v14  ;;  %667 = vst [vmem:[%s926_s4 + $0x70] sm:$0xff] %v619_v15 }
 0x100   :  { %666 = vst [vmem:[%s926_s4 + $0x68] sm:$0xff] %v618_v18  ;;  %668 = vst [vmem:[%s926_s4 + $0x78] sm:$0xff] %v620_v19 }

// kernel: tile.58
= control target key start
LH: loop header
LB: loop body
LE: loop exit
PB: predicated region body
PF: predicated region fallthrough
CT: control target
= control target key end

     0   :  { %s22_s0 = inlined_call_operand.vmem [shape: f32[64], index: 0, kind: input, shape index: {}]   ;;  %s23_s1 = inlined_call_operand.vmem [shape: f32[2,64], index: 1, kind: output, shape index: {}]  }
   0x1   :  { %v4_v0 = vld [vmem:[%s22_s0] ss:$0 sm:$0xff] }
   0x2   :  { %5 = vst [vmem:[%s23_s1] sm:$0x3] %v4_v0 }

// kernel: tile.59
= control target key start
LH: loop header
LB: loop body
LE: loop exit
PB: predicated region body
PF: predicated region fallthrough
CT: control target
= control target key end

     0   :  { %vm7_vm0 = vcmask 523264   ;;  %vm13_vm1 = vcmask 1048064   ;;  %s39_s0 = inlined_call_operand.vmem [shape: f32[2,64], index: 0, kind: input, shape index: {}]   ;;  %s40_s1 = inlined_call_operand.vmem [shape: f32[1,128], index: 1, kind: output, shape index: {}]  }
   0x1   :  { %v4_v0 = vld [vmem:[%s39_s0] sm:$0x3]  ;;  %s22_s0 = smov 64  }
   0x2   :  { %5 = vst [vmem:[#allocation1] sm:$0x3] %v4_v0 }
   0x9   :  { %v10_v1 = vld [vmem:[#allocation1 + $0x1] sm:$0x1]   ;;  %v6_v2 = vld [vmem:[#allocation1] sm:$0x1]  }
   0xa   :  { %11 = vrot.lane.b32.xlu0 %v10_v1, %s22_s0  ;;  %8 = vst.msk [vmem:[#allocation0] sm:$0x1] %vm7_vm0, %v6_v2  }
  0x7c   :  { %v12_v3 = vpop.permute.xlu0 %11  }
  0x7d   :  { %14 = vst.msk [vmem:[#allocation0] sm:$0x1] %vm13_vm1, %v12_v3  }
  0x84   :  { %v18_v4 = vld [vmem:[#allocation0] sm:$0x1] }
  0x85   :  { %20 = vst [vmem:[%s40_s1] sm:$0x1] %v18_v4 }

// kernel: decoder64x64_forward.11
= control target key start
LH: loop header
LB: loop body
LE: loop exit
PB: predicated region body
PF: predicated region fallthrough
CT: control target
= control target key end

     0   :  { %s1117_s15 = smov 0   ;;  %s1119_s16 = smov 0   ;;  %s1231_s0 = inlined_call_operand.vmem [shape: bf16[4,32,512], index: 0, kind: input, shape index: {}]   ;;  %s1232_s1 = inlined_call_operand.vmem [shape: bf16[4,512,64], index: 1, kind: input, shape index: {}]   ;;  %s1233_s2 = inlined_call_operand.vmem [shape: f32[4,32,64], index: 2, kind: output, shape index: {0}]   ;;  %s1234_s3 = inlined_call_operand.vmem [shape: f32[4,8,64], index: 3, kind: output, shape index: {1}]   ;;  %s1235_s4 = inlined_call_operand.vmem [shape: f32[4,8,64], index: 4, kind: output, shape index: {2}]  }
   0x1   :  { %s1121_s17 = smov 0  }
   0x2 LB: > { %s27_s18 = sadd.s32 1, %s1085_s16  ;;  %p888_p0 = scmp.ge.s32.totalorder %s1089_s17, 1  ;;  %s1089_s17 = sphi %s1121_s17, %s15_s17   ;;  %s1085_s16 = sphi %s1119_s16, %s1237_s16   ;;  %s1081_s15 = sphi %s1117_s15, %s1236_s15  }
   0x3   : > { %p29_p1 = scmp.ge.s32.totalorder %s27_s18, 4  ;;  %p199_p2 = scmp.lt.s32.totalorder %s1089_s17, 5 }
   0x5   : > { %s1239_s18 = smov (%p29_p1, %s27_s18), 0  ;;  %p200_p3 = pnand %p888_p0, %p199_p2 }
   0x6   : > { %p248_p4 = scmp.lt.s32.totalorder (!%p200_p3), %s1081_s15, 3  ;;  %vm286_vm0 = vcmask (!%p200_p3), 523264   ;;  %v1091_v40 = vmov (!%p200_p3), 0.0  }
   0x7   : > { %203 = sbr.rel (%p200_p3) target bundleno = 287 (0x11f), region = 28 }
   0xe   : > { %s1241_s15 = smov (!%p248_p4, %s1081_s15), 3 }
   0xf   : > { %s940_s19 = sshll.u32 %s1241_s15, 8  ;;  %s939_s23 = sshll.u32 %s1241_s15, 6 }
  0x10   : > { %s1141_s22 = scalar_lea.vmem %s1232_s1, %s940_s19  ;;  %s256_s26 = scalar_lea.vmem %s1231_s0, %s939_s23 }
  0x11   : > { %v1023_v0 = vld [vmem:[%s1141_s22 + $0x40] sm:$0xff]   ;;  %v1027_v4 = vld [vmem:[%s1141_s22 + $0x48] sm:$0xff]   ;;  %v1031_v8 = vld [vmem:[%s1141_s22 + $0x50] sm:$0xff]   ;;  %s895_s27 = sshll.u32 %s1241_s15, 3  ;;  %s941_s8 = sshll.u32 %s1241_s15, 5 }
  0x12   : > { %v1024_v1 = vld [vmem:[%s1141_s22 + $0xc0] sm:$0xff]   ;;  %942 = vmatprep.subr.bf16.mxu0 %v1023_v0  ;;  %v1028_v5 = vld [vmem:[%s1141_s22 + $0xc8] sm:$0xff]   ;;  %v1032_v9 = vld [vmem:[%s1141_s22 + $0xd0] sm:$0xff]   ;;  %s1183_s30 = scalar_lea.vmem %s1234_s3, %s895_s27  ;;  %s1190_s7 = scalar_lea.vmem %s1235_s4, %s895_s27 }
  0x13   : > { %v1025_v2 = vld [vmem:[%s1141_s22] sm:$0xff]   ;;  %970 = vmatprep.subr.bf16.mxu1 %v1024_v1  ;;  %v1029_v6 = vld [vmem:[%s1141_s22 + $0x8] sm:$0xff]   ;;  %v1033_v10 = vld [vmem:[%s1141_s22 + $0x10] sm:$0xff]   ;;  %287 = vst.msk [vmem:[%s1183_s30] sm:$0xff] %vm286_vm0, %v1091_v40  ;;  %s1198_s11 = scalar_lea.vmem %s1233_s2, %s941_s8 }
  0x14   : > { %v1026_v3 = vld [vmem:[%s1141_s22 + $0x80] sm:$0xff]   ;;  %943 = vmatpush3.bf16.msra.mxu0 %v1025_v2  ;;  %v1030_v7 = vld [vmem:[%s1141_s22 + $0x88] sm:$0xff]   ;;  %v1034_v11 = vld [vmem:[%s1141_s22 + $0x90] sm:$0xff]   ;;  %288 = vst.msk [vmem:[%s1190_s7] sm:$0xff] %vm286_vm0, %v1091_v40 }
  0x15   : > { %971 = vmatpush3.bf16.msra.mxu1 %v1026_v3  ;;  %944 = vmatprep.subr.bf16.mxu0 %v1027_v4  ;;  %v1035_v12 = vld [vmem:[%s1141_s22 + $0x58] sm:$0xff]   ;;  %v1039_v16 = vld [vmem:[%s1141_s22 + $0x60] sm:$0xff]   ;;  %v1043_v20 = vld [vmem:[%s1141_s22 + $0x68] sm:$0xff]  }
  0x16   : > { %972 = vmatprep.subr.bf16.mxu1 %v1028_v5  ;;  %v1036_v13 = vld [vmem:[%s1141_s22 + $0xd8] sm:$0xff]   ;;  %v1040_v17 = vld [vmem:[%s1141_s22 + $0xe0] sm:$0xff]   ;;  %v1044_v21 = vld [vmem:[%s1141_s22 + $0xe8] sm:$0xff]  }
  0x17   : > { %v1037_v14 = vld [vmem:[%s1141_s22 + $0x18] sm:$0xff]   ;;  %v1041_v18 = vld [vmem:[%s1141_s22 + $0x20] sm:$0xff]   ;;  %v1045_v22 = vld [vmem:[%s1141_s22 + $0x28] sm:$0xff]  }
  0x18   : > { %945 = vmatpush3.bf16.msra.mxu0 %v1029_v6  ;;  %v1038_v15 = vld [vmem:[%s1141_s22 + $0x98] sm:$0xff]   ;;  %v1042_v19 = vld [vmem:[%s1141_s22 + $0xa0] sm:$0xff]   ;;  %v1046_v23 = vld [vmem:[%s1141_s22 + $0xa8] sm:$0xff]  }
  0x19   : > { %973 = vmatpush3.bf16.msra.mxu1 %v1030_v7  ;;  %946 = vmatprep.subr.bf16.mxu0 %v1031_v8  ;;  %v1047_v24 = vld [vmem:[%s1141_s22 + $0x70] sm:$0xff]   ;;  %v1051_v28 = vld [vmem:[%s1141_s22 + $0x78] sm:$0xff]  }
  0x1a   : > { %974 = vmatprep.subr.bf16.mxu1 %v1032_v9  ;;  %v1048_v25 = vld [vmem:[%s1141_s22 + $0xf0] sm:$0xff]   ;;  %v1052_v29 = vld [vmem:[%s1141_s22 + $0xf8] sm:$0xff]  }
  0x1b   : > { %v1049_v26 = vld [vmem:[%s1141_s22 + $0x30] sm:$0xff]   ;;  %v1053_v30 = vld [vmem:[%s1141_s22 + $0x38] sm:$0xff]  }
  0x1c   : > { %947 = vmatpush3.bf16.msra.mxu0 %v1033_v10  ;;  %v1050_v27 = vld [vmem:[%s1141_s22 + $0xb0] sm:$0xff]   ;;  %v1054_v31 = vld [vmem:[%s1141_s22 + $0xb8] sm:$0xff]  }
  0x1d   : > { %975 = vmatpush3.bf16.msra.mxu1 %v1034_v11  ;;  %948 = vmatprep.subr.bf16.mxu0 %v1035_v12  ;;  %v1055_v32 = vld [vmem:[%s256_s26] ss:$16 sps:$4 sm:$0xff]   ;;  %v1057_v33 = vld [vmem:[%s256_s26 + $0x4] ss:$16 sps:$4 sm:$0xff]   ;;  %v1058_v34 = vld [vmem:[%s256_s26 + $0x8] ss:$16 sps:$4 sm:$0xff]  }
  0x1e   : > { %976 = vmatprep.subr.bf16.mxu1 %v1036_v13  ;;  %v1060_v35 = vld [vmem:[%s256_s26 + $0xc] ss:$16 sps:$4 sm:$0xff]   ;;  %625 = vmatprep.mubr.bf16.mxu0 %v1057_v33  ;;  %v1061_v36 = vld [vmem:[%s256_s26 + $0x24] ss:$16 sps:$4 sm:$0xff]   ;;  %v1065_v38 = vld [vmem:[%s256_s26 + $0x20] ss:$16 sps:$4 sm:$0xff]  }
  0x1f   : > { %674 = vmatprep.mubr.bf16.mxu1 %v1060_v35  ;;  %v1063_v37 = vld [vmem:[%s256_s26 + $0x2c] ss:$16 sps:$4 sm:$0xff]   ;;  %v1066_v39 = vld [vmem:[%s256_s26 + $0x28] ss:$16 sps:$4 sm:$0xff]  }
  0x20   : > { %949 = vmatpush3.bf16.msra.mxu0 %v1037_v14 }
  0x21   : > { %977 = vmatpush3.bf16.msra.mxu1 %v1038_v15  ;;  %950 = vmatprep.subr.bf16.mxu0 %v1039_v16 }
  0x22   : > { %978 = vmatprep.subr.bf16.mxu1 %v1040_v17  ;;  %v696_v17 = vld [vmem:[%s1183_s30] sm:$0xff] }
  0x24   : > { %951 = vmatpush3.bf16.msra.mxu0 %v1041_v18 }
  0x25   : > { %979 = vmatpush3.bf16.msra.mxu1 %v1042_v19  ;;  %952 = vmatprep.subr.bf16.mxu0 %v1043_v20 }
  0x26   : > { %980 = vmatprep.subr.bf16.mxu1 %v1044_v21 }
  0x28   : > { %953 = vmatpush3.bf16.msra.mxu0 %v1045_v22  ;;  %v706_v22 = vld [vmem:[%s1190_s7] sm:$0xff] }
  0x29   : > { %981 = vmatpush3.bf16.msra.mxu1 %v1046_v23  ;;  %954 = vmatprep.subr.bf16.mxu0 %v1047_v24 }
  0x2a   : > { %982 = vmatprep.subr.bf16.mxu1 %v1048_v25 }
  0x2c   : > { %955 = vmatpush3.bf16.msra.mxu0 %v1049_v26 }
  0x2d   : > { %983 = vmatpush3.bf16.msra.mxu1 %v1050_v27  ;;  %956 = vmatprep.subr.bf16.mxu0 %v1051_v28 }
  0x2e   : > { %984 = vmatprep.subr.bf16.mxu1 %v1052_v29 }
  0x30   : > { %957 = vmatpush3.bf16.msra.mxu0 %v1053_v30 }
  0x31   : > { %985 = vmatpush3.bf16.msra.mxu1 %v1054_v31 }
  0x33   : > { %626 = vmatmul.mubr.bf16.vlgmr.msra.gmra.mrb[0].mxu0 %v1055_v32 }
  0x34   : > { %675 = vmatmul.mubr.bf16.vlgmr.msra.gmra.mrb[0].mxu1 %v1058_v34  ;;  %633 = vmatprep.mubr.bf16.mxu0 %v1061_v36 }
  0x35   : > { %682 = vmatprep.mubr.bf16.mxu1 %v1063_v37 }
  0x3b   : > { %634 = vmatmul.mubr.bf16.gmra.mrb[4].mxu0 %v1065_v38 }
  0x3c   : > { %683 = vmatmul.mubr.bf16.gmra.mrb[4].mxu1 %v1066_v39 }
 0x106   : > { %v958_v41 = vpop.f32.mrb[0].mxu0 }
 0x107   : > { %v986_v42 = vpop.f32.mrb[0].mxu1  ;;  %v959_v43 = vpop.f32.mrb[1].mxu0 }
 0x108   : > { %v960_v44 = vadd.f32 %v959_v43, %v958_v41  ;;  %v987_v45 = vpop.f32.mrb[1].mxu1  ;;  %v961_v46 = vpop.f32.mrb[2].mxu0 }
 0x109   : > { %v988_v47 = vadd.f32 %v987_v45, %v986_v42  ;;  %v989_v48 = vpop.f32.mrb[2].mxu1  ;;  %v962_v49 = vpop.f32.mrb[3].mxu0 }
 0x10a   : > { %v963_v50 = vadd.f32 %v962_v49, %v961_v46  ;;  %v990_v51 = vpop.f32.mrb[3].mxu1 }
 0x10b   : > { %v677_v52 = vadd.f32 %v988_v47, %v960_v44  ;;  %v991_v53 = vadd.f32 %v990_v51, %v989_v48 }
 0x10d   : > { %692 = vst.msk [vmem:[%s1198_s11] sm:$0xff] %vm286_vm0, %v677_v52  ;;  %v707_v54 = vmul.f32 %v677_v52, %v677_v52  ;;  %v680_v55 = vadd.f32 %v991_v53, %v963_v50  ;;  %v697_v57 = vsel %vm286_vm0, %v677_v52, 0.0 }
 0x10e   : > { %v964_v56 = vpop.f32.mrb[4].mxu0 }
 0x10f   : > { %693 = vst.msk [vmem:[%s1198_s11 + $0x8] sm:$0xff] %vm286_vm0, %v680_v55  ;;  %v698_v58 = vsel %vm286_vm0, %v680_v55, 0.0  ;;  %v708_v59 = vmul.f32 %v680_v55, %v680_v55  ;;  %v992_v60 = vpop.f32.mrb[4].mxu1  ;;  %v965_v61 = vpop.f32.mrb[5].mxu0  ;;  %v711_v2 = vsel %vm286_vm0, %v707_v54, 0.0 }
 0x110   : > { %v699_v62 = vadd.f32 %v698_v58, %v697_v57  ;;  %v966_v63 = vadd.f32 %v965_v61, %v964_v56  ;;  %v993_v0 = vpop.f32.mrb[5].mxu1  ;;  %v967_v1 = vpop.f32.mrb[6].mxu0 }
 0x111   : > { %v712_v3 = vsel %vm286_vm0, %v708_v59, 0.0  ;;  %v994_v4 = vadd.f32 %v993_v0, %v992_v60  ;;  %v995_v5 = vpop.f32.mrb[6].mxu1  ;;  %v968_v6 = vpop.f32.mrb[7].mxu0 }
 0x112   : > { %v713_v7 = vadd.f32 %v712_v3, %v711_v2  ;;  %v969_v8 = vadd.f32 %v968_v6, %v967_v1  ;;  %v996_v9 = vpop.f32.mrb[7].mxu1 }
 0x113   : > { %v685_v10 = vadd.f32 %v994_v4, %v966_v63  ;;  %v997_v11 = vadd.f32 %v996_v9, %v995_v5 }
 0x115   : > { %694 = vst.msk [vmem:[%s1198_s11 + $0x10] sm:$0xff] %vm286_vm0, %v685_v10  ;;  %v700_v12 = vsel %vm286_vm0, %v685_v10, 0.0  ;;  %v709_v13 = vmul.f32 %v685_v10, %v685_v10  ;;  %v688_v14 = vadd.f32 %v997_v11, %v969_v8 }
 0x116   : > { %v701_v15 = vadd.f32 %v700_v12, %v699_v62 }
 0x117   : > { %v714_v16 = vsel %vm286_vm0, %v709_v13, 0.0  ;;  %695 = vst.msk [vmem:[%s1198_s11 + $0x18] sm:$0xff] %vm286_vm0, %v688_v14  ;;  %v702_v18 = vsel %vm286_vm0, %v688_v14, 0.0  ;;  %v710_v19 = vmul.f32 %v688_v14, %v688_v14 }
 0x118   : > { %v715_v20 = vadd.f32 %v714_v16, %v713_v7  ;;  %v703_v21 = vadd.f32 %v702_v18, %v701_v15 }
 0x119   : > { %v716_v23 = vsel %vm286_vm0, %v710_v19, 0.0 }
 0x11a   : > { %v704_v24 = vadd.f32 %v703_v21, %v696_v17  ;;  %v717_v25 = vadd.f32 %v716_v23, %v715_v20 }
 0x11c   : > { %705 = vst.msk [vmem:[%s1183_s30] sm:$0xff] %vm286_vm0, %v704_v24  ;;  %v718_v26 = vadd.f32 %v717_v25, %v706_v22 }
 0x11e   : > { %719 = vst.msk [vmem:[%s1190_s7] sm:$0xff] %vm286_vm0, %v718_v26 }
 0x11f PF: > { %s15_s17 = sadd.s32 1, %s1089_s17   ;;  %s1236_s15 = smov %s1085_s16 }
 0x120   : > { %p12_p5 = scmp.ge.s32.totalorder %s15_s17, 6   ;;  %s1237_s16 = smov %s1239_s18 }
 0x122   :  { %14 = sbr.rel (!%p12_p5) target bundleno = 2 (0x2), region = 89 }

// kernel: decoder64x64_forward.12
= control target key start
LH: loop header
LB: loop body
LE: loop exit
PB: predicated region body
PF: predicated region fallthrough
CT: control target
= control target key end

     0   :  { %s207_s0 = inlined_call_operand.vmem [shape: f32[64,128], index: 0, kind: input, shape index: {}]   ;;  %s208_s1 = inlined_call_operand.vmem [shape: f32[1,128], index: 1, kind: input, shape index: {}]   ;;  %s209_s2 = inlined_call_operand.vmem [shape: f32[1,128], index: 2, kind: input, shape index: {}]   ;;  %s210_s3 = inlined_call_operand.vmem [shape: bf16[64,128], index: 3, kind: output, shape index: {}]  }
   0x1   :  { %v14_v0 = vld [vmem:[%s207_s0] sm:$0xff]  ;;  %v15_v1 = vld [vmem:[%s207_s0 + $0x8] sm:$0xff]  ;;  %v16_v6 = vld [vmem:[%s207_s0 + $0x10] sm:$0xff] }
   0x2   :  { %v104_v2 = vld [vmem:[%s208_s1] ss:$0 sm:$0xff]  ;;  %v17_v7 = vld [vmem:[%s207_s0 + $0x18] sm:$0xff]  ;;  %v19_v11 = vld [vmem:[%s207_s0 + $0x28] sm:$0xff] }
   0x3   :  { %v29_v3 = vmul.f32 %v104_v2, %v14_v0  ;;  %v30_v4 = vmul.f32 %v104_v2, %v15_v1  ;;  %v105_v5 = vld [vmem:[%s209_s2] ss:$0 sm:$0xff]  ;;  %v31_v8 = vmul.f32 %v104_v2, %v16_v6  ;;  %v32_v9 = vmul.f32 %v104_v2, %v17_v7  ;;  %v20_v12 = vld [vmem:[%s207_s0 + $0x30] sm:$0xff]  ;;  %v21_v17 = vld [vmem:[%s207_s0 + $0x38] sm:$0xff] }
   0x4   :  { %v18_v10 = vld [vmem:[%s207_s0 + $0x20] sm:$0xff]  ;;  %v34_v16 = vmul.f32 %v104_v2, %v19_v11  ;;  %v35_v20 = vmul.f32 %v104_v2, %v20_v12  ;;  %v36_v21 = vmul.f32 %v104_v2, %v21_v17 }
   0x5   :  { %v44_v13 = vadd.f32 %v105_v5, %v29_v3  ;;  %v45_v14 = vadd.f32 %v105_v5, %v30_v4  ;;  %v33_v15 = vmul.f32 %v104_v2, %v18_v10  ;;  %v46_v18 = vadd.f32 %v105_v5, %v31_v8 }
   0x6   :  { %v47_v19 = vadd.f32 %v105_v5, %v32_v9  ;;  %v49_v25 = vadd.f32 %v105_v5, %v34_v16  ;;  %v50_v28 = vadd.f32 %v105_v5, %v35_v20  ;;  %v51_v29 = vadd.f32 %v105_v5, %v36_v21 }
   0x7   :  { %v52_v22 = vmax.f32 %v44_v13, 0.0  ;;  %v53_v23 = vmax.f32 %v45_v14, 0.0  ;;  %v48_v24 = vadd.f32 %v105_v5, %v33_v15  ;;  %v54_v26 = vmax.f32 %v46_v18, 0.0 }
   0x8   :  { %v55_v27 = vmax.f32 %v47_v19, 0.0  ;;  %v57_v32 = vmax.f32 %v49_v25, 0.0  ;;  %v58_v34 = vmax.f32 %v50_v28, 0.0  ;;  %v59_v35 = vmax.f32 %v51_v29, 0.0 }
   0x9   :  { %v125_v30 = vpack.c.bf16 %v53_v23, %v52_v22  ;;  %v56_v31 = vmax.f32 %v48_v24, 0.0 }
   0xa   :  { %v130_v33 = vpack.c.bf16 %v55_v27, %v54_v26  ;;  %v140_v37 = vpack.c.bf16 %v59_v35, %v58_v34 }
   0xb   :  { %126 = vst [vmem:[%s210_s3] sm:$0xff] %v125_v30   ;;  %v135_v36 = vpack.c.bf16 %v57_v32, %v56_v31 }
   0xc   :  { %142 = vst [vmem:[%s210_s3 + $0x8] sm:$0xff] %v130_v33   ;;  %144 = vst [vmem:[%s210_s3 + $0x18] sm:$0xff] %v140_v37  }
   0xd   :  { %143 = vst [vmem:[%s210_s3 + $0x10] sm:$0xff] %v135_v36  }

// kernel: tile.68
= control target key start
LH: loop header
LB: loop body
LE: loop exit
PB: predicated region body
PF: predicated region fallthrough
CT: control target
= control target key end

     0   :  { %s22_s0 = inlined_call_operand.vmem [shape: f32[32], index: 0, kind: input, shape index: {}]   ;;  %s23_s1 = inlined_call_operand.vmem [shape: f32[4,32], index: 1, kind: output, shape index: {}]  }
   0x1   :  { %v4_v0 = vld [vmem:[%s22_s0] ss:$0 sm:$0xff] }
   0x2   :  { %5 = vst [vmem:[%s23_s1] sm:$0xf] %v4_v0 }

// kernel: tile.69
= control target key start
LH: loop header
LB: loop body
LE: loop exit
PB: predicated region body
PF: predicated region fallthrough
CT: control target
= control target key end

     0   :  { %vm7_vm0 = vcmask 261120   ;;  %s37_s8 = smov 32   ;;  %s38_s9 = smov 64   ;;  %vm13_vm1 = vcmask 1048320   ;;  %vm19_vm2 = vcmask 785920   ;;  %vm25_vm3 = vcmask 523520   ;;  %s55_s0 = inlined_call_operand.vmem [shape: f32[4,32], index: 0, kind: input, shape index: {}]   ;;  %s56_s1 = inlined_call_operand.vmem [shape: f32[1,128], index: 1, kind: output, shape index: {}]  }
   0x1   :  { %v4_v0 = vld [vmem:[%s55_s0] sm:$0xf]  ;;  %s36_s0 = smov 96  }
   0x2   :  { %5 = vst [vmem:[#allocation1] sm:$0xf] %v4_v0 }
   0x9   :  { %v10_v1 = vld [vmem:[#allocation1 + $0x3] sm:$0x1]   ;;  %v22_v2 = vld [vmem:[#allocation1 + $0x1] sm:$0x1]   ;;  %v6_v3 = vld [vmem:[#allocation1] sm:$0x1]  }
   0xa   :  { %11 = vrot.lane.b32.xlu0 %v10_v1, %s36_s0  ;;  %23 = vrot.lane.b32.xlu1 %v22_v2, %s37_s8  ;;  %v16_v4 = vld [vmem:[#allocation1 + $0x2] sm:$0x1]   ;;  %8 = vst.msk [vmem:[#allocation0] sm:$0x1] %vm7_vm0, %v6_v3  }
   0xe   :  { %17 = vrot.lane.b32.xlu0 %v16_v4, %s38_s9 }
  0x7c   :  { %v12_v5 = vpop.permute.xlu0 %11   ;;  %v24_v6 = vpop.permute.xlu1 %23  }
  0x7d   :  { %14 = vst.msk [vmem:[#allocation0] sm:$0x1] %vm13_vm1, %v12_v5  }
  0x80   :  { %v18_v7 = vpop.permute.xlu0 %17  }
  0x81   :  { %20 = vst.msk [vmem:[#allocation0] sm:$0x1] %vm19_vm2, %v18_v7  }
  0x82   :  { %26 = vst.msk [vmem:[#allocation0] sm:$0x1] %vm25_vm3, %v24_v6  }
  0x89   :  { %v30_v8 = vld [vmem:[#allocation0] sm:$0x1] }
  0x8a   :  { %32 = vst [vmem:[%s56_s1] sm:$0x1] %v30_v8 }

// kernel: decoder64x64_forward.13
= control target key start
LH: loop header
LB: loop body
LE: loop exit
PB: predicated region body
PF: predicated region fallthrough
CT: control target
= control target key end

     0   :  { %s1120_s15 = smov 0   ;;  %s1122_s16 = smov 0   ;;  %s1317_s0 = inlined_call_operand.vmem [shape: bf16[4,128,256], index: 0, kind: input, shape index: {}]   ;;  %s1318_s1 = inlined_call_operand.vmem [shape: bf16[4,256,32], index: 1, kind: input, shape index: {}]   ;;  %s1319_s2 = inlined_call_operand.vmem [shape: f32[4,128,32], index: 2, kind: output, shape index: {0}]   ;;  %s1320_s3 = inlined_call_operand.vmem [shape: f32[4,8,32], index: 3, kind: output, shape index: {1}]   ;;  %s1321_s4 = inlined_call_operand.vmem [shape: f32[4,8,32], index: 4, kind: output, shape index: {2}]  }
   0x1   :  { %s1124_s17 = smov 0  }
   0x2 LB: > { %s27_s18 = sadd.s32 1, %s1088_s16  ;;  %p879_p0 = scmp.ge.s32.totalorder %s1092_s17, 1  ;;  %s1092_s17 = sphi %s1124_s17, %s15_s17   ;;  %s1088_s16 = sphi %s1122_s16, %s1323_s16   ;;  %s1084_s15 = sphi %s1120_s15, %s1322_s15  }
   0x3   : > { %p29_p1 = scmp.ge.s32.totalorder %s27_s18, 4  ;;  %p199_p2 = scmp.lt.s32.totalorder %s1092_s17, 5 }
   0x5   : > { %s1325_s18 = smov (%p29_p1, %s27_s18), 0  ;;  %p200_p3 = pnand %p879_p0, %p199_p2 }
   0x6   : > { %p248_p4 = scmp.lt.s32.totalorder (!%p200_p3), %s1084_s15, 3  ;;  %vm286_vm0 = vcmask (!%p200_p3), 261120   ;;  %v1094_v32 = vmov (!%p200_p3), 0.0  }
   0x7   : > { %203 = sbr.rel (%p200_p3) target bundleno = 315 (0x13b), region = 28 }
   0xe   : > { %s1327_s15 = smov (!%p248_p4, %s1084_s15), 3 }
   0xf   : > { %s1141_s19 = sshll.u32 %s1327_s15, 7  ;;  %s886_s26 = sshll.u32 %s1327_s15, 3 }
  0x10   : > { %s1147_s22 = scalar_lea.vmem %s1318_s1, %s1141_s19  ;;  %s1162_s25 = scalar_lea.vmem %s1317_s0, %s1141_s19 }
  0x11   : > { %v1030_v0 = vld [vmem:[%s1147_s22 + $0x40] sm:$0xff]   ;;  %v1032_v2 = vld [vmem:[%s1147_s22 + $0x48] sm:$0xff]   ;;  %v1034_v4 = vld [vmem:[%s1147_s22 + $0x50] sm:$0xff]   ;;  %s1191_s29 = scalar_lea.vmem %s1320_s3, %s886_s26  ;;  %s1198_s6 = scalar_lea.vmem %s1321_s4, %s886_s26 }
  0x12   : > { %v1031_v1 = vld [vmem:[%s1147_s22] sm:$0xff]   ;;  %925 = vmatprep.subr.bf16.mxu0 %v1030_v0  ;;  %989 = vmatprep.subr.bf16.mxu1 %v1030_v0  ;;  %v1033_v3 = vld [vmem:[%s1147_s22 + $0x8] sm:$0xff]   ;;  %v1035_v5 = vld [vmem:[%s1147_s22 + $0x10] sm:$0xff]   ;;  %287 = vst.msk [vmem:[%s1191_s29] sm:$0xff] %vm286_vm0, %v1094_v32  ;;  %s1206_s9 = scalar_lea.vmem %s1319_s2, %s1141_s19 }
  0x13   : > { %926 = vmatpush3.bf16.msra.mxu0 %v1031_v1  ;;  %997 = vmatpush3.bf16.msra.mxu1 %v1031_v1  ;;  %v1036_v6 = vld [vmem:[%s1147_s22 + $0x58] sm:$0xff]   ;;  %v1038_v8 = vld [vmem:[%s1147_s22 + $0x60] sm:$0xff]   ;;  %v1040_v10 = vld [vmem:[%s1147_s22 + $0x68] sm:$0xff]   ;;  %288 = vst.msk [vmem:[%s1198_s6] sm:$0xff] %vm286_vm0, %v1094_v32 }
  0x14   : > { %927 = vmatprep.subr.bf16.mxu0 %v1032_v2  ;;  %990 = vmatprep.subr.bf16.mxu1 %v1032_v2  ;;  %v1037_v7 = vld [vmem:[%s1147_s22 + $0x18] sm:$0xff]   ;;  %v1039_v9 = vld [vmem:[%s1147_s22 + $0x20] sm:$0xff]   ;;  %v1041_v12 = vld [vmem:[%s1147_s22 + $0x28] sm:$0xff]  }
  0x15   : > { %v1048_v11 = vld [vmem:[%s1162_s25 + $0x4] ss:$8 sps:$4 sm:$0xff]   ;;  %v1042_v14 = vld [vmem:[%s1147_s22 + $0x70] sm:$0xff]   ;;  %v1044_v16 = vld [vmem:[%s1147_s22 + $0x78] sm:$0xff]  }
  0x16   : > { %v1054_v13 = vld [vmem:[%s1162_s25 + $0x44] ss:$8 sps:$4 sm:$0xff]   ;;  %545 = vmatprep.mubr.bf16.mxu0 %v1048_v11  ;;  %v1043_v15 = vld [vmem:[%s1147_s22 + $0x30] sm:$0xff]   ;;  %v1045_v17 = vld [vmem:[%s1147_s22 + $0x38] sm:$0xff]  }
  0x17   : > { %928 = vmatpush3.bf16.msra.mxu0 %v1033_v3  ;;  %998 = vmatpush3.bf16.msra.mxu1 %v1033_v3  ;;  %v1046_v18 = vld [vmem:[%s1162_s25] ss:$8 sps:$4 sm:$0xff]   ;;  %v1049_v20 = vld [vmem:[%s1162_s25 + $0x14] ss:$8 sps:$4 sm:$0xff]   ;;  %v1051_v22 = vld [vmem:[%s1162_s25 + $0x10] ss:$8 sps:$4 sm:$0xff]  }
  0x18   : > { %929 = vmatprep.subr.bf16.mxu0 %v1034_v4  ;;  %991 = vmatprep.subr.bf16.mxu1 %v1034_v4  ;;  %v1052_v19 = vld [vmem:[%s1162_s25 + $0x40] ss:$8 sps:$4 sm:$0xff]   ;;  %v1058_v21 = vld [vmem:[%s1162_s25 + $0x54] ss:$8 sps:$4 sm:$0xff]   ;;  %v1060_v23 = vld [vmem:[%s1162_s25 + $0x50] ss:$8 sps:$4 sm:$0xff]  }
  0x19   : > { %577 = vmatprep.mubr.bf16.mxu1 %v1054_v13  ;;  %v1055_v24 = vld [vmem:[%s1162_s25 + $0x24] ss:$8 sps:$4 sm:$0xff]   ;;  %v1057_v26 = vld [vmem:[%s1162_s25 + $0x20] ss:$8 sps:$4 sm:$0xff]   ;;  %v1061_v28 = vld [vmem:[%s1162_s25 + $0x34] ss:$8 sps:$4 sm:$0xff]  }
  0x1a   : > { %v1064_v25 = vld [vmem:[%s1162_s25 + $0x64] ss:$8 sps:$4 sm:$0xff]   ;;  %v1066_v27 = vld [vmem:[%s1162_s25 + $0x60] ss:$8 sps:$4 sm:$0xff]   ;;  %v1067_v29 = vld [vmem:[%s1162_s25 + $0x74] ss:$8 sps:$4 sm:$0xff]  }
  0x1b   : > { %930 = vmatpush3.bf16.msra.mxu0 %v1035_v5  ;;  %999 = vmatpush3.bf16.msra.mxu1 %v1035_v5  ;;  %v1063_v30 = vld [vmem:[%s1162_s25 + $0x30] ss:$8 sps:$4 sm:$0xff]  }
  0x1c   : > { %931 = vmatprep.subr.bf16.mxu0 %v1036_v6  ;;  %992 = vmatprep.subr.bf16.mxu1 %v1036_v6  ;;  %v1069_v31 = vld [vmem:[%s1162_s25 + $0x70] ss:$8 sps:$4 sm:$0xff]  }
  0x1f   : > { %932 = vmatpush3.bf16.msra.mxu0 %v1037_v7  ;;  %1000 = vmatpush3.bf16.msra.mxu1 %v1037_v7 }
  0x20   : > { %933 = vmatprep.subr.bf16.mxu0 %v1038_v8  ;;  %993 = vmatprep.subr.bf16.mxu1 %v1038_v8 }
  0x23   : > { %934 = vmatpush3.bf16.msra.mxu0 %v1039_v9  ;;  %1001 = vmatpush3.bf16.msra.mxu1 %v1039_v9 }
  0x24   : > { %935 = vmatprep.subr.bf16.mxu0 %v1040_v10  ;;  %994 = vmatprep.subr.bf16.mxu1 %v1040_v10 }
  0x27   : > { %936 = vmatpush3.bf16.msra.mxu0 %v1041_v12  ;;  %1002 = vmatpush3.bf16.msra.mxu1 %v1041_v12 }
  0x28   : > { %937 = vmatprep.subr.bf16.mxu0 %v1042_v14  ;;  %995 = vmatprep.subr.bf16.mxu1 %v1042_v14 }
  0x2b   : > { %938 = vmatpush3.bf16.msra.mxu0 %v1043_v15  ;;  %1003 = vmatpush3.bf16.msra.mxu1 %v1043_v15 }
  0x2c   : > { %939 = vmatprep.subr.bf16.mxu0 %v1044_v16  ;;  %996 = vmatprep.subr.bf16.mxu1 %v1044_v16 }
  0x2f   : > { %940 = vmatpush3.bf16.msra.mxu0 %v1045_v17  ;;  %1004 = vmatpush3.bf16.msra.mxu1 %v1045_v17 }
  0x32   : > { %546 = vmatmul.mubr.bf16.vlgmr.msra.gmra.mrb[0].mxu0 %v1046_v18  ;;  %578 = vmatmul.mubr.bf16.vlgmr.msra.gmra.mrb[0].mxu1 %v1052_v19 }
  0x33   : > { %553 = vmatprep.mubr.bf16.mxu0 %v1049_v20  ;;  %585 = vmatprep.mubr.bf16.mxu1 %v1058_v21 }
  0x3a   : > { %554 = vmatmul.mubr.bf16.gmra.mrb[4].mxu0 %v1051_v22  ;;  %586 = vmatmul.mubr.bf16.gmra.mrb[4].mxu1 %v1060_v23 }
  0x3b   : > { %561 = vmatprep.mubr.bf16.mxu0 %v1055_v24  ;;  %593 = vmatprep.mubr.bf16.mxu1 %v1064_v25 }
  0x42   : > { %562 = vmatmul.mubr.bf16.gmra.mrb[8].mxu0 %v1057_v26  ;;  %594 = vmatmul.mubr.bf16.gmra.mrb[8].mxu1 %v1066_v27 }
  0x43   : > { %569 = vmatprep.mubr.bf16.mxu0 %v1061_v28  ;;  %601 = vmatprep.mubr.bf16.mxu1 %v1067_v29 }
  0x4a   : > { %570 = vmatmul.mubr.bf16.gmra.mrb[12].mxu0 %v1063_v30  ;;  %602 = vmatmul.mubr.bf16.gmra.mrb[12].mxu1 %v1069_v31 }
 0x105   : > { %v941_v33 = vpop.f32.mrb[0].mxu0  ;;  %v965_v34 = vpop.f32.mrb[0].mxu1 }
 0x106   : > { %v942_v35 = vpop.f32.mrb[1].mxu0  ;;  %v966_v36 = vpop.f32.mrb[1].mxu1 }
 0x107   : > { %v943_v37 = vadd.f32 %v942_v35, %v941_v33  ;;  %v944_v38 = vpop.f32.mrb[2].mxu0  ;;  %v1208_v39 = vadd.f32 %v966_v36, %v965_v34  ;;  %v968_v40 = vpop.f32.mrb[2].mxu1 }
 0x108   : > { %v945_v41 = vpop.f32.mrb[3].mxu0  ;;  %v969_v42 = vpop.f32.mrb[3].mxu1 }
 0x109   : > { %611 = vst.msk [vmem:[%s1206_s9] sm:$0xff] %vm286_vm0, %v943_v37  ;;  %v662_v43 = vmul.f32 %v943_v37, %v943_v37  ;;  %v946_v44 = vadd.f32 %v945_v41, %v944_v38  ;;  %619 = vst.msk [vmem:[%s1206_s9 + $0x40] sm:$0xff] %vm286_vm0, %v1208_v39  ;;  %v1215_v45 = vadd.f32 %v969_v42, %v968_v40  ;;  %v628_v46 = vsel %vm286_vm0, %v943_v37, 0.0 }
 0x10b   : > { %612 = vst.msk [vmem:[%s1206_s9 + $0x8] sm:$0xff] %vm286_vm0, %v946_v44  ;;  %v629_v47 = vsel %vm286_vm0, %v946_v44, 0.0  ;;  %v663_v48 = vmul.f32 %v946_v44, %v946_v44  ;;  %620 = vst.msk [vmem:[%s1206_s9 + $0x48] sm:$0xff] %vm286_vm0, %v1215_v45  ;;  %v678_v50 = vsel %vm286_vm0, %v662_v43, 0.0 }
 0x10c   : > { %v630_v49 = vadd.f32 %v629_v47, %v628_v46 }
 0x10d   : > { %v679_v51 = vsel %vm286_vm0, %v663_v48, 0.0  ;;  %v947_v52 = vpop.f32.mrb[4].mxu0  ;;  %v971_v53 = vpop.f32.mrb[4].mxu1 }
 0x10e   : > { %v680_v54 = vadd.f32 %v679_v51, %v678_v50  ;;  %v948_v55 = vpop.f32.mrb[5].mxu0  ;;  %v972_v56 = vpop.f32.mrb[5].mxu1  ;;  %v670_v50 = vmul.f32 %v1208_v39, %v1208_v39 }
 0x10f   : > { %v949_v57 = vadd.f32 %v948_v55, %v947_v52  ;;  %v950_v58 = vpop.f32.mrb[6].mxu0  ;;  %v1226_v59 = vadd.f32 %v972_v56, %v971_v53  ;;  %v974_v60 = vpop.f32.mrb[6].mxu1  ;;  %v643_v56 = vsel %vm286_vm0, %v1208_v39, 0.0 }
 0x110   : > { %v951_v61 = vpop.f32.mrb[7].mxu0  ;;  %v975_v62 = vpop.f32.mrb[7].mxu1 }
 0x111   : > { %613 = vst.msk [vmem:[%s1206_s9 + $0x10] sm:$0xff] %vm286_vm0, %v949_v57  ;;  %v631_v63 = vsel %vm286_vm0, %v949_v57, 0.0  ;;  %v664_v0 = vmul.f32 %v949_v57, %v949_v57  ;;  %v952_v1 = vadd.f32 %v951_v61, %v950_v58  ;;  %621 = vst.msk [vmem:[%s1206_s9 + $0x50] sm:$0xff] %vm286_vm0, %v1226_v59  ;;  %v1234_v3 = vadd.f32 %v975_v62, %v974_v60 }
 0x112   : > { %v632_v2 = vadd.f32 %v631_v63, %v630_v49  ;;  %v671_v57 = vmul.f32 %v1215_v45, %v1215_v45  ;;  %v693_v62 = vsel %vm286_vm0, %v670_v50, 0.0  ;;  %v645_v63 = vsel %vm286_vm0, %v1215_v45, 0.0 }
 0x113   : > { %v681_v4 = vsel %vm286_vm0, %v664_v0, 0.0  ;;  %614 = vst.msk [vmem:[%s1206_s9 + $0x18] sm:$0xff] %vm286_vm0, %v952_v1  ;;  %v633_v5 = vsel %vm286_vm0, %v952_v1, 0.0  ;;  %v665_v6 = vmul.f32 %v952_v1, %v952_v1  ;;  %622 = vst.msk [vmem:[%s1206_s9 + $0x58] sm:$0xff] %vm286_vm0, %v1234_v3  ;;  %v672_v0 = vmul.f32 %v1226_v59, %v1226_v59 }
 0x114   : > { %v682_v7 = vadd.f32 %v681_v4, %v680_v54  ;;  %v634_v8 = vadd.f32 %v633_v5, %v632_v2  ;;  %v695_v4 = vsel %vm286_vm0, %v671_v57, 0.0  ;;  %v647_v39 = vsel %vm286_vm0, %v1226_v59, 0.0 }
 0x115   : > { %v683_v9 = vsel %vm286_vm0, %v665_v6, 0.0  ;;  %v953_v10 = vpop.f32.mrb[8].mxu0  ;;  %v977_v11 = vpop.f32.mrb[8].mxu1  ;;  %v673_v5 = vmul.f32 %v1234_v3, %v1234_v3  ;;  %v649_v45 = vsel %vm286_vm0, %v1234_v3, 0.0 }
 0x116   : > { %v684_v12 = vadd.f32 %v683_v9, %v682_v7  ;;  %v954_v13 = vpop.f32.mrb[9].mxu0  ;;  %v978_v14 = vpop.f32.mrb[9].mxu1 }
 0x117   : > { %v955_v15 = vadd.f32 %v954_v13, %v953_v10  ;;  %v956_v16 = vpop.f32.mrb[10].mxu0  ;;  %v1244_v17 = vadd.f32 %v978_v14, %v977_v11  ;;  %v980_v18 = vpop.f32.mrb[10].mxu1 }
 0x118   : > { %v957_v19 = vpop.f32.mrb[11].mxu0  ;;  %v981_v20 = vpop.f32.mrb[11].mxu1 }
 0x119   : > { %615 = vst.msk [vmem:[%s1206_s9 + $0x20] sm:$0xff] %vm286_vm0, %v955_v15  ;;  %v635_v21 = vsel %vm286_vm0, %v955_v15, 0.0  ;;  %v666_v22 = vmul.f32 %v955_v15, %v955_v15  ;;  %v958_v23 = vadd.f32 %v957_v19, %v956_v16  ;;  %623 = vst.msk [vmem:[%s1206_s9 + $0x60] sm:$0xff] %vm286_vm0, %v1244_v17  ;;  %v982_v25 = vadd.f32 %v981_v20, %v980_v18 }
 0x11a   : > { %v636_v24 = vadd.f32 %v635_v21, %v634_v8  ;;  %v697_v8 = vsel %vm286_vm0, %v672_v0, 0.0  ;;  %v674_v9 = vmul.f32 %v1244_v17, %v1244_v17  ;;  %v651_v59 = vsel %vm286_vm0, %v1244_v17, 0.0 }
 0x11b   : > { %v685_v26 = vsel %vm286_vm0, %v666_v22, 0.0  ;;  %616 = vst.msk [vmem:[%s1206_s9 + $0x28] sm:$0xff] %vm286_vm0, %v958_v23  ;;  %v637_v27 = vsel %vm286_vm0, %v958_v23, 0.0  ;;  %v667_v28 = vmul.f32 %v958_v23, %v958_v23  ;;  %624 = vst.msk [vmem:[%s1206_s9 + $0x68] sm:$0xff] %vm286_vm0, %v982_v25  ;;  %v675_v13 = vmul.f32 %v982_v25, %v982_v25 }
 0x11c   : > { %v686_v29 = vadd.f32 %v685_v26, %v684_v12  ;;  %v638_v30 = vadd.f32 %v637_v27, %v636_v24  ;;  %v699_v12 = vsel %vm286_vm0, %v673_v5, 0.0  ;;  %v701_v18 = vsel %vm286_vm0, %v674_v9, 0.0  ;;  %v627_v27 = vld [vmem:[%s1191_s29] sm:$0xff] }
 0x11d   : > { %v687_v31 = vsel %vm286_vm0, %v667_v28, 0.0  ;;  %v959_v32 = vpop.f32.mrb[12].mxu0  ;;  %v983_v33 = vpop.f32.mrb[12].mxu1  ;;  %v653_v3 = vsel %vm286_vm0, %v982_v25, 0.0  ;;  %v703_v22 = vsel %vm286_vm0, %v675_v13, 0.0 }
 0x11e   : > { %v688_v34 = vadd.f32 %v687_v31, %v686_v29  ;;  %v960_v35 = vpop.f32.mrb[13].mxu0  ;;  %v984_v36 = vpop.f32.mrb[13].mxu1  ;;  %v661_v31 = vld [vmem:[%s1198_s6] sm:$0xff] }
 0x11f   : > { %v961_v37 = vadd.f32 %v960_v35, %v959_v32  ;;  %v962_v38 = vpop.f32.mrb[14].mxu0  ;;  %v985_v40 = vadd.f32 %v984_v36, %v983_v33  ;;  %v986_v41 = vpop.f32.mrb[14].mxu1 }
 0x120   : > { %v963_v42 = vpop.f32.mrb[15].mxu0  ;;  %v987_v43 = vpop.f32.mrb[15].mxu1 }
 0x121   : > { %617 = vst.msk [vmem:[%s1206_s9 + $0x30] sm:$0xff] %vm286_vm0, %v961_v37  ;;  %v639_v44 = vsel %vm286_vm0, %v961_v37, 0.0  ;;  %v668_v46 = vmul.f32 %v961_v37, %v961_v37  ;;  %v964_v47 = vadd.f32 %v963_v42, %v962_v38  ;;  %625 = vst.msk [vmem:[%s1206_s9 + $0x70] sm:$0xff] %vm286_vm0, %v985_v40  ;;  %v988_v49 = vadd.f32 %v987_v43, %v986_v41 }
 0x122   : > { %v640_v48 = vadd.f32 %v639_v44, %v638_v30  ;;  %v676_v14 = vmul.f32 %v985_v40, %v985_v40  ;;  %v655_v19 = vsel %vm286_vm0, %v985_v40, 0.0 }
 0x123   : > { %v689_v51 = vsel %vm286_vm0, %v668_v46, 0.0  ;;  %618 = vst.msk [vmem:[%s1206_s9 + $0x38] sm:$0xff] %vm286_vm0, %v964_v47  ;;  %v641_v52 = vsel %vm286_vm0, %v964_v47, 0.0  ;;  %v669_v53 = vmul.f32 %v964_v47, %v964_v47  ;;  %626 = vst.msk [vmem:[%s1206_s9 + $0x78] sm:$0xff] %vm286_vm0, %v988_v49  ;;  %v677_v17 = vmul.f32 %v988_v49, %v988_v49 }
 0x124   : > { %v690_v54 = vadd.f32 %v689_v51, %v688_v34  ;;  %v642_v55 = vadd.f32 %v641_v52, %v640_v48  ;;  %v705_v23 = vsel %vm286_vm0, %v676_v14, 0.0  ;;  %v657_v28 = vsel %vm286_vm0, %v988_v49, 0.0 }
 0x125   : > { %v691_v58 = vsel %vm286_vm0, %v669_v53, 0.0  ;;  %v707_v25 = vsel %vm286_vm0, %v677_v17, 0.0 }
 0x126   : > { %v644_v60 = vadd.f32 %v643_v56, %v642_v55  ;;  %v692_v61 = vadd.f32 %v691_v58, %v690_v54 }
 0x128   : > { %v646_v1 = vadd.f32 %v645_v63, %v644_v60  ;;  %v694_v2 = vadd.f32 %v693_v62, %v692_v61 }
 0x12a   : > { %v696_v6 = vadd.f32 %v695_v4, %v694_v2  ;;  %v648_v7 = vadd.f32 %v647_v39, %v646_v1 }
 0x12c   : > { %v650_v10 = vadd.f32 %v649_v45, %v648_v7  ;;  %v698_v11 = vadd.f32 %v697_v8, %v696_v6 }
 0x12e   : > { %v652_v15 = vadd.f32 %v651_v59, %v650_v10  ;;  %v700_v16 = vadd.f32 %v699_v12, %v698_v11 }
 0x130   : > { %v702_v20 = vadd.f32 %v701_v18, %v700_v16  ;;  %v654_v21 = vadd.f32 %v653_v3, %v652_v15 }
 0x132   : > { %v704_v24 = vadd.f32 %v703_v22, %v702_v20  ;;  %v656_v26 = vadd.f32 %v655_v19, %v654_v21 }
 0x134   : > { %v706_v29 = vadd.f32 %v705_v23, %v704_v24  ;;  %v658_v30 = vadd.f32 %v657_v28, %v656_v26 }
 0x136   : > { %v659_v32 = vadd.f32 %v658_v30, %v627_v27  ;;  %v708_v33 = vadd.f32 %v707_v25, %v706_v29 }
 0x138   : > { %660 = vst.msk [vmem:[%s1191_s29] sm:$0xff] %vm286_vm0, %v659_v32  ;;  %v709_v34 = vadd.f32 %v708_v33, %v661_v31 }
 0x13a   : > { %710 = vst.msk [vmem:[%s1198_s6] sm:$0xff] %vm286_vm0, %v709_v34 }
 0x13b PF: > { %s15_s17 = sadd.s32 1, %s1092_s17   ;;  %s1322_s15 = smov %s1088_s16 }
 0x13c   : > { %p12_p5 = scmp.ge.s32.totalorder %s15_s17, 6   ;;  %s1323_s16 = smov %s1325_s18 }
 0x13e   :  { %14 = sbr.rel (!%p12_p5) target bundleno = 2 (0x2), region = 89 }

// kernel: decoder64x64_forward.14
= control target key start
LH: loop header
LB: loop body
LE: loop exit
PB: predicated region body
PF: predicated region fallthrough
CT: control target
= control target key end

     0   :  { %s391_s0 = inlined_call_operand.vmem [shape: f32[128,128], index: 0, kind: input, shape index: {}]   ;;  %s392_s1 = inlined_call_operand.vmem [shape: f32[1,128], index: 1, kind: input, shape index: {}]   ;;  %s393_s2 = inlined_call_operand.vmem [shape: f32[1,128], index: 2, kind: input, shape index: {}]   ;;  %s394_s3 = inlined_call_operand.vmem [shape: bf16[128,128], index: 3, kind: output, shape index: {}]  }
   0x1   :  { %v14_v0 = vld [vmem:[%s391_s0] sm:$0xff]  ;;  %v15_v1 = vld [vmem:[%s391_s0 + $0x8] sm:$0xff]  ;;  %v16_v6 = vld [vmem:[%s391_s0 + $0x10] sm:$0xff] }
   0x2   :  { %v286_v2 = vld [vmem:[%s392_s1] ss:$0 sm:$0xff]  ;;  %v17_v7 = vld [vmem:[%s391_s0 + $0x18] sm:$0xff]  ;;  %v19_v11 = vld [vmem:[%s391_s0 + $0x28] sm:$0xff] }
   0x3   :  { %v37_v3 = vmul.f32 %v286_v2, %v14_v0  ;;  %v38_v4 = vmul.f32 %v286_v2, %v15_v1  ;;  %v293_v5 = vld [vmem:[%s393_s2] ss:$0 sm:$0xff]  ;;  %v39_v8 = vmul.f32 %v286_v2, %v16_v6  ;;  %v40_v9 = vmul.f32 %v286_v2, %v17_v7  ;;  %v20_v12 = vld [vmem:[%s391_s0 + $0x30] sm:$0xff]  ;;  %v21_v17 = vld [vmem:[%s391_s0 + $0x38] sm:$0xff] }
   0x4   :  { %v18_v10 = vld [vmem:[%s391_s0 + $0x20] sm:$0xff]  ;;  %v42_v16 = vmul.f32 %v286_v2, %v19_v11  ;;  %v43_v20 = vmul.f32 %v286_v2, %v20_v12  ;;  %v44_v21 = vmul.f32 %v286_v2, %v21_v17  ;;  %v23_v27 = vld [vmem:[%s391_s0 + $0x48] sm:$0xff]  ;;  %v24_v32 = vld [vmem:[%s391_s0 + $0x50] sm:$0xff] }
   0x5   :  { %v60_v13 = vadd.f32 %v293_v5, %v37_v3  ;;  %v61_v14 = vadd.f32 %v293_v5, %v38_v4  ;;  %v41_v15 = vmul.f32 %v286_v2, %v18_v10  ;;  %v62_v18 = vadd.f32 %v293_v5, %v39_v8  ;;  %v22_v22 = vld [vmem:[%s391_s0 + $0x40] sm:$0xff]  ;;  %v25_v33 = vld [vmem:[%s391_s0 + $0x58] sm:$0xff]  ;;  %v27_v39 = vld [vmem:[%s391_s0 + $0x68] sm:$0xff] }
   0x6   :  { %v63_v19 = vadd.f32 %v293_v5, %v40_v9  ;;  %v65_v26 = vadd.f32 %v293_v5, %v42_v16  ;;  %v66_v30 = vadd.f32 %v293_v5, %v43_v20  ;;  %v67_v31 = vadd.f32 %v293_v5, %v44_v21  ;;  %v26_v38 = vld [vmem:[%s391_s0 + $0x60] sm:$0xff]  ;;  %v28_v44 = vld [vmem:[%s391_s0 + $0x70] sm:$0xff]  ;;  %v29_v49 = vld [vmem:[%s391_s0 + $0x78] sm:$0xff] }
   0x7   :  { %v76_v23 = vmax.f32 %v60_v13, 0.0  ;;  %v77_v24 = vmax.f32 %v61_v14, 0.0  ;;  %v64_v25 = vadd.f32 %v293_v5, %v41_v15  ;;  %v78_v28 = vmax.f32 %v62_v18, 0.0 }
   0x8   :  { %v79_v29 = vmax.f32 %v63_v19, 0.0  ;;  %v81_v36 = vmax.f32 %v65_v26, 0.0  ;;  %v45_v37 = vmul.f32 %v286_v2, %v22_v22  ;;  %v82_v41 = vmax.f32 %v66_v30, 0.0 }
   0x9   :  { %v213_v34 = vpack.c.bf16 %v77_v24, %v76_v23  ;;  %v80_v35 = vmax.f32 %v64_v25, 0.0  ;;  %v83_v42 = vmax.f32 %v67_v31, 0.0  ;;  %v46_v43 = vmul.f32 %v286_v2, %v23_v27 }
   0xa   :  { %v218_v40 = vpack.c.bf16 %v79_v29, %v78_v28  ;;  %v68_v46 = vadd.f32 %v293_v5, %v45_v37  ;;  %v47_v47 = vmul.f32 %v286_v2, %v24_v32  ;;  %v48_v48 = vmul.f32 %v286_v2, %v25_v33 }
   0xb   :  { %214 = vst [vmem:[%s394_s3] sm:$0xff] %v213_v34   ;;  %v223_v45 = vpack.c.bf16 %v81_v36, %v80_v35  ;;  %v228_v50 = vpack.c.bf16 %v83_v42, %v82_v41  ;;  %v69_v51 = vadd.f32 %v293_v5, %v46_v43  ;;  %v49_v52 = vmul.f32 %v286_v2, %v26_v38 }
   0xc   :  { %250 = vst [vmem:[%s394_s3 + $0x8] sm:$0xff] %v218_v40   ;;  %v50_v53 = vmul.f32 %v286_v2, %v27_v39  ;;  %v84_v54 = vmax.f32 %v68_v46, 0.0  ;;  %v70_v55 = vadd.f32 %v293_v5, %v47_v47  ;;  %v71_v56 = vadd.f32 %v293_v5, %v48_v48 }
   0xd   :  { %251 = vst [vmem:[%s394_s3 + $0x10] sm:$0xff] %v223_v45   ;;  %v51_v57 = vmul.f32 %v286_v2, %v28_v44  ;;  %252 = vst [vmem:[%s394_s3 + $0x18] sm:$0xff] %v228_v50   ;;  %v85_v58 = vmax.f32 %v69_v51, 0.0  ;;  %v72_v59 = vadd.f32 %v293_v5, %v49_v52  ;;  %v52_v61 = vmul.f32 %v286_v2, %v29_v49 }
   0xe   :  { %v73_v60 = vadd.f32 %v293_v5, %v50_v53  ;;  %v86_v62 = vmax.f32 %v70_v55, 0.0  ;;  %v87_v63 = vmax.f32 %v71_v56, 0.0 }
   0xf   :  { %v74_v0 = vadd.f32 %v293_v5, %v51_v57  ;;  %v233_v1 = vpack.c.bf16 %v85_v58, %v84_v54  ;;  %v88_v3 = vmax.f32 %v72_v59, 0.0  ;;  %v75_v6 = vadd.f32 %v293_v5, %v52_v61 }
  0x10   :  { %v89_v4 = vmax.f32 %v73_v60, 0.0  ;;  %v238_v7 = vpack.c.bf16 %v87_v63, %v86_v62 }
  0x11   :  { %v90_v8 = vmax.f32 %v74_v0, 0.0  ;;  %253 = vst [vmem:[%s394_s3 + $0x20] sm:$0xff] %v233_v1   ;;  %v91_v10 = vmax.f32 %v75_v6, 0.0 }
  0x12   :  { %v243_v9 = vpack.c.bf16 %v89_v4, %v88_v3  ;;  %254 = vst [vmem:[%s394_s3 + $0x28] sm:$0xff] %v238_v7  }
  0x13   :  { %v248_v2 = vpack.c.bf16 %v91_v10, %v90_v8 }
  0x14   :  { %255 = vst [vmem:[%s394_s3 + $0x30] sm:$0xff] %v243_v9  }
  0x15   :  { %256 = vst [vmem:[%s394_s3 + $0x38] sm:$0xff] %v248_v2  }

// kernel: decoder64x64_forward.15
= control target key start
LH: loop header
LB: loop body
LE: loop exit
PB: predicated region body
PF: predicated region fallthrough
CT: control target
= control target key end

     0   :  { %s1754_s15 = smov 0   ;;  %s1756_s16 = smov 0   ;;  %s2310_s0 = inlined_call_operand.vmem [shape: bf16[4,512,128], index: 0, kind: input, shape index: {}]   ;;  %s2311_s1 = inlined_call_operand.vmem [shape: bf16[4,128,16], index: 1, kind: input, shape index: {}]   ;;  %s2312_s2 = inlined_call_operand.vmem [shape: f32[4,512,16], index: 2, kind: output, shape index: {0}]   ;;  %s2313_s3 = inlined_call_operand.vmem [shape: f32[4,8,16], index: 3, kind: output, shape index: {1}]   ;;  %s2314_s4 = inlined_call_operand.vmem [shape: f32[4,8,16], index: 4, kind: output, shape index: {2}]  }
   0x1   :  { %s1758_s17 = smov 0  }
   0x2 LB: > { %s27_s18 = sadd.s32 1, %s1722_s16  ;;  %p1449_p0 = scmp.ge.s32.totalorder %s1726_s17, 1  ;;  %s1726_s17 = sphi %s1758_s17, %s15_s17   ;;  %s1722_s16 = sphi %s1756_s16, %s2316_s16   ;;  %s1718_s15 = sphi %s1754_s15, %s2315_s15  }
   0x3   : > { %p29_p1 = scmp.ge.s32.totalorder %s27_s18, 4  ;;  %p198_p2 = scmp.lt.s32.totalorder %s1726_s17, 5 }
   0x5   : > { %s2318_s18 = smov (%p29_p1, %s27_s18), 0  ;;  %p199_p3 = pnand %p1449_p0, %p198_p2 }
   0x6   : > { %p246_p4 = scmp.lt.s32.totalorder (!%p199_p3), %s1718_s15, 3  ;;  %vm283_vm0 = vcmask (!%p199_p3), 130048   ;;  %v1728_v40 = vmov (!%p199_p3), 0.0  }
   0x7   : > { %202 = sbr.rel (%p199_p3) target bundleno = 397 (0x18d), region = 28 }
   0xe   : > { %s2320_s15 = smov (!%p246_p4, %s1718_s15), 3 }
   0xf   : > { %s1501_s19 = sshll.u32 %s2320_s15, 6  ;;  %s1500_s23 = sshll.u32 %s2320_s15, 8 }
  0x10   : > { %s1778_s22 = scalar_lea.vmem %s2311_s1, %s1501_s19  ;;  %s1787_s26 = scalar_lea.vmem %s2310_s0, %s1500_s23 }
  0x11   : > { %v1664_v0 = vld [vmem:[%s1778_s22] sm:$0xff]   ;;  %v1665_v1 = vld [vmem:[%s1778_s22 + $0x8] sm:$0xff]   ;;  %v1666_v2 = vld [vmem:[%s1778_s22 + $0x10] sm:$0xff]   ;;  %s1456_s27 = sshll.u32 %s2320_s15, 3  ;;  %s1502_s28 = sshll.u32 %s2320_s15, 9 }
  0x12   : > { %1543 = vmatprep.subr.bf16.mxu0 %v1664_v0  ;;  %1623 = vmatprep.subr.bf16.mxu1 %v1664_v0  ;;  %v1667_v3 = vld [vmem:[%s1778_s22 + $0x18] sm:$0xff]   ;;  %v1672_v4 = vld [vmem:[%s1787_s26] sm:$0xff]   ;;  %v1669_v6 = vld [vmem:[%s1778_s22 + $0x28] sm:$0xff]   ;;  %s1831_s5 = scalar_lea.vmem %s2313_s3, %s1456_s27  ;;  %s1838_s8 = scalar_lea.vmem %s2314_s4, %s1456_s27 }
  0x13   : > { %1544 = vmatpush3.bf16.msra.mxu0 %v1664_v0  ;;  %1631 = vmatpush3.bf16.msra.mxu1 %v1664_v0  ;;  %v1668_v5 = vld [vmem:[%s1778_s22 + $0x20] sm:$0xff]   ;;  %v1670_v7 = vld [vmem:[%s1778_s22 + $0x30] sm:$0xff]   ;;  %v1671_v8 = vld [vmem:[%s1778_s22 + $0x38] sm:$0xff]   ;;  %284 = vst.msk [vmem:[%s1831_s5] sm:$0xff] %vm283_vm0, %v1728_v40  ;;  %s1843_s11 = scalar_lea.vmem %s2312_s2, %s1502_s28 }
  0x14   : > { %1545 = vmatprep.subr.bf16.mxu0 %v1665_v1  ;;  %1624 = vmatprep.subr.bf16.mxu1 %v1665_v1  ;;  %v1688_v9 = vld [vmem:[%s1787_s26 + $0x80] sm:$0xff]   ;;  %v1673_v10 = vld [vmem:[%s1787_s26 + $0x8] sm:$0xff]   ;;  %v1674_v11 = vld [vmem:[%s1787_s26 + $0x10] sm:$0xff]   ;;  %285 = vst.msk [vmem:[%s1838_s8] sm:$0xff] %vm283_vm0, %v1728_v40 }
  0x15   : > { %1559 = vmatprep.mubr.bf16.mxu0 %v1672_v4  ;;  %1591 = vmatprep.mubr.bf16.mxu1 %v1688_v9  ;;  %v1689_v12 = vld [vmem:[%s1787_s26 + $0x88] sm:$0xff]   ;;  %v1690_v13 = vld [vmem:[%s1787_s26 + $0x90] sm:$0xff]   ;;  %v1675_v14 = vld [vmem:[%s1787_s26 + $0x18] sm:$0xff]  }
  0x16   : > { %v1676_v15 = vld [vmem:[%s1787_s26 + $0x20] sm:$0xff]   ;;  %v1691_v16 = vld [vmem:[%s1787_s26 + $0x98] sm:$0xff]   ;;  %v1677_v18 = vld [vmem:[%s1787_s26 + $0x28] sm:$0xff]  }
  0x17   : > { %1546 = vmatpush3.bf16.msra.mxu0 %v1665_v1  ;;  %1632 = vmatpush3.bf16.msra.mxu1 %v1665_v1  ;;  %v1692_v17 = vld [vmem:[%s1787_s26 + $0xa0] sm:$0xff]   ;;  %v1693_v19 = vld [vmem:[%s1787_s26 + $0xa8] sm:$0xff]   ;;  %v1678_v20 = vld [vmem:[%s1787_s26 + $0x30] sm:$0xff]  }
  0x18   : > { %1547 = vmatprep.subr.bf16.mxu0 %v1666_v2  ;;  %1625 = vmatprep.subr.bf16.mxu1 %v1666_v2  ;;  %v1694_v21 = vld [vmem:[%s1787_s26 + $0xb0] sm:$0xff]   ;;  %v1679_v22 = vld [vmem:[%s1787_s26 + $0x38] sm:$0xff]   ;;  %v1680_v24 = vld [vmem:[%s1787_s26 + $0x40] sm:$0xff]  }
  0x19   : > { %v1695_v23 = vld [vmem:[%s1787_s26 + $0xb8] sm:$0xff]   ;;  %v1696_v25 = vld [vmem:[%s1787_s26 + $0xc0] sm:$0xff]   ;;  %v1681_v26 = vld [vmem:[%s1787_s26 + $0x48] sm:$0xff]  }
  0x1a   : > { %v1697_v27 = vld [vmem:[%s1787_s26 + $0xc8] sm:$0xff]   ;;  %v1682_v28 = vld [vmem:[%s1787_s26 + $0x50] sm:$0xff]   ;;  %v1683_v30 = vld [vmem:[%s1787_s26 + $0x58] sm:$0xff]  }
  0x1b   : > { %1548 = vmatpush3.bf16.msra.mxu0 %v1666_v2  ;;  %1633 = vmatpush3.bf16.msra.mxu1 %v1666_v2  ;;  %v1698_v29 = vld [vmem:[%s1787_s26 + $0xd0] sm:$0xff]   ;;  %v1699_v31 = vld [vmem:[%s1787_s26 + $0xd8] sm:$0xff]   ;;  %v1684_v32 = vld [vmem:[%s1787_s26 + $0x60] sm:$0xff]  }
  0x1c   : > { %1549 = vmatprep.subr.bf16.mxu0 %v1667_v3  ;;  %1626 = vmatprep.subr.bf16.mxu1 %v1667_v3  ;;  %v1700_v33 = vld [vmem:[%s1787_s26 + $0xe0] sm:$0xff]   ;;  %v1685_v34 = vld [vmem:[%s1787_s26 + $0x68] sm:$0xff]   ;;  %v1686_v36 = vld [vmem:[%s1787_s26 + $0x70] sm:$0xff]  }
  0x1d   : > { %v1701_v35 = vld [vmem:[%s1787_s26 + $0xe8] sm:$0xff]   ;;  %v1702_v37 = vld [vmem:[%s1787_s26 + $0xf0] sm:$0xff]   ;;  %v1687_v38 = vld [vmem:[%s1787_s26 + $0x78] sm:$0xff]  }
  0x1e   : > { %v1703_v39 = vld [vmem:[%s1787_s26 + $0xf8] sm:$0xff]  }
  0x1f   : > { %1550 = vmatpush3.bf16.msra.mxu0 %v1667_v3  ;;  %1634 = vmatpush3.bf16.msra.mxu1 %v1667_v3 }
  0x20   : > { %1551 = vmatprep.subr.bf16.mxu0 %v1668_v5  ;;  %1627 = vmatprep.subr.bf16.mxu1 %v1668_v5 }
  0x23   : > { %1552 = vmatpush3.bf16.msra.mxu0 %v1668_v5  ;;  %1635 = vmatpush3.bf16.msra.mxu1 %v1668_v5 }
  0x24   : > { %1553 = vmatprep.subr.bf16.mxu0 %v1669_v6  ;;  %1628 = vmatprep.subr.bf16.mxu1 %v1669_v6 }
  0x27   : > { %1554 = vmatpush3.bf16.msra.mxu0 %v1669_v6  ;;  %1636 = vmatpush3.bf16.msra.mxu1 %v1669_v6 }
  0x28   : > { %1555 = vmatprep.subr.bf16.mxu0 %v1670_v7  ;;  %1629 = vmatprep.subr.bf16.mxu1 %v1670_v7 }
  0x2b   : > { %1556 = vmatpush3.bf16.msra.mxu0 %v1670_v7  ;;  %1637 = vmatpush3.bf16.msra.mxu1 %v1670_v7 }
  0x2c   : > { %1557 = vmatprep.subr.bf16.mxu0 %v1671_v8  ;;  %1630 = vmatprep.subr.bf16.mxu1 %v1671_v8 }
  0x2f   : > { %1558 = vmatpush3.bf16.msra.mxu0 %v1671_v8  ;;  %1638 = vmatpush3.bf16.msra.mxu1 %v1671_v8 }
  0x32   : > { %1560 = vmatmul.mubr.bf16.vlgmr.msra.gmra.mrb[0].mxu0 %v1673_v10  ;;  %1592 = vmatmul.mubr.bf16.vlgmr.msra.gmra.mrb[0].mxu1 %v1689_v12 }
  0x33   : > { %1563 = vmatprep.mubr.bf16.mxu0 %v1674_v11  ;;  %1595 = vmatprep.mubr.bf16.mxu1 %v1690_v13 }
  0x3a   : > { %1564 = vmatmul.mubr.bf16.gmra.mrb[4].mxu0 %v1675_v14  ;;  %1596 = vmatmul.mubr.bf16.gmra.mrb[4].mxu1 %v1691_v16 }
  0x3b   : > { %1567 = vmatprep.mubr.bf16.mxu0 %v1676_v15  ;;  %1599 = vmatprep.mubr.bf16.mxu1 %v1692_v17 }
  0x42   : > { %1568 = vmatmul.mubr.bf16.gmra.mrb[8].mxu0 %v1677_v18  ;;  %1600 = vmatmul.mubr.bf16.gmra.mrb[8].mxu1 %v1693_v19 }
  0x43   : > { %1571 = vmatprep.mubr.bf16.mxu0 %v1678_v20  ;;  %1603 = vmatprep.mubr.bf16.mxu1 %v1694_v21 }
  0x4a   : > { %1572 = vmatmul.mubr.bf16.gmra.mrb[12].mxu0 %v1679_v22  ;;  %1604 = vmatmul.mubr.bf16.gmra.mrb[12].mxu1 %v1695_v23 }
  0x4b   : > { %1575 = vmatprep.mubr.bf16.mxu0 %v1680_v24  ;;  %1607 = vmatprep.mubr.bf16.mxu1 %v1696_v25 }
  0x52   : > { %1576 = vmatmul.mubr.bf16.gmra.mrb[16].mxu0 %v1681_v26  ;;  %1608 = vmatmul.mubr.bf16.gmra.mrb[16].mxu1 %v1697_v27 }
  0x53   : > { %1579 = vmatprep.mubr.bf16.mxu0 %v1682_v28  ;;  %1611 = vmatprep.mubr.bf16.mxu1 %v1698_v29 }
  0x5a   : > { %1580 = vmatmul.mubr.bf16.gmra.mrb[20].mxu0 %v1683_v30  ;;  %1612 = vmatmul.mubr.bf16.gmra.mrb[20].mxu1 %v1699_v31 }
  0x5b   : > { %1583 = vmatprep.mubr.bf16.mxu0 %v1684_v32  ;;  %1615 = vmatprep.mubr.bf16.mxu1 %v1700_v33 }
  0x62   : > { %1584 = vmatmul.mubr.bf16.gmra.mrb[24].mxu0 %v1685_v34  ;;  %1616 = vmatmul.mubr.bf16.gmra.mrb[24].mxu1 %v1701_v35 }
  0x63   : > { %1587 = vmatprep.mubr.bf16.mxu0 %v1686_v36  ;;  %1619 = vmatprep.mubr.bf16.mxu1 %v1702_v37 }
  0x6a   : > { %1588 = vmatmul.mubr.bf16.gmra.mrb[28].mxu0 %v1687_v38  ;;  %1620 = vmatmul.mubr.bf16.gmra.mrb[28].mxu1 %v1703_v39 }
 0x105   : > { %v1561_v41 = vpop.f32.mrb[0].mxu0  ;;  %v1847_v42 = vpop.f32.mrb[0].mxu1 }
 0x106   : > { %898 = vst.msk [vmem:[%s1843_s11 + $0x10] sm:$0xff] %vm283_vm0, %v1561_v41  ;;  %v640_v43 = vpop.f32.mrb[1].mxu0  ;;  %930 = vst.msk [vmem:[%s1843_s11 + $0x110] sm:$0xff] %vm283_vm0, %v1847_v42  ;;  %v1854_v44 = vpop.f32.mrb[1].mxu1  ;;  %v1093_v50 = vmul.f32 %v1561_v41, %v1561_v41  ;;  %v964_v55 = vsel %vm283_vm0, %v1561_v41, 0.0 }
 0x107   : > { %896 = vst.msk [vmem:[%s1843_s11] sm:$0xff] %vm283_vm0, %v640_v43  ;;  %v1091_v45 = vmul.f32 %v640_v43, %v640_v43  ;;  %v1562_v46 = vpop.f32.mrb[2].mxu0  ;;  %928 = vst.msk [vmem:[%s1843_s11 + $0x100] sm:$0xff] %vm283_vm0, %v1854_v44  ;;  %v1861_v47 = vpop.f32.mrb[2].mxu1  ;;  %v961_v51 = vsel %vm283_vm0, %v640_v43, 0.0 }
 0x108   : > { %899 = vst.msk [vmem:[%s1843_s11 + $0x18] sm:$0xff] %vm283_vm0, %v1562_v46  ;;  %v643_v48 = vpop.f32.mrb[3].mxu0  ;;  %931 = vst.msk [vmem:[%s1843_s11 + $0x118] sm:$0xff] %vm283_vm0, %v1861_v47  ;;  %v1868_v49 = vpop.f32.mrb[3].mxu1  ;;  %v1094_v57 = vmul.f32 %v1562_v46, %v1562_v46  ;;  %v1158_v61 = vsel %vm283_vm0, %v1093_v50, 0.0  ;;  %v966_v62 = vsel %vm283_vm0, %v1562_v46, 0.0 }
 0x109   : > { %897 = vst.msk [vmem:[%s1843_s11 + $0x8] sm:$0xff] %vm283_vm0, %v643_v48  ;;  %v962_v52 = vsel %vm283_vm0, %v643_v48, 0.0  ;;  %v1092_v53 = vmul.f32 %v643_v48, %v643_v48  ;;  %929 = vst.msk [vmem:[%s1843_s11 + $0x108] sm:$0xff] %vm283_vm0, %v1868_v49  ;;  %v1155_v56 = vsel %vm283_vm0, %v1091_v45, 0.0 }
 0x10a   : > { %v963_v54 = vadd.f32 %v962_v52, %v961_v51  ;;  %v1160_v5 = vsel %vm283_vm0, %v1094_v57, 0.0 }
 0x10b   : > { %v1156_v58 = vsel %vm283_vm0, %v1092_v53, 0.0 }
 0x10c   : > { %v965_v59 = vadd.f32 %v964_v55, %v963_v54  ;;  %v1157_v60 = vadd.f32 %v1156_v58, %v1155_v56 }
 0x10d   : > { %v1565_v63 = vpop.f32.mrb[4].mxu0  ;;  %v1882_v0 = vpop.f32.mrb[4].mxu1 }
 0x10e   : > { %v1159_v1 = vadd.f32 %v1158_v61, %v1157_v60  ;;  %902 = vst.msk [vmem:[%s1843_s11 + $0x30] sm:$0xff] %vm283_vm0, %v1565_v63  ;;  %v656_v2 = vpop.f32.mrb[5].mxu0  ;;  %v967_v3 = vadd.f32 %v966_v62, %v965_v59  ;;  %934 = vst.msk [vmem:[%s1843_s11 + $0x130] sm:$0xff] %vm283_vm0, %v1882_v0  ;;  %v1889_v4 = vpop.f32.mrb[5].mxu1  ;;  %v1097_v14 = vmul.f32 %v1565_v63, %v1565_v63  ;;  %v972_v20 = vsel %vm283_vm0, %v1565_v63, 0.0 }
 0x10f   : > { %900 = vst.msk [vmem:[%s1843_s11 + $0x20] sm:$0xff] %vm283_vm0, %v656_v2  ;;  %v968_v6 = vsel %vm283_vm0, %v656_v2, 0.0  ;;  %v1095_v7 = vmul.f32 %v656_v2, %v656_v2  ;;  %v1566_v8 = vpop.f32.mrb[6].mxu0  ;;  %932 = vst.msk [vmem:[%s1843_s11 + $0x120] sm:$0xff] %vm283_vm0, %v1889_v4  ;;  %v1898_v9 = vpop.f32.mrb[6].mxu1 }
 0x110   : > { %v969_v10 = vadd.f32 %v968_v6, %v967_v3  ;;  %v1161_v11 = vadd.f32 %v1160_v5, %v1159_v1  ;;  %903 = vst.msk [vmem:[%s1843_s11 + $0x38] sm:$0xff] %vm283_vm0, %v1566_v8  ;;  %v659_v12 = vpop.f32.mrb[7].mxu0  ;;  %935 = vst.msk [vmem:[%s1843_s11 + $0x138] sm:$0xff] %vm283_vm0, %v1898_v9  ;;  %v1905_v13 = vpop.f32.mrb[7].mxu1  ;;  %v1098_v21 = vmul.f32 %v1566_v8, %v1566_v8  ;;  %v1166_v25 = vsel %vm283_vm0, %v1097_v14, 0.0 }
 0x111   : > { %v1162_v15 = vsel %vm283_vm0, %v1095_v7, 0.0  ;;  %901 = vst.msk [vmem:[%s1843_s11 + $0x28] sm:$0xff] %vm283_vm0, %v659_v12  ;;  %v970_v16 = vsel %vm283_vm0, %v659_v12, 0.0  ;;  %v1096_v17 = vmul.f32 %v659_v12, %v659_v12  ;;  %933 = vst.msk [vmem:[%s1843_s11 + $0x128] sm:$0xff] %vm283_vm0, %v1905_v13  ;;  %v974_v26 = vsel %vm283_vm0, %v1566_v8, 0.0 }
 0x112   : > { %v1163_v18 = vadd.f32 %v1162_v15, %v1161_v11  ;;  %v971_v19 = vadd.f32 %v970_v16, %v969_v10  ;;  %v1168_v33 = vsel %vm283_vm0, %v1098_v21, 0.0 }
 0x113   : > { %v1164_v22 = vsel %vm283_vm0, %v1096_v17, 0.0 }
 0x114   : > { %v973_v23 = vadd.f32 %v972_v20, %v971_v19  ;;  %v1165_v24 = vadd.f32 %v1164_v22, %v1163_v18 }
 0x115   : > { %v1569_v27 = vpop.f32.mrb[8].mxu0  ;;  %v1918_v28 = vpop.f32.mrb[8].mxu1 }
 0x116   : > { %v1167_v29 = vadd.f32 %v1166_v25, %v1165_v24  ;;  %906 = vst.msk [vmem:[%s1843_s11 + $0x50] sm:$0xff] %vm283_vm0, %v1569_v27  ;;  %v672_v30 = vpop.f32.mrb[9].mxu0  ;;  %v975_v31 = vadd.f32 %v974_v26, %v973_v23  ;;  %938 = vst.msk [vmem:[%s1843_s11 + $0x150] sm:$0xff] %vm283_vm0, %v1918_v28  ;;  %v1925_v32 = vpop.f32.mrb[9].mxu1  ;;  %v1101_v43 = vmul.f32 %v1569_v27, %v1569_v27  ;;  %v980_v52 = vsel %vm283_vm0, %v1569_v27, 0.0 }
 0x117   : > { %904 = vst.msk [vmem:[%s1843_s11 + $0x40] sm:$0xff] %vm283_vm0, %v672_v30  ;;  %v976_v34 = vsel %vm283_vm0, %v672_v30, 0.0  ;;  %v1099_v35 = vmul.f32 %v672_v30, %v672_v30  ;;  %v1570_v36 = vpop.f32.mrb[10].mxu0  ;;  %936 = vst.msk [vmem:[%s1843_s11 + $0x140] sm:$0xff] %vm283_vm0, %v1925_v32  ;;  %v1934_v37 = vpop.f32.mrb[10].mxu1 }
 0x118   : > { %v977_v38 = vadd.f32 %v976_v34, %v975_v31  ;;  %v1169_v39 = vadd.f32 %v1168_v33, %v1167_v29  ;;  %907 = vst.msk [vmem:[%s1843_s11 + $0x58] sm:$0xff] %vm283_vm0, %v1570_v36  ;;  %v675_v40 = vpop.f32.mrb[11].mxu0  ;;  %939 = vst.msk [vmem:[%s1843_s11 + $0x158] sm:$0xff] %vm283_vm0, %v1934_v37  ;;  %v1941_v41 = vpop.f32.mrb[11].mxu1  ;;  %v1102_v53 = vmul.f32 %v1570_v36, %v1570_v36  ;;  %v1174_v57 = vsel %vm283_vm0, %v1101_v43, 0.0 }
 0x119   : > { %v1170_v45 = vsel %vm283_vm0, %v1099_v35, 0.0  ;;  %905 = vst.msk [vmem:[%s1843_s11 + $0x48] sm:$0xff] %vm283_vm0, %v675_v40  ;;  %v978_v46 = vsel %vm283_vm0, %v675_v40, 0.0  ;;  %v1100_v48 = vmul.f32 %v675_v40, %v675_v40  ;;  %937 = vst.msk [vmem:[%s1843_s11 + $0x148] sm:$0xff] %vm283_vm0, %v1941_v41  ;;  %v982_v58 = vsel %vm283_vm0, %v1570_v36, 0.0 }
 0x11a   : > { %v1171_v50 = vadd.f32 %v1170_v45, %v1169_v39  ;;  %v979_v51 = vadd.f32 %v978_v46, %v977_v38  ;;  %v1176_v2 = vsel %vm283_vm0, %v1102_v53, 0.0 }
 0x11b   : > { %v1172_v54 = vsel %vm283_vm0, %v1100_v48, 0.0 }
 0x11c   : > { %v981_v55 = vadd.f32 %v980_v52, %v979_v51  ;;  %v1173_v56 = vadd.f32 %v1172_v54, %v1171_v50 }
 0x11d   : > { %v1573_v59 = vpop.f32.mrb[12].mxu0  ;;  %v1954_v60 = vpop.f32.mrb[12].mxu1 }
 0x11e   : > { %v1175_v61 = vadd.f32 %v1174_v57, %v1173_v56  ;;  %910 = vst.msk [vmem:[%s1843_s11 + $0x70] sm:$0xff] %vm283_vm0, %v1573_v59  ;;  %v688_v62 = vpop.f32.mrb[13].mxu0  ;;  %v983_v63 = vadd.f32 %v982_v58, %v981_v55  ;;  %942 = vst.msk [vmem:[%s1843_s11 + $0x170] sm:$0xff] %vm283_vm0, %v1954_v60  ;;  %v1961_v1 = vpop.f32.mrb[13].mxu1  ;;  %v1105_v14 = vmul.f32 %v1573_v59, %v1573_v59  ;;  %v988_v20 = vsel %vm283_vm0, %v1573_v59, 0.0 }
 0x11f   : > { %908 = vst.msk [vmem:[%s1843_s11 + $0x60] sm:$0xff] %vm283_vm0, %v688_v62  ;;  %v984_v3 = vsel %vm283_vm0, %v688_v62, 0.0  ;;  %v1103_v5 = vmul.f32 %v688_v62, %v688_v62  ;;  %v1574_v6 = vpop.f32.mrb[14].mxu0  ;;  %940 = vst.msk [vmem:[%s1843_s11 + $0x160] sm:$0xff] %vm283_vm0, %v1961_v1  ;;  %v1970_v7 = vpop.f32.mrb[14].mxu1 }
 0x120   : > { %v985_v8 = vadd.f32 %v984_v3, %v983_v63  ;;  %v1177_v10 = vadd.f32 %v1176_v2, %v1175_v61  ;;  %911 = vst.msk [vmem:[%s1843_s11 + $0x78] sm:$0xff] %vm283_vm0, %v1574_v6  ;;  %v691_v11 = vpop.f32.mrb[15].mxu0  ;;  %943 = vst.msk [vmem:[%s1843_s11 + $0x178] sm:$0xff] %vm283_vm0, %v1970_v7  ;;  %v1977_v12 = vpop.f32.mrb[15].mxu1  ;;  %v1106_v21 = vmul.f32 %v1574_v6, %v1574_v6  ;;  %v1182_v25 = vsel %vm283_vm0, %v1105_v14, 0.0 }
 0x121   : > { %v1178_v15 = vsel %vm283_vm0, %v1103_v5, 0.0  ;;  %909 = vst.msk [vmem:[%s1843_s11 + $0x68] sm:$0xff] %vm283_vm0, %v691_v11  ;;  %v986_v16 = vsel %vm283_vm0, %v691_v11, 0.0  ;;  %v1104_v17 = vmul.f32 %v691_v11, %v691_v11  ;;  %941 = vst.msk [vmem:[%s1843_s11 + $0x168] sm:$0xff] %vm283_vm0, %v1977_v12  ;;  %v990_v26 = vsel %vm283_vm0, %v1574_v6, 0.0 }
 0x122   : > { %v1179_v18 = vadd.f32 %v1178_v15, %v1177_v10  ;;  %v987_v19 = vadd.f32 %v986_v16, %v985_v8  ;;  %v1184_v35 = vsel %vm283_vm0, %v1106_v21, 0.0 }
 0x123   : > { %v1180_v22 = vsel %vm283_vm0, %v1104_v17, 0.0 }
 0x124   : > { %v989_v23 = vadd.f32 %v988_v20, %v987_v19  ;;  %v1181_v24 = vadd.f32 %v1180_v22, %v1179_v18 }
 0x125   : > { %v1577_v27 = vpop.f32.mrb[16].mxu0  ;;  %v1990_v29 = vpop.f32.mrb[16].mxu1 }
 0x126   : > { %v1183_v30 = vadd.f32 %v1182_v25, %v1181_v24  ;;  %914 = vst.msk [vmem:[%s1843_s11 + $0x90] sm:$0xff] %vm283_vm0, %v1577_v27  ;;  %v704_v31 = vpop.f32.mrb[17].mxu0  ;;  %v991_v33 = vadd.f32 %v990_v26, %v989_v23  ;;  %946 = vst.msk [vmem:[%s1843_s11 + $0x190] sm:$0xff] %vm283_vm0, %v1990_v29  ;;  %v1997_v34 = vpop.f32.mrb[17].mxu1  ;;  %v1109_v50 = vmul.f32 %v1577_v27, %v1577_v27  ;;  %v996_v56 = vsel %vm283_vm0, %v1577_v27, 0.0 }
 0x127   : > { %912 = vst.msk [vmem:[%s1843_s11 + $0x80] sm:$0xff] %vm283_vm0, %v704_v31  ;;  %v992_v36 = vsel %vm283_vm0, %v704_v31, 0.0  ;;  %v1107_v38 = vmul.f32 %v704_v31, %v704_v31  ;;  %v1578_v39 = vpop.f32.mrb[18].mxu0  ;;  %944 = vst.msk [vmem:[%s1843_s11 + $0x180] sm:$0xff] %vm283_vm0, %v1997_v34  ;;  %v2006_v40 = vpop.f32.mrb[18].mxu1 }
 0x128   : > { %v993_v43 = vadd.f32 %v992_v36, %v991_v33  ;;  %v1185_v45 = vadd.f32 %v1184_v35, %v1183_v30  ;;  %915 = vst.msk [vmem:[%s1843_s11 + $0x98] sm:$0xff] %vm283_vm0, %v1578_v39  ;;  %v707_v46 = vpop.f32.mrb[19].mxu0  ;;  %947 = vst.msk [vmem:[%s1843_s11 + $0x198] sm:$0xff] %vm283_vm0, %v2006_v40  ;;  %v2013_v48 = vpop.f32.mrb[19].mxu1  ;;  %v1110_v57 = vmul.f32 %v1578_v39, %v1578_v39  ;;  %v1190_v62 = vsel %vm283_vm0, %v1109_v50, 0.0 }
 0x129   : > { %v1186_v51 = vsel %vm283_vm0, %v1107_v38, 0.0  ;;  %913 = vst.msk [vmem:[%s1843_s11 + $0x88] sm:$0xff] %vm283_vm0, %v707_v46  ;;  %v994_v52 = vsel %vm283_vm0, %v707_v46, 0.0  ;;  %v1108_v53 = vmul.f32 %v707_v46, %v707_v46  ;;  %945 = vst.msk [vmem:[%s1843_s11 + $0x188] sm:$0xff] %vm283_vm0, %v2013_v48  ;;  %v998_v63 = vsel %vm283_vm0, %v1578_v39, 0.0 }
 0x12a   : > { %v1187_v54 = vadd.f32 %v1186_v51, %v1185_v45  ;;  %v995_v55 = vadd.f32 %v994_v52, %v993_v43  ;;  %v1192_v11 = vsel %vm283_vm0, %v1110_v57, 0.0 }
 0x12b   : > { %v1188_v58 = vsel %vm283_vm0, %v1108_v53, 0.0 }
 0x12c   : > { %v997_v59 = vadd.f32 %v996_v56, %v995_v55  ;;  %v1189_v61 = vadd.f32 %v1188_v58, %v1187_v54 }
 0x12d   : > { %v1581_v2 = vpop.f32.mrb[20].mxu0  ;;  %v2026_v3 = vpop.f32.mrb[20].mxu1 }
 0x12e   : > { %v1191_v5 = vadd.f32 %v1190_v62, %v1189_v61  ;;  %918 = vst.msk [vmem:[%s1843_s11 + $0xb0] sm:$0xff] %vm283_vm0, %v1581_v2  ;;  %v720_v6 = vpop.f32.mrb[21].mxu0  ;;  %v999_v8 = vadd.f32 %v998_v63, %v997_v59  ;;  %950 = vst.msk [vmem:[%s1843_s11 + $0x1b0] sm:$0xff] %vm283_vm0, %v2026_v3  ;;  %v2033_v10 = vpop.f32.mrb[21].mxu1  ;;  %v1113_v22 = vmul.f32 %v1581_v2, %v1581_v2  ;;  %v1004_v30 = vsel %vm283_vm0, %v1581_v2, 0.0 }
 0x12f   : > { %916 = vst.msk [vmem:[%s1843_s11 + $0xa0] sm:$0xff] %vm283_vm0, %v720_v6  ;;  %v1000_v14 = vsel %vm283_vm0, %v720_v6, 0.0  ;;  %v1111_v15 = vmul.f32 %v720_v6, %v720_v6  ;;  %v1582_v16 = vpop.f32.mrb[22].mxu0  ;;  %948 = vst.msk [vmem:[%s1843_s11 + $0x1a0] sm:$0xff] %vm283_vm0, %v2033_v10  ;;  %v2042_v17 = vpop.f32.mrb[22].mxu1 }
 0x130   : > { %v1001_v18 = vadd.f32 %v1000_v14, %v999_v8  ;;  %v1193_v19 = vadd.f32 %v1192_v11, %v1191_v5  ;;  %919 = vst.msk [vmem:[%s1843_s11 + $0xb8] sm:$0xff] %vm283_vm0, %v1582_v16  ;;  %v723_v20 = vpop.f32.mrb[23].mxu0  ;;  %951 = vst.msk [vmem:[%s1843_s11 + $0x1b8] sm:$0xff] %vm283_vm0, %v2042_v17  ;;  %v2049_v21 = vpop.f32.mrb[23].mxu1  ;;  %v1114_v31 = vmul.f32 %v1582_v16, %v1582_v16  ;;  %v1198_v38 = vsel %vm283_vm0, %v1113_v22, 0.0 }
 0x131   : > { %v1194_v23 = vsel %vm283_vm0, %v1111_v15, 0.0  ;;  %917 = vst.msk [vmem:[%s1843_s11 + $0xa8] sm:$0xff] %vm283_vm0, %v723_v20  ;;  %v1002_v24 = vsel %vm283_vm0, %v723_v20, 0.0  ;;  %v1112_v25 = vmul.f32 %v723_v20, %v723_v20  ;;  %949 = vst.msk [vmem:[%s1843_s11 + $0x1a8] sm:$0xff] %vm283_vm0, %v2049_v21  ;;  %v1006_v39 = vsel %vm283_vm0, %v1582_v16, 0.0 }
 0x132   : > { %v1195_v26 = vadd.f32 %v1194_v23, %v1193_v19  ;;  %v1003_v27 = vadd.f32 %v1002_v24, %v1001_v18  ;;  %v1200_v53 = vsel %vm283_vm0, %v1114_v31, 0.0 }
 0x133   : > { %v1196_v33 = vsel %vm283_vm0, %v1112_v25, 0.0 }
 0x134   : > { %v1005_v35 = vadd.f32 %v1004_v30, %v1003_v27  ;;  %v1197_v36 = vadd.f32 %v1196_v33, %v1195_v26 }
 0x135   : > { %v1585_v43 = vpop.f32.mrb[24].mxu0  ;;  %v2062_v45 = vpop.f32.mrb[24].mxu1 }
 0x136   : > { %v1199_v46 = vadd.f32 %v1198_v38, %v1197_v36  ;;  %922 = vst.msk [vmem:[%s1843_s11 + $0xd0] sm:$0xff] %vm283_vm0, %v1585_v43  ;;  %v736_v50 = vpop.f32.mrb[25].mxu0  ;;  %v1007_v51 = vadd.f32 %v1006_v39, %v1005_v35  ;;  %954 = vst.msk [vmem:[%s1843_s11 + $0x1d0] sm:$0xff] %vm283_vm0, %v2062_v45  ;;  %v2069_v52 = vpop.f32.mrb[25].mxu1  ;;  %v1117_v63 = vmul.f32 %v1585_v43, %v1585_v43  ;;  %v1012_v14 = vsel %vm283_vm0, %v1585_v43, 0.0 }
 0x137   : > { %920 = vst.msk [vmem:[%s1843_s11 + $0xc0] sm:$0xff] %vm283_vm0, %v736_v50  ;;  %v1008_v54 = vsel %vm283_vm0, %v736_v50, 0.0  ;;  %v1115_v55 = vmul.f32 %v736_v50, %v736_v50  ;;  %v1586_v56 = vpop.f32.mrb[26].mxu0  ;;  %952 = vst.msk [vmem:[%s1843_s11 + $0x1c0] sm:$0xff] %vm283_vm0, %v2069_v52  ;;  %v2078_v57 = vpop.f32.mrb[26].mxu1 }
 0x138   : > { %v1009_v58 = vadd.f32 %v1008_v54, %v1007_v51  ;;  %v1201_v59 = vadd.f32 %v1200_v53, %v1199_v46  ;;  %923 = vst.msk [vmem:[%s1843_s11 + $0xd8] sm:$0xff] %vm283_vm0, %v1586_v56  ;;  %v739_v61 = vpop.f32.mrb[27].mxu0  ;;  %955 = vst.msk [vmem:[%s1843_s11 + $0x1d8] sm:$0xff] %vm283_vm0, %v2078_v57  ;;  %v2085_v62 = vpop.f32.mrb[27].mxu1  ;;  %v1118_v15 = vmul.f32 %v1586_v56, %v1586_v56  ;;  %v1206_v20 = vsel %vm283_vm0, %v1117_v63, 0.0 }
 0x139   : > { %v1202_v2 = vsel %vm283_vm0, %v1115_v55, 0.0  ;;  %921 = vst.msk [vmem:[%s1843_s11 + $0xc8] sm:$0xff] %vm283_vm0, %v739_v61  ;;  %v1010_v5 = vsel %vm283_vm0, %v739_v61, 0.0  ;;  %v1116_v6 = vmul.f32 %v739_v61, %v739_v61  ;;  %953 = vst.msk [vmem:[%s1843_s11 + $0x1c8] sm:$0xff] %vm283_vm0, %v2085_v62  ;;  %v1014_v22 = vsel %vm283_vm0, %v1586_v56, 0.0 }
 0x13a   : > { %v1203_v8 = vadd.f32 %v1202_v2, %v1201_v59  ;;  %v1011_v11 = vadd.f32 %v1010_v5, %v1009_v58  ;;  %v1208_v31 = vsel %vm283_vm0, %v1118_v15, 0.0  ;;  %v1123_v2 = vmul.f32 %v1854_v44, %v1854_v44 }
 0x13b   : > { %v1204_v16 = vsel %vm283_vm0, %v1116_v6, 0.0 }
 0x13c   : > { %v1013_v18 = vadd.f32 %v1012_v14, %v1011_v11  ;;  %v1205_v19 = vadd.f32 %v1204_v16, %v1203_v8  ;;  %v1024_v14 = vsel %vm283_vm0, %v1854_v44, 0.0  ;;  %v1028_v44 = vsel %vm283_vm0, %v1847_v42, 0.0 }
 0x13d   : > { %v1589_v23 = vpop.f32.mrb[28].mxu0  ;;  %v2098_v24 = vpop.f32.mrb[28].mxu1 }
 0x13e   : > { %v1207_v25 = vadd.f32 %v1206_v20, %v1205_v19  ;;  %926 = vst.msk [vmem:[%s1843_s11 + $0xf0] sm:$0xff] %vm283_vm0, %v1589_v23  ;;  %v752_v26 = vpop.f32.mrb[29].mxu0  ;;  %v1015_v27 = vadd.f32 %v1014_v22, %v1013_v18  ;;  %958 = vst.msk [vmem:[%s1843_s11 + $0x1f0] sm:$0xff] %vm283_vm0, %v2098_v24  ;;  %v2105_v30 = vpop.f32.mrb[29].mxu1  ;;  %v1121_v51 = vmul.f32 %v1589_v23, %v1589_v23  ;;  %v1020_v59 = vsel %vm283_vm0, %v1589_v23, 0.0 }
 0x13f   : > { %924 = vst.msk [vmem:[%s1843_s11 + $0xe0] sm:$0xff] %vm283_vm0, %v752_v26  ;;  %v1016_v33 = vsel %vm283_vm0, %v752_v26, 0.0  ;;  %v1119_v35 = vmul.f32 %v752_v26, %v752_v26  ;;  %v1590_v36 = vpop.f32.mrb[30].mxu0  ;;  %956 = vst.msk [vmem:[%s1843_s11 + $0x1e0] sm:$0xff] %vm283_vm0, %v2105_v30  ;;  %v2114_v38 = vpop.f32.mrb[30].mxu1  ;;  %v1218_v19 = vsel %vm283_vm0, %v1123_v2, 0.0  ;;  %v1124_v20 = vmul.f32 %v1868_v49, %v1868_v49 }
 0x140   : > { %v1017_v39 = vadd.f32 %v1016_v33, %v1015_v27  ;;  %v1209_v43 = vadd.f32 %v1208_v31, %v1207_v25  ;;  %927 = vst.msk [vmem:[%s1843_s11 + $0xf8] sm:$0xff] %vm283_vm0, %v1590_v36  ;;  %v755_v46 = vpop.f32.mrb[31].mxu0  ;;  %959 = vst.msk [vmem:[%s1843_s11 + $0x1f8] sm:$0xff] %vm283_vm0, %v2114_v38  ;;  %v2121_v50 = vpop.f32.mrb[31].mxu1  ;;  %v1122_v61 = vmul.f32 %v1590_v36, %v1590_v36  ;;  %v1214_v8 = vsel %vm283_vm0, %v1121_v51, 0.0 }
 0x141   : > { %v1210_v53 = vsel %vm283_vm0, %v1119_v35, 0.0  ;;  %925 = vst.msk [vmem:[%s1843_s11 + $0xe8] sm:$0xff] %vm283_vm0, %v755_v46  ;;  %v1018_v54 = vsel %vm283_vm0, %v755_v46, 0.0  ;;  %v1120_v55 = vmul.f32 %v755_v46, %v755_v46  ;;  %957 = vst.msk [vmem:[%s1843_s11 + $0x1e8] sm:$0xff] %vm283_vm0, %v2121_v50  ;;  %v1022_v11 = vsel %vm283_vm0, %v1590_v36, 0.0 }
 0x142   : > { %v1211_v56 = vadd.f32 %v1210_v53, %v1209_v43  ;;  %v1019_v58 = vadd.f32 %v1018_v54, %v1017_v39  ;;  %v1216_v18 = vsel %vm283_vm0, %v1122_v61, 0.0  ;;  %v1125_v25 = vmul.f32 %v1847_v42, %v1847_v42 }
 0x143   : > { %v1212_v63 = vsel %vm283_vm0, %v1120_v55, 0.0  ;;  %v1026_v26 = vsel %vm283_vm0, %v1868_v49, 0.0  ;;  %v1126_v33 = vmul.f32 %v1861_v47, %v1861_v47  ;;  %v1220_v35 = vsel %vm283_vm0, %v1124_v20, 0.0 }
 0x144   : > { %v1021_v5 = vadd.f32 %v1020_v59, %v1019_v58  ;;  %v1213_v6 = vadd.f32 %v1212_v63, %v1211_v56  ;;  %v1127_v36 = vmul.f32 %v1889_v4, %v1889_v4  ;;  %v1222_v46 = vsel %vm283_vm0, %v1125_v25, 0.0 }
 0x145   : > { %v1030_v49 = vsel %vm283_vm0, %v1861_v47, 0.0  ;;  %v1032_v51 = vsel %vm283_vm0, %v1889_v4, 0.0  ;;  %v1224_v54 = vsel %vm283_vm0, %v1126_v33, 0.0  ;;  %v1128_v56 = vmul.f32 %v1905_v13, %v1905_v13 }
 0x146   : > { %v1215_v15 = vadd.f32 %v1214_v8, %v1213_v6  ;;  %v1023_v16 = vadd.f32 %v1022_v11, %v1021_v5  ;;  %v1226_v55 = vsel %vm283_vm0, %v1127_v36, 0.0  ;;  %v1129_v61 = vmul.f32 %v1882_v0, %v1882_v0 }
 0x147   : > { %v1034_v47 = vsel %vm283_vm0, %v1905_v13, 0.0  ;;  %v1036_v4 = vsel %vm283_vm0, %v1882_v0, 0.0  ;;  %v1130_v5 = vmul.f32 %v1898_v9, %v1898_v9  ;;  %v1228_v6 = vsel %vm283_vm0, %v1128_v56, 0.0 }
 0x148   : > { %v1025_v22 = vadd.f32 %v1024_v14, %v1023_v16  ;;  %v1217_v23 = vadd.f32 %v1216_v18, %v1215_v15  ;;  %v1131_v8 = vmul.f32 %v1925_v32, %v1925_v32  ;;  %v1230_v15 = vsel %vm283_vm0, %v1129_v61, 0.0 }
 0x149   : > { %v1038_v13 = vsel %vm283_vm0, %v1898_v9, 0.0  ;;  %v1040_v16 = vsel %vm283_vm0, %v1925_v32, 0.0  ;;  %v1042_v9 = vsel %vm283_vm0, %v1941_v41, 0.0  ;;  %v1044_v32 = vsel %vm283_vm0, %v1918_v28, 0.0 }
 0x14a   : > { %v1219_v27 = vadd.f32 %v1218_v19, %v1217_v23  ;;  %v1027_v31 = vadd.f32 %v1026_v26, %v1025_v22  ;;  %v1232_v19 = vsel %vm283_vm0, %v1130_v5, 0.0  ;;  %v1234_v20 = vsel %vm283_vm0, %v1131_v8, 0.0 }
 0x14b   : > { %v1132_v22 = vmul.f32 %v1941_v41, %v1941_v41  ;;  %v1133_v26 = vmul.f32 %v1918_v28, %v1918_v28  ;;  %v1046_v41 = vsel %vm283_vm0, %v1934_v37, 0.0  ;;  %v1137_v56 = vmul.f32 %v1954_v60, %v1954_v60 }
 0x14c   : > { %v1029_v39 = vadd.f32 %v1028_v44, %v1027_v31  ;;  %v1221_v43 = vadd.f32 %v1220_v35, %v1219_v27  ;;  %v1134_v44 = vmul.f32 %v1934_v37, %v1934_v37  ;;  %v1135_v35 = vmul.f32 %v1961_v1, %v1961_v1 }
 0x14d   : > { %v1236_v33 = vsel %vm283_vm0, %v1132_v22, 0.0  ;;  %v1050_v37 = vsel %vm283_vm0, %v1977_v12, 0.0  ;;  %v1138_v61 = vmul.f32 %v1970_v7, %v1970_v7  ;;  %v1246_v5 = vsel %vm283_vm0, %v1137_v56, 0.0 }
 0x14e   : > { %v1223_v53 = vadd.f32 %v1222_v46, %v1221_v43  ;;  %v1031_v42 = vadd.f32 %v1030_v49, %v1029_v39  ;;  %v1238_v43 = vsel %vm283_vm0, %v1133_v26, 0.0  ;;  %v1048_v46 = vsel %vm283_vm0, %v1961_v1, 0.0 }
 0x14f   : > { %v1052_v1 = vsel %vm283_vm0, %v1954_v60, 0.0 }
 0x150   : > { %v1033_v58 = vadd.f32 %v1032_v51, %v1031_v42  ;;  %v1225_v59 = vadd.f32 %v1224_v54, %v1223_v53  ;;  %v1240_v51 = vsel %vm283_vm0, %v1134_v44, 0.0  ;;  %v1242_v53 = vsel %vm283_vm0, %v1135_v35, 0.0 }
 0x151   : > { %v1136_v42 = vmul.f32 %v1977_v12, %v1977_v12  ;;  %v1054_v12 = vsel %vm283_vm0, %v1970_v7, 0.0  ;;  %v1058_v7 = vsel %vm283_vm0, %v2013_v48, 0.0 }
 0x152   : > { %v1227_v63 = vadd.f32 %v1226_v55, %v1225_v59  ;;  %v1035_v2 = vadd.f32 %v1034_v47, %v1033_v58 }
 0x153   : > { %v1244_v47 = vsel %vm283_vm0, %v1136_v42, 0.0 }
 0x154   : > { %v1037_v11 = vadd.f32 %v1036_v4, %v1035_v2  ;;  %v1229_v14 = vadd.f32 %v1228_v6, %v1227_v63  ;;  %v1139_v63 = vmul.f32 %v1997_v34, %v1997_v34  ;;  %v1056_v6 = vsel %vm283_vm0, %v1997_v34, 0.0 }
 0x155   : > { %v1060_v34 = vsel %vm283_vm0, %v1990_v29, 0.0 }
 0x156   : > { %v1231_v18 = vadd.f32 %v1230_v15, %v1229_v14  ;;  %v1039_v0 = vadd.f32 %v1038_v13, %v1037_v11  ;;  %v1248_v11 = vsel %vm283_vm0, %v1138_v61, 0.0  ;;  %v1250_v14 = vsel %vm283_vm0, %v1139_v63, 0.0 }
 0x157   : > { %v1140_v15 = vmul.f32 %v2013_v48, %v2013_v48  ;;  %v1062_v48 = vsel %vm283_vm0, %v2006_v40, 0.0  ;;  %v1149_v61 = vmul.f32 %v2062_v45, %v2062_v45 }
 0x158   : > { %v1041_v23 = vadd.f32 %v1040_v16, %v1039_v0  ;;  %v1233_v25 = vadd.f32 %v1232_v19, %v1231_v18  ;;  %v1141_v18 = vmul.f32 %v1990_v29, %v1990_v29 }
 0x159   : > { %v1252_v22 = vsel %vm283_vm0, %v1140_v15, 0.0 }
 0x15a   : > { %v1235_v27 = vadd.f32 %v1234_v20, %v1233_v25  ;;  %v1043_v31 = vadd.f32 %v1042_v9, %v1041_v23  ;;  %v1142_v20 = vmul.f32 %v2006_v40, %v2006_v40  ;;  %v1143_v23 = vmul.f32 %v2033_v10, %v2033_v10 }
 0x15b   : > { %v1254_v9 = vsel %vm283_vm0, %v1141_v18, 0.0  ;;  %v1066_v40 = vsel %vm283_vm0, %v2049_v21, 0.0 }
 0x15c   : > { %v1045_v36 = vadd.f32 %v1044_v32, %v1043_v31  ;;  %v1237_v39 = vadd.f32 %v1236_v33, %v1235_v27  ;;  %v1064_v27 = vsel %vm283_vm0, %v2033_v10, 0.0  ;;  %v1256_v32 = vsel %vm283_vm0, %v1142_v20, 0.0 }
 0x15d   : > { %v1258_v44 = vsel %vm283_vm0, %v1143_v23, 0.0  ;;  %v1144_v33 = vmul.f32 %v2049_v21, %v2049_v21  ;;  %v1068_v10 = vsel %vm283_vm0, %v2026_v3, 0.0  ;;  %v1070_v21 = vsel %vm283_vm0, %v2042_v17, 0.0 }
 0x15e   : > { %v1239_v49 = vadd.f32 %v1238_v43, %v1237_v39  ;;  %v1047_v28 = vadd.f32 %v1046_v41, %v1045_v36  ;;  %v1145_v39 = vmul.f32 %v2026_v3, %v2026_v3 }
 0x160   : > { %v1049_v54 = vadd.f32 %v1048_v46, %v1047_v28  ;;  %v1241_v55 = vadd.f32 %v1240_v51, %v1239_v49  ;;  %v1146_v46 = vmul.f32 %v2042_v17, %v2042_v17  ;;  %v1260_v49 = vsel %vm283_vm0, %v1144_v33, 0.0 }
 0x161   : > { %v1147_v28 = vmul.f32 %v2069_v52, %v2069_v52  ;;  %v1262_v42 = vsel %vm283_vm0, %v1145_v39, 0.0  ;;  %v1074_v17 = vsel %vm283_vm0, %v2085_v62, 0.0 }
 0x162   : > { %v1243_v58 = vadd.f32 %v1242_v53, %v1241_v55  ;;  %v1051_v59 = vadd.f32 %v1050_v37, %v1049_v54  ;;  %v1072_v54 = vsel %vm283_vm0, %v2069_v52, 0.0  ;;  %v1264_v56 = vsel %vm283_vm0, %v1146_v46, 0.0 }
 0x163   : > { %v1266_v37 = vsel %vm283_vm0, %v1147_v28, 0.0  ;;  %v1076_v52 = vsel %vm283_vm0, %v2062_v45, 0.0 }
 0x164   : > { %v1053_v2 = vadd.f32 %v1052_v1, %v1051_v59  ;;  %v1245_v4 = vadd.f32 %v1244_v47, %v1243_v58  ;;  %v1148_v58 = vmul.f32 %v2085_v62, %v2085_v62  ;;  %v1078_v62 = vsel %vm283_vm0, %v2078_v57, 0.0 }
 0x166   : > { %v1247_v8 = vadd.f32 %v1246_v5, %v1245_v4  ;;  %v1055_v60 = vadd.f32 %v1054_v12, %v1053_v2  ;;  %v1150_v2 = vmul.f32 %v2078_v57, %v2078_v57  ;;  %v1268_v4 = vsel %vm283_vm0, %v1148_v58, 0.0 }
 0x167   : > { %v1151_v5 = vmul.f32 %v2105_v30, %v2105_v30  ;;  %v1082_v57 = vsel %vm283_vm0, %v2121_v50, 0.0 }
 0x168   : > { %v1057_v13 = vadd.f32 %v1056_v6, %v1055_v60  ;;  %v1249_v16 = vadd.f32 %v1248_v11, %v1247_v8  ;;  %v1270_v8 = vsel %vm283_vm0, %v1149_v61, 0.0  ;;  %v1080_v60 = vsel %vm283_vm0, %v2105_v30, 0.0 }
 0x169   : > { %v1274_v15 = vsel %vm283_vm0, %v1151_v5, 0.0 }
 0x16a   : > { %v1251_v0 = vadd.f32 %v1250_v14, %v1249_v16  ;;  %v1059_v19 = vadd.f32 %v1058_v7, %v1057_v13  ;;  %v1272_v14 = vsel %vm283_vm0, %v1150_v2, 0.0  ;;  %v1152_v13 = vmul.f32 %v2121_v50, %v2121_v50  ;;  %v960_v50 = vld [vmem:[%s1831_s5] sm:$0xff] }
 0x16b   : > { %v1153_v7 = vmul.f32 %v2098_v24, %v2098_v24 }
 0x16c   : > { %v1061_v25 = vadd.f32 %v1060_v34, %v1059_v19  ;;  %v1253_v26 = vadd.f32 %v1252_v22, %v1251_v0  ;;  %v1084_v19 = vsel %vm283_vm0, %v2098_v24, 0.0  ;;  %v1154_v34 = vmul.f32 %v2114_v38, %v2114_v38 }
 0x16d   : > { %v1276_v20 = vsel %vm283_vm0, %v1152_v13, 0.0 }
 0x16e   : > { %v1255_v31 = vadd.f32 %v1254_v9, %v1253_v26  ;;  %v1063_v29 = vadd.f32 %v1062_v48, %v1061_v25  ;;  %v1278_v25 = vsel %vm283_vm0, %v1153_v7, 0.0  ;;  %v1086_v26 = vsel %vm283_vm0, %v2114_v38, 0.0 }
 0x170   : > { %v1065_v35 = vadd.f32 %v1064_v27, %v1063_v29  ;;  %v1257_v36 = vadd.f32 %v1256_v32, %v1255_v31  ;;  %v1280_v27 = vsel %vm283_vm0, %v1154_v34, 0.0  ;;  %v1090_v31 = vld [vmem:[%s1838_s8] sm:$0xff] }
 0x172   : > { %v1259_v43 = vadd.f32 %v1258_v44, %v1257_v36  ;;  %v1067_v41 = vadd.f32 %v1066_v40, %v1065_v35 }
 0x174   : > { %v1069_v51 = vadd.f32 %v1068_v10, %v1067_v41  ;;  %v1261_v53 = vadd.f32 %v1260_v49, %v1259_v43 }
 0x176   : > { %v1263_v55 = vadd.f32 %v1262_v42, %v1261_v53  ;;  %v1071_v3 = vadd.f32 %v1070_v21, %v1069_v51 }
 0x178   : > { %v1073_v59 = vadd.f32 %v1072_v54, %v1071_v3  ;;  %v1265_v1 = vadd.f32 %v1264_v56, %v1263_v55 }
 0x17a   : > { %v1267_v47 = vadd.f32 %v1266_v37, %v1265_v1  ;;  %v1075_v63 = vadd.f32 %v1074_v17, %v1073_v59 }
 0x17c   : > { %v1077_v12 = vadd.f32 %v1076_v52, %v1075_v63  ;;  %v1269_v6 = vadd.f32 %v1268_v4, %v1267_v47 }
 0x17e   : > { %v1271_v11 = vadd.f32 %v1270_v8, %v1269_v6  ;;  %v1079_v45 = vadd.f32 %v1078_v62, %v1077_v12 }
 0x180   : > { %v1081_v16 = vadd.f32 %v1080_v60, %v1079_v45  ;;  %v1273_v18 = vadd.f32 %v1272_v14, %v1271_v11 }
 0x182   : > { %v1275_v30 = vadd.f32 %v1274_v15, %v1273_v18  ;;  %v1083_v0 = vadd.f32 %v1082_v57, %v1081_v16 }
 0x184   : > { %v1085_v22 = vadd.f32 %v1084_v19, %v1083_v0  ;;  %v1277_v23 = vadd.f32 %v1276_v20, %v1275_v30 }
 0x186   : > { %v1087_v9 = vadd.f32 %v1086_v26, %v1085_v22  ;;  %v1279_v48 = vadd.f32 %v1278_v25, %v1277_v23 }
 0x188   : > { %v1088_v24 = vadd.f32 %v1087_v9, %v960_v50  ;;  %v1281_v29 = vadd.f32 %v1280_v27, %v1279_v48 }
 0x18a   : > { %1089 = vst.msk [vmem:[%s1831_s5] sm:$0xff] %vm283_vm0, %v1088_v24  ;;  %v1282_v32 = vadd.f32 %v1281_v29, %v1090_v31 }
 0x18c   : > { %1283 = vst.msk [vmem:[%s1838_s8] sm:$0xff] %vm283_vm0, %v1282_v32 }
 0x18d PF: > { %s15_s17 = sadd.s32 1, %s1726_s17   ;;  %s2315_s15 = smov %s1722_s16 }
 0x18e   : > { %p12_p5 = scmp.ge.s32.totalorder %s15_s17, 6   ;;  %s2316_s16 = smov %s2318_s18 }
 0x190   :  { %14 = sbr.rel (!%p12_p5) target bundleno = 2 (0x2), region = 89 }

// kernel: tile.78
= control target key start
LH: loop header
LB: loop body
LE: loop exit
PB: predicated region body
PF: predicated region fallthrough
CT: control target
= control target key end

     0   :  { %s22_s0 = inlined_call_operand.vmem [shape: f32[16], index: 0, kind: input, shape index: {}]   ;;  %s23_s1 = inlined_call_operand.vmem [shape: f32[8,16], index: 1, kind: output, shape index: {}]  }
   0x1   :  { %v4_v0 = vld [vmem:[%s22_s0] ss:$0 sm:$0xff] }
   0x2   :  { %5 = vst [vmem:[%s23_s1] sm:$0xff] %v4_v0 }

// kernel: tile.79
= control target key start
LH: loop header
LB: loop body
LE: loop exit
PB: predicated region body
PF: predicated region fallthrough
CT: control target
= control target key end

     0   :  { %s67_s10 = smov 112   ;;  %s68_s11 = smov 80   ;;  %vm3_vm0 = vcmask 130048   ;;  %vm9_vm1 = vcmask 1048448   ;;  %vm15_vm2 = vcmask 917248   ;;  %vm21_vm3 = vcmask 786048   ;;  %s111_s0 = inlined_call_operand.vmem [shape: f32[8,16], index: 0, kind: input, shape index: {}]   ;;  %s112_s1 = inlined_call_operand.vmem [shape: f32[1,128], index: 1, kind: output, shape index: {}]  }
   0x1   :  { %v53_v0 = vld [vmem:[%s111_s0 + $0x7] sm:$0x1]   ;;  %v55_v1 = vld [vmem:[%s111_s0 + $0x5] sm:$0x1]   ;;  %v54_v2 = vld [vmem:[%s111_s0 + $0x6] sm:$0x1]  }
   0x2   :  { %7 = vrot.lane.b32.xlu0 %v53_v0, %s67_s10  ;;  %19 = vrot.lane.b32.xlu1 %v55_v1, %s68_s11  ;;  %v56_v3 = vld [vmem:[%s111_s0 + $0x4] sm:$0x1]   ;;  %v2_v4 = vld [vmem:[%s111_s0] sm:$0x1]   ;;  %s69_s18 = smov 96   ;;  %s70_s19 = smov 64  }
   0x3   :  { %4 = vst.msk [vmem:[#allocation0] sm:$0x1] %vm3_vm0, %v2_v4   ;;  %v57_v5 = vld [vmem:[%s111_s0 + $0x3] sm:$0x1]   ;;  %v58_v6 = vld [vmem:[%s111_s0 + $0x2] sm:$0x1]  }
   0x4   :  { %s71_s24 = smov 48   ;;  %s72_s25 = smov 32   ;;  %v59_v7 = vld [vmem:[%s111_s0 + $0x1] sm:$0x1]   ;;  %vm27_vm4 = vcmask 654848   ;;  %vm33_vm5 = vcmask 523648  }
   0x5   :  { %s73_s0 = smov 16   ;;  %vm39_vm6 = vcmask 392448   ;;  %vm45_vm7 = vcmask 261248  }
   0x6   :  { %13 = vrot.lane.b32.xlu0 %v54_v2, %s69_s18  ;;  %25 = vrot.lane.b32.xlu1 %v56_v3, %s70_s19 }
   0xa   :  { %31 = vrot.lane.b32.xlu0 %v57_v5, %s71_s24  ;;  %37 = vrot.lane.b32.xlu1 %v58_v6, %s72_s25 }
   0xe   :  { %43 = vrot.lane.b32.xlu0 %v59_v7, %s73_s0 }
  0x74   :  { %v8_v8 = vpop.permute.xlu0 %7   ;;  %v20_v9 = vpop.permute.xlu1 %19  }
  0x75   :  { %10 = vst.msk [vmem:[#allocation0] sm:$0x1] %vm9_vm1, %v8_v8  }
  0x78   :  { %v14_v10 = vpop.permute.xlu0 %13   ;;  %v26_v11 = vpop.permute.xlu1 %25  }
  0x79   :  { %16 = vst.msk [vmem:[#allocation0] sm:$0x1] %vm15_vm2, %v14_v10  }
  0x7a   :  { %22 = vst.msk [vmem:[#allocation0] sm:$0x1] %vm21_vm3, %v20_v9  }
  0x7b   :  { %28 = vst.msk [vmem:[#allocation0] sm:$0x1] %vm27_vm4, %v26_v11  }
  0x7c   :  { %v32_v12 = vpop.permute.xlu0 %31   ;;  %v38_v13 = vpop.permute.xlu1 %37  }
  0x7d   :  { %34 = vst.msk [vmem:[#allocation0] sm:$0x1] %vm33_vm5, %v32_v12  }
  0x7e   :  { %40 = vst.msk [vmem:[#allocation0] sm:$0x1] %vm39_vm6, %v38_v13  }
  0x80   :  { %v44_v14 = vpop.permute.xlu0 %43  }
  0x81   :  { %46 = vst.msk [vmem:[#allocation0] sm:$0x1] %vm45_vm7, %v44_v14  }
  0x88   :  { %v50_v15 = vld [vmem:[#allocation0] sm:$0x1] }
  0x89   :  { %52 = vst [vmem:[%s112_s1] sm:$0x1] %v50_v15 }

// kernel: decoder64x64_forward.16
= control target key start
LH: loop header
LB: loop body
LE: loop exit
PB: predicated region body
PF: predicated region fallthrough
CT: control target
= control target key end

     0   :  { %s719_s0 = inlined_call_operand.vmem [shape: f32[256,128], index: 0, kind: input, shape index: {}]   ;;  %s720_s1 = inlined_call_operand.vmem [shape: f32[1,128], index: 1, kind: input, shape index: {}]   ;;  %s721_s2 = inlined_call_operand.vmem [shape: f32[1,128], index: 2, kind: input, shape index: {}]   ;;  %s722_s3 = inlined_call_operand.vmem [shape: bf16[256,128], index: 3, kind: output, shape index: {}]  }
   0x1   :  { %v14_v0 = vld [vmem:[%s719_s0] sm:$0xff]  ;;  %v15_v1 = vld [vmem:[%s719_s0 + $0x8] sm:$0xff]  ;;  %v16_v6 = vld [vmem:[%s719_s0 + $0x10] sm:$0xff] }
   0x2   :  { %v510_v2 = vld [vmem:[%s720_s1] ss:$0 sm:$0xff]  ;;  %v17_v7 = vld [vmem:[%s719_s0 + $0x18] sm:$0xff]  ;;  %v19_v11 = vld [vmem:[%s719_s0 + $0x28] sm:$0xff] }
   0x3   :  { %v53_v3 = vmul.f32 %v510_v2, %v14_v0  ;;  %v54_v4 = vmul.f32 %v510_v2, %v15_v1  ;;  %v517_v5 = vld [vmem:[%s721_s2] ss:$0 sm:$0xff]  ;;  %v55_v8 = vmul.f32 %v510_v2, %v16_v6  ;;  %v56_v9 = vmul.f32 %v510_v2, %v17_v7  ;;  %v20_v12 = vld [vmem:[%s719_s0 + $0x30] sm:$0xff]  ;;  %v21_v17 = vld [vmem:[%s719_s0 + $0x38] sm:$0xff] }
   0x4   :  { %v18_v10 = vld [vmem:[%s719_s0 + $0x20] sm:$0xff]  ;;  %v58_v16 = vmul.f32 %v510_v2, %v19_v11  ;;  %v59_v20 = vmul.f32 %v510_v2, %v20_v12  ;;  %v60_v21 = vmul.f32 %v510_v2, %v21_v17  ;;  %v23_v27 = vld [vmem:[%s719_s0 + $0x48] sm:$0xff]  ;;  %v24_v32 = vld [vmem:[%s719_s0 + $0x50] sm:$0xff] }
   0x5   :  { %v92_v13 = vadd.f32 %v517_v5, %v53_v3  ;;  %v93_v14 = vadd.f32 %v517_v5, %v54_v4  ;;  %v57_v15 = vmul.f32 %v510_v2, %v18_v10  ;;  %v94_v18 = vadd.f32 %v517_v5, %v55_v8  ;;  %v22_v22 = vld [vmem:[%s719_s0 + $0x40] sm:$0xff]  ;;  %v25_v33 = vld [vmem:[%s719_s0 + $0x58] sm:$0xff]  ;;  %v27_v39 = vld [vmem:[%s719_s0 + $0x68] sm:$0xff] }
   0x6   :  { %v95_v19 = vadd.f32 %v517_v5, %v56_v9  ;;  %v97_v26 = vadd.f32 %v517_v5, %v58_v16  ;;  %v98_v30 = vadd.f32 %v517_v5, %v59_v20  ;;  %v99_v31 = vadd.f32 %v517_v5, %v60_v21  ;;  %v26_v38 = vld [vmem:[%s719_s0 + $0x60] sm:$0xff]  ;;  %v28_v44 = vld [vmem:[%s719_s0 + $0x70] sm:$0xff]  ;;  %v29_v49 = vld [vmem:[%s719_s0 + $0x78] sm:$0xff] }
   0x7   :  { %v124_v23 = vmax.f32 %v92_v13, 0.0  ;;  %v125_v24 = vmax.f32 %v93_v14, 0.0  ;;  %v96_v25 = vadd.f32 %v517_v5, %v57_v15  ;;  %v126_v28 = vmax.f32 %v94_v18, 0.0  ;;  %v30_v54 = vld [vmem:[%s719_s0 + $0x80] sm:$0xff]  ;;  %v31_v63 = vld [vmem:[%s719_s0 + $0x88] sm:$0xff]  ;;  %v32_v6 = vld [vmem:[%s719_s0 + $0x90] sm:$0xff] }
   0x8   :  { %v127_v29 = vmax.f32 %v95_v19, 0.0  ;;  %v129_v36 = vmax.f32 %v97_v26, 0.0  ;;  %v61_v37 = vmul.f32 %v510_v2, %v22_v22  ;;  %v130_v41 = vmax.f32 %v98_v30, 0.0  ;;  %v33_v7 = vld [vmem:[%s719_s0 + $0x98] sm:$0xff]  ;;  %v34_v12 = vld [vmem:[%s719_s0 + $0xa0] sm:$0xff]  ;;  %v35_v13 = vld [vmem:[%s719_s0 + $0xa8] sm:$0xff] }
   0x9   :  { %v389_v34 = vpack.c.bf16 %v125_v24, %v124_v23  ;;  %v128_v35 = vmax.f32 %v96_v25, 0.0  ;;  %v131_v42 = vmax.f32 %v99_v31, 0.0  ;;  %v62_v43 = vmul.f32 %v510_v2, %v23_v27  ;;  %v36_v18 = vld [vmem:[%s719_s0 + $0xb0] sm:$0xff]  ;;  %v37_v23 = vld [vmem:[%s719_s0 + $0xb8] sm:$0xff] }
   0xa   :  { %v394_v40 = vpack.c.bf16 %v127_v29, %v126_v28  ;;  %v100_v46 = vadd.f32 %v517_v5, %v61_v37  ;;  %v63_v47 = vmul.f32 %v510_v2, %v24_v32  ;;  %v64_v48 = vmul.f32 %v510_v2, %v25_v33  ;;  %v38_v28 = vld [vmem:[%s719_s0 + $0xc0] sm:$0xff]  ;;  %v39_v37 = vld [vmem:[%s719_s0 + $0xc8] sm:$0xff] }
   0xb   :  { %390 = vst [vmem:[%s722_s3] sm:$0xff] %v389_v34   ;;  %v399_v45 = vpack.c.bf16 %v129_v36, %v128_v35  ;;  %v404_v50 = vpack.c.bf16 %v131_v42, %v130_v41  ;;  %v101_v51 = vadd.f32 %v517_v5, %v62_v43  ;;  %v65_v52 = vmul.f32 %v510_v2, %v26_v38  ;;  %v40_v42 = vld [vmem:[%s719_s0 + $0xd0] sm:$0xff]  ;;  %v41_v43 = vld [vmem:[%s719_s0 + $0xd8] sm:$0xff] }
   0xc   :  { %466 = vst [vmem:[%s722_s3 + $0x8] sm:$0xff] %v394_v40   ;;  %v66_v53 = vmul.f32 %v510_v2, %v27_v39  ;;  %v132_v55 = vmax.f32 %v100_v46, 0.0  ;;  %v102_v56 = vadd.f32 %v517_v5, %v63_v47  ;;  %v103_v57 = vadd.f32 %v517_v5, %v64_v48  ;;  %v42_v48 = vld [vmem:[%s719_s0 + $0xe0] sm:$0xff] }
   0xd   :  { %467 = vst [vmem:[%s722_s3 + $0x10] sm:$0xff] %v399_v45   ;;  %v67_v58 = vmul.f32 %v510_v2, %v28_v44  ;;  %468 = vst [vmem:[%s722_s3 + $0x18] sm:$0xff] %v404_v50   ;;  %v133_v59 = vmax.f32 %v101_v51, 0.0  ;;  %v104_v60 = vadd.f32 %v517_v5, %v65_v52  ;;  %v68_v62 = vmul.f32 %v510_v2, %v29_v49  ;;  %v43_v49 = vld [vmem:[%s719_s0 + $0xe8] sm:$0xff] }
   0xe   :  { %v105_v61 = vadd.f32 %v517_v5, %v66_v53  ;;  %v134_v0 = vmax.f32 %v102_v56, 0.0  ;;  %v135_v1 = vmax.f32 %v103_v57, 0.0  ;;  %v69_v4 = vmul.f32 %v510_v2, %v30_v54  ;;  %v44_v54 = vld [vmem:[%s719_s0 + $0xf0] sm:$0xff] }
   0xf   :  { %v106_v3 = vadd.f32 %v517_v5, %v67_v58  ;;  %v409_v8 = vpack.c.bf16 %v133_v59, %v132_v55  ;;  %v136_v9 = vmax.f32 %v104_v60, 0.0  ;;  %v107_v11 = vadd.f32 %v517_v5, %v68_v62  ;;  %v45_v59 = vld [vmem:[%s719_s0 + $0xf8] sm:$0xff] }
  0x10   :  { %v137_v10 = vmax.f32 %v105_v61, 0.0  ;;  %v414_v14 = vpack.c.bf16 %v135_v1, %v134_v0  ;;  %v70_v16 = vmul.f32 %v510_v2, %v31_v63  ;;  %v108_v17 = vadd.f32 %v517_v5, %v69_v4 }
  0x11   :  { %v138_v15 = vmax.f32 %v106_v3, 0.0  ;;  %469 = vst [vmem:[%s722_s3 + $0x20] sm:$0xff] %v409_v8   ;;  %v139_v20 = vmax.f32 %v107_v11, 0.0  ;;  %v71_v21 = vmul.f32 %v510_v2, %v32_v6  ;;  %v72_v22 = vmul.f32 %v510_v2, %v33_v7 }
  0x12   :  { %v419_v19 = vpack.c.bf16 %v137_v10, %v136_v9  ;;  %470 = vst [vmem:[%s722_s3 + $0x28] sm:$0xff] %v414_v14   ;;  %v109_v24 = vadd.f32 %v517_v5, %v70_v16  ;;  %v140_v25 = vmax.f32 %v108_v17, 0.0  ;;  %v73_v26 = vmul.f32 %v510_v2, %v34_v12 }
  0x13   :  { %v74_v27 = vmul.f32 %v510_v2, %v35_v13  ;;  %v424_v29 = vpack.c.bf16 %v139_v20, %v138_v15  ;;  %v110_v30 = vadd.f32 %v517_v5, %v71_v21  ;;  %v111_v31 = vadd.f32 %v517_v5, %v72_v22 }
  0x14   :  { %471 = vst [vmem:[%s722_s3 + $0x30] sm:$0xff] %v419_v19   ;;  %v75_v32 = vmul.f32 %v510_v2, %v36_v18  ;;  %v141_v33 = vmax.f32 %v109_v24, 0.0  ;;  %v112_v34 = vadd.f32 %v517_v5, %v73_v26  ;;  %v76_v36 = vmul.f32 %v510_v2, %v37_v23 }
  0x15   :  { %v113_v35 = vadd.f32 %v517_v5, %v74_v27  ;;  %472 = vst [vmem:[%s722_s3 + $0x38] sm:$0xff] %v424_v29   ;;  %v142_v38 = vmax.f32 %v110_v30, 0.0  ;;  %v143_v39 = vmax.f32 %v111_v31, 0.0  ;;  %v77_v41 = vmul.f32 %v510_v2, %v38_v28 }
  0x16   :  { %v114_v40 = vadd.f32 %v517_v5, %v75_v32  ;;  %v429_v44 = vpack.c.bf16 %v141_v33, %v140_v25  ;;  %v144_v45 = vmax.f32 %v112_v34, 0.0  ;;  %v115_v47 = vadd.f32 %v517_v5, %v76_v36 }
  0x17   :  { %v145_v46 = vmax.f32 %v113_v35, 0.0  ;;  %v434_v50 = vpack.c.bf16 %v143_v39, %v142_v38  ;;  %v78_v52 = vmul.f32 %v510_v2, %v39_v37  ;;  %v116_v53 = vadd.f32 %v517_v5, %v77_v41 }
  0x18   :  { %v146_v51 = vmax.f32 %v114_v40, 0.0  ;;  %473 = vst [vmem:[%s722_s3 + $0x40] sm:$0xff] %v429_v44   ;;  %v147_v56 = vmax.f32 %v115_v47, 0.0  ;;  %v79_v57 = vmul.f32 %v510_v2, %v40_v42  ;;  %v80_v58 = vmul.f32 %v510_v2, %v41_v43 }
  0x19   :  { %v439_v55 = vpack.c.bf16 %v145_v46, %v144_v45  ;;  %474 = vst [vmem:[%s722_s3 + $0x48] sm:$0xff] %v434_v50   ;;  %v117_v60 = vadd.f32 %v517_v5, %v78_v52  ;;  %v148_v61 = vmax.f32 %v116_v53, 0.0  ;;  %v81_v62 = vmul.f32 %v510_v2, %v42_v48 }
  0x1a   :  { %v82_v63 = vmul.f32 %v510_v2, %v43_v49  ;;  %v444_v0 = vpack.c.bf16 %v147_v56, %v146_v51  ;;  %v118_v1 = vadd.f32 %v517_v5, %v79_v57  ;;  %v119_v3 = vadd.f32 %v517_v5, %v80_v58 }
  0x1b   :  { %475 = vst [vmem:[%s722_s3 + $0x50] sm:$0xff] %v439_v55   ;;  %v83_v4 = vmul.f32 %v510_v2, %v44_v54  ;;  %v149_v6 = vmax.f32 %v117_v60, 0.0  ;;  %v120_v7 = vadd.f32 %v517_v5, %v81_v62  ;;  %v84_v9 = vmul.f32 %v510_v2, %v45_v59 }
  0x1c   :  { %v121_v8 = vadd.f32 %v517_v5, %v82_v63  ;;  %476 = vst [vmem:[%s722_s3 + $0x58] sm:$0xff] %v444_v0   ;;  %v150_v10 = vmax.f32 %v118_v1, 0.0  ;;  %v151_v11 = vmax.f32 %v119_v3, 0.0 }
  0x1d   :  { %v122_v12 = vadd.f32 %v517_v5, %v83_v4  ;;  %v449_v13 = vpack.c.bf16 %v149_v6, %v148_v61  ;;  %v152_v14 = vmax.f32 %v120_v7, 0.0  ;;  %v123_v16 = vadd.f32 %v517_v5, %v84_v9 }
  0x1e   :  { %v153_v15 = vmax.f32 %v121_v8, 0.0  ;;  %v454_v17 = vpack.c.bf16 %v151_v11, %v150_v10 }
  0x1f   :  { %v154_v18 = vmax.f32 %v122_v12, 0.0  ;;  %477 = vst [vmem:[%s722_s3 + $0x60] sm:$0xff] %v449_v13   ;;  %v155_v19 = vmax.f32 %v123_v16, 0.0 }
  0x20   :  { %v459_v2 = vpack.c.bf16 %v153_v15, %v152_v14  ;;  %478 = vst [vmem:[%s722_s3 + $0x68] sm:$0xff] %v454_v17  }
  0x21   :  { %v464_v20 = vpack.c.bf16 %v155_v19, %v154_v18 }
  0x22   :  { %479 = vst [vmem:[%s722_s3 + $0x70] sm:$0xff] %v459_v2  }
  0x23   :  { %480 = vst [vmem:[%s722_s3 + $0x78] sm:$0xff] %v464_v20  }

// kernel: decoder64x64_forward.17
= control target key start
LH: loop header
LB: loop body
LE: loop exit
PB: predicated region body
PF: predicated region fallthrough
CT: control target
= control target key end

     0   :  { %s737_s9 = smov 0   ;;  %s739_s10 = smov 0   ;;  %s870_s0 = inlined_call_operand.vmem [shape: bf16[4,3,64], index: 0, kind: input, shape index: {}]   ;;  %s871_s1 = inlined_call_operand.vmem [shape: bf16[4,64,2048], index: 1, kind: input, shape index: {}]   ;;  %s872_s2 = inlined_call_operand.vmem [shape: f32[4,3,2048], index: 2, kind: output, shape index: {}]  }
   0x1   :  { %s741_s11 = smov 0   ;;  %s743_s12 = smov 0  }
   0x2   :  { %s745_s13 = smov 0   ;;  %s747_s14 = smov 0  }
   0x3   :  { %s749_s15 = smov 0  }
   0x4 LB: > { %s21_s16 = sadd.s32 1, %s711_s13  ;;  %s24_s17 = sadd.s32 1, %s715_s14  ;;  %s719_s15 = sphi %s749_s15, %s12_s15   ;;  %s715_s14 = sphi %s747_s14, %s878_s14   ;;  %s711_s13 = sphi %s745_s13, %s877_s13   ;;  %s707_s12 = sphi %s743_s12, %s876_s12   ;;  %s703_s11 = sphi %s741_s11, %s875_s11   ;;  %s699_s10 = sphi %s739_s10, %s874_s10   ;;  %s695_s9 = sphi %s737_s9, %s873_s9  }
   0x5   : > { %p22_p0 = scmp.ge.s32.totalorder %s21_s16, 4  ;;  %p66_p1 = scmp.ne.s32.totalorder %s699_s10, %s695_s9 }
   0x6   : > { %p67_p2 = scmp.eq.s32.totalorder %s719_s15, 0  ;;  %s59_s21 = sadd.s32 1, %s699_s10 }
   0x7   : > { %s880_s16 = smov (%p22_p0, %s21_s16), 0  ;;  %s882_s17 = smov (!%p22_p0, %s24_s17), %s715_s14 }
   0x8   : > { %p68_p3 = por %p67_p2, %p66_p1  ;;  %p26_p4 = scmp.ge.s32.totalorder %s882_s17, 4 }
   0x9   : > { %s55_s18 = ssub.s32 %s711_s13, %s880_s16  ;;  %p545_p6 = scmp.ge.s32.totalorder %s719_s15, 16 }
   0xa   : > { %s884_s17 = smov (%p26_p4, %s882_s17), 0 }
   0xb   : > { %s54_s19 = ssub.s32 %s715_s14, %s884_s17  ;;  %120 = sbr.rel (%p545_p6) target bundleno = 33 (0x21), region = 16 }
   0xc   : > { %s56_s20 = sor.u32 %s55_s18, %s54_s19 }
   0xd   : > { %p57_p5 = scmp.eq.s32.totalorder %s56_s20, 0 }
   0xf   : > { %s788_s22 = scalar_select %p57_p5, %s699_s10, %s59_s21  }
  0x12   : > { %130 = sbr.rel (!%p68_p3) target bundleno = 33 (0x21), region = 24  ;;  %s132_s23 = sand.u32 (%p68_p3), 1, %s699_s10  }
  0x13   : > { %s547_s24 = sshll.u32 (%p68_p3), %s711_s13, 2  ;;  %s546_s25 = sshll.u32 (%p68_p3), %s132_s23, 7 }
  0x14   : > { %s548_s26 = sshll.u32 (%p68_p3), %s715_s14, 7  ;;  %s134_s4 = scalar_lea.vmem (%p68_p3), [#allocation2], %s546_s25 }
  0x15   : > { %s137_s27 = sadd.s32 (%p68_p3), %s548_s26, %s547_s24 }
  0x16   : > { %s549_s28 = sshll.u32 (%p68_p3), %s137_s27, 2 }
  0x17   : > { %s797_s3 = scalar_lea.vmem (%p68_p3), %s871_s1, %s549_s28 }
  0x18   : > { %v152_v0 = vld [vmem:[%s797_s3] sm:$0xff] (%p68_p3)  ;;  %v154_v1 = vld [vmem:[%s797_s3 + $0x8] sm:$0xff] (%p68_p3) }
  0x19   : > { %v156_v2 = vld [vmem:[%s797_s3 + $0x40] sm:$0xff]  ;;  %153 = vst [vmem:[%s134_s4] sm:$0xff] %v152_v0  ;;  %155 = vst [vmem:[%s134_s4 + $0x8] sm:$0xff] %v154_v1  ;;  %v158_v3 = vld [vmem:[%s797_s3 + $0x48] sm:$0xff] }
  0x1a   : > { %157 = vst [vmem:[%s134_s4 + $0x10] sm:$0xff] %v156_v2  ;;  %v160_v4 = vld [vmem:[%s797_s3 + $0x80] sm:$0xff]  ;;  %v162_v5 = vld [vmem:[%s797_s3 + $0x88] sm:$0xff]  ;;  %159 = vst [vmem:[%s134_s4 + $0x18] sm:$0xff] %v158_v3 }
  0x1b   : > { %161 = vst [vmem:[%s134_s4 + $0x20] sm:$0xff] %v160_v4  ;;  %163 = vst [vmem:[%s134_s4 + $0x28] sm:$0xff] %v162_v5  ;;  %v164_v6 = vld [vmem:[%s797_s3 + $0xc0] sm:$0xff]  ;;  %v166_v7 = vld [vmem:[%s797_s3 + $0xc8] sm:$0xff] }
  0x1c   : > { %v168_v8 = vld [vmem:[%s797_s3 + $0x100] sm:$0xff]  ;;  %165 = vst [vmem:[%s134_s4 + $0x30] sm:$0xff] %v164_v6  ;;  %167 = vst [vmem:[%s134_s4 + $0x38] sm:$0xff] %v166_v7  ;;  %v170_v9 = vld [vmem:[%s797_s3 + $0x108] sm:$0xff] }
  0x1d   : > { %169 = vst [vmem:[%s134_s4 + $0x40] sm:$0xff] %v168_v8  ;;  %v172_v10 = vld [vmem:[%s797_s3 + $0x140] sm:$0xff]  ;;  %v174_v11 = vld [vmem:[%s797_s3 + $0x148] sm:$0xff]  ;;  %171 = vst [vmem:[%s134_s4 + $0x48] sm:$0xff] %v170_v9 }
  0x1e   : > { %173 = vst [vmem:[%s134_s4 + $0x50] sm:$0xff] %v172_v10  ;;  %175 = vst [vmem:[%s134_s4 + $0x58] sm:$0xff] %v174_v11  ;;  %v176_v12 = vld [vmem:[%s797_s3 + $0x180] sm:$0xff]  ;;  %v178_v13 = vld [vmem:[%s797_s3 + $0x188] sm:$0xff] }
  0x1f   : > { %v180_v14 = vld [vmem:[%s797_s3 + $0x1c0] sm:$0xff]  ;;  %177 = vst [vmem:[%s134_s4 + $0x60] sm:$0xff] %v176_v12  ;;  %179 = vst [vmem:[%s134_s4 + $0x68] sm:$0xff] %v178_v13  ;;  %v182_v15 = vld [vmem:[%s797_s3 + $0x1c8] sm:$0xff] }
  0x20   : > { %181 = vst [vmem:[%s134_s4 + $0x70] sm:$0xff] %v180_v14  ;;  %183 = vst [vmem:[%s134_s4 + $0x78] sm:$0xff] %v182_v15 }
  0x21 PF: > { %p550_p7 = scmp.ge.s32.totalorder %s719_s15, 1  ;;  %p188_p8 = scmp.lt.s32.totalorder %s719_s15, 17 }
  0x23   : > { %p189_p9 = pnand %p550_p7, %p188_p8 }
  0x24   : > { %s195_s5 = sand.u32 (!%p189_p9), 1, %s695_s9   ;;  %v721_v16 = vmov (!%p189_p9), 0   ;;  %p224_p10 = scmp.lt.s32.totalorder (!%p189_p9), %s707_s12, 3  ;;  %vm337_vm0 = vcmask (!%p189_p9), 523264  }
  0x25   : > { %192 = sbr.rel (%p189_p9) target bundleno = 285 (0x11d), region = 47  ;;  %s551_s6 = sshll.u32 (!%p189_p9), %s195_s5, 7  ;;  %373 = vmatprep.mubr.bf16.mxu0 (!%p189_p9), %v721_v16  ;;  %414 = vmatprep.mubr.bf16.mxu1 (!%p189_p9), %v721_v16 }
  0x26   : > { %s818_s7 = scalar_lea.vmem (!%p189_p9), [#allocation2], %s551_s6  ;;  %s553_s20 = sshll.u32 (!%p189_p9), %s703_s11, 2 }
  0x27   : > { %v633_v17 = vld [vmem:[%s818_s7 + $0x4] ss:$16 sps:$4 sm:$0xff] (!%p189_p9)   ;;  %v635_v18 = vld [vmem:[%s818_s7 + $0xc] ss:$16 sps:$4 sm:$0xff] (!%p189_p9)   ;;  %v637_v19 = vld [vmem:[%s818_s7] ss:$16 sps:$4 sm:$0xff] (!%p189_p9)  }
  0x28   : > { %341 = vmatprep.subr.bf16.mxu0 (!%p189_p9), %v633_v17  ;;  %v638_v20 = vld [vmem:[%s818_s7 + $0x8] ss:$16 sps:$4 sm:$0xff] (!%p189_p9)   ;;  %382 = vmatprep.subr.bf16.mxu1 (!%p189_p9), %v635_v18  ;;  %v639_v21 = vld [vmem:[%s818_s7 + $0x24] ss:$16 sps:$4 sm:$0xff] (!%p189_p9)   ;;  %v641_v22 = vld [vmem:[%s818_s7 + $0x2c] ss:$16 sps:$4 sm:$0xff] (!%p189_p9)  }
  0x29   : > { %342 = vmatpush1.bf16.msra.mxu0 (!%p189_p9), %v637_v19  ;;  %383 = vmatpush1.bf16.msra.mxu1 (!%p189_p9), %v638_v20  ;;  %v643_v23 = vld [vmem:[%s818_s7 + $0x20] ss:$16 sps:$4 sm:$0xff] (!%p189_p9)   ;;  %v644_v24 = vld [vmem:[%s818_s7 + $0x28] ss:$16 sps:$4 sm:$0xff] (!%p189_p9)   ;;  %v645_v25 = vld [vmem:[%s818_s7 + $0x44] ss:$16 sps:$4 sm:$0xff] (!%p189_p9)  }
  0x2a   : > { %343 = vmatprep.subr.bf16.mxu0 (!%p189_p9), %v639_v21  ;;  %384 = vmatprep.subr.bf16.mxu1 (!%p189_p9), %v641_v22  ;;  %v647_v26 = vld [vmem:[%s818_s7 + $0x4c] ss:$16 sps:$4 sm:$0xff] (!%p189_p9)   ;;  %v649_v27 = vld [vmem:[%s818_s7 + $0x40] ss:$16 sps:$4 sm:$0xff] (!%p189_p9)   ;;  %v650_v28 = vld [vmem:[%s818_s7 + $0x48] ss:$16 sps:$4 sm:$0xff] (!%p189_p9)  }
  0x2b   : > { %v651_v29 = vld [vmem:[%s818_s7 + $0x64] ss:$16 sps:$4 sm:$0xff] (!%p189_p9)   ;;  %v653_v30 = vld [vmem:[%s818_s7 + $0x6c] ss:$16 sps:$4 sm:$0xff] (!%p189_p9)   ;;  %v655_v31 = vld [vmem:[%s818_s7 + $0x60] ss:$16 sps:$4 sm:$0xff] (!%p189_p9)  }
  0x2c   : > { %s886_s12 = smov (!%p224_p10, %s707_s12), 3  ;;  %v656_v32 = vld [vmem:[%s818_s7 + $0x68] ss:$16 sps:$4 sm:$0xff]   ;;  %p232_p11 = scmp.lt.s32.totalorder %s553_s20, 15 }
  0x2d   : > { %344 = vmatpush1.bf16.msra.mxu0 %v643_v23  ;;  %385 = vmatpush1.bf16.msra.mxu1 %v644_v24  ;;  %s552_s8 = sshll.u32 %s886_s12, 1  ;;  %s554_s21 = sshll.u32 %s886_s12, 4 }
  0x2e   : > { %345 = vmatprep.subr.bf16.mxu0 %v645_v25  ;;  %386 = vmatprep.subr.bf16.mxu1 %v647_v26  ;;  %s227_s19 = scalar_lea.vmem %s870_s0, %s552_s8  ;;  %s888_s20 = smov (!%p232_p11, %s553_s20), 15 }
  0x2f   : > { %v240_v33 = vld [vmem:[%s227_s19] sm:$0x3]  ;;  %s235_s23 = sadd.s32 %s554_s21, %s888_s20 }
  0x30   : > { %s555_s24 = sshll.u32 %s235_s23, 2 }
  0x31   : > { %346 = vmatpush1.bf16.msra.mxu0 %v649_v27  ;;  %387 = vmatpush1.bf16.msra.mxu1 %v650_v28  ;;  %s237_s26 = scalar_lea.vmem %s872_s2, %s555_s24 }
  0x32   : > { %347 = vmatprep.subr.bf16.mxu0 %v651_v29  ;;  %388 = vmatprep.subr.bf16.mxu1 %v653_v30 }
  0x35   : > { %348 = vmatpush1.bf16.msra.mxu0 %v655_v31  ;;  %389 = vmatpush1.bf16.msra.mxu1 %v656_v32 }
  0x38   : > { %572 = vmatmul.mubr.msk.bf16.vlgmr.msra.gmra.mrb[0].mxu0 %vm337_vm0, %v240_v33  ;;  %573 = vmatmul.mubr.msk.bf16.vlgmr.msra.gmra.mrb[0].mxu1 %vm337_vm0, %v240_v33 }
 0x10b   : > { %v375_v34 = vpop.f32.mrb[0].mxu0  ;;  %v416_v35 = vpop.f32.mrb[0].mxu1 }
 0x10c   : > { %657 = vtanh.f32 %v375_v34  ;;  %v377_v36 = vpop.f32.mrb[1].mxu0  ;;  %v418_v37 = vpop.f32.mrb[1].mxu1 }
 0x10d   : > { %659 = vtanh.f32 %v416_v35  ;;  %v379_v38 = vpop.f32.mrb[2].mxu0  ;;  %v420_v39 = vpop.f32.mrb[2].mxu1 }
 0x10e   : > { %661 = vtanh.f32 %v377_v36  ;;  %v380_v40 = vpop.f32.mrb[3].mxu0  ;;  %v421_v41 = vpop.f32.mrb[3].mxu1 }
 0x10f   : > { %663 = vtanh.f32 %v418_v37 }
 0x116   : > { %v658_v42 = vpop.eup %657 }
 0x117   : > { %v660_v43 = vpop.eup %659 }
 0x118   : > { %v662_v44 = vpop.eup %661 }
 0x119   : > { %v664_v45 = vpop.eup %663  ;;  %v431_v46 = vcombine.low %v658_v42, %v662_v44 }
 0x11a   : > { %v432_v47 = vcombine.low %v660_v43, %v664_v45 }
 0x11b   : > { %435 = vst [vmem:[%s237_s26] sm:$0x77] %v431_v46 }
 0x11c   : > { %436 = vst [vmem:[%s237_s26 + $0x8] sm:$0x77] %v432_v47 }
 0x11d PF: > { %s12_s15 = sadd.s32 1, %s719_s15   ;;  %s873_s9 = smov %s699_s10 }
 0x11e   : > { %p9_p12 = scmp.ge.s32.totalorder %s12_s15, 18   ;;  %s874_s10 = smov %s788_s22 }
 0x11f   : > { %s875_s11 = smov %s711_s13  ;;  %s876_s12 = smov %s715_s14 }
 0x120   : > { %s877_s13 = smov %s880_s16  ;;  %s878_s14 = smov %s884_s17 }
 0x121   :  { %11 = sbr.rel (!%p9_p12) target bundleno = 4 (0x4), region = 89 }

</bundles_post_ra>
